<compile_context>
chip_gen: v7x
topology: tpu7x:2x2x1
jax: 0.10.0
libtpu: 0.0.40
codegen_flags: <defaults>
</compile_context>

<pallas_src>
import jax
import jax.numpy as jnp
from jax import lax
from jax.experimental import pallas as pl
from jax.experimental.pallas import tpu as pltpu


def _hardswish(x):
    # PyTorch nn.Hardswish: x * relu6(x + 3) / 6
    return x * jnp.clip(x + 3.0, 0.0, 6.0) * (1.0 / 6.0)


def _round_up(x, m):
    return ((x + m - 1) // m) * m


def _pick_tile_h(H, cap=32):
    """Row-tile height: a multiple of 8 (TPU sublane) or the full H, capped."""
    if H <= cap:
        return H if H % 8 == 0 else _round_up(H, 8)
    return cap


# ----------------------------------------------------------------------------
# Fused kernel: 1x1 conv + BN + Hardswish  ->  depthwise 5x5 + BN + Hardswish
# ----------------------------------------------------------------------------
def _make_ghost_kernel(H, W, C1, C_, TILE_H):
    HP = TILE_H + 4          # halo rows consumed by the 5x5 depthwise
    WP = W + 4               # halo cols (zero padding lives only in VMEM)

    def kernel(x_ref, w1_ref, s1_ref, b1_ref, w2_ref, s2_ref, b2_ref,
               o_ref, ypad_ref):
        # x_ref   : (C1, H, W)            unpadded NCHW image, resident per batch
        # w1_ref  : (C_, C1)   SMEM f32   1x1 conv weights (scalars)
        # s1/b1   : (C_,)      SMEM f32   fused BN1 scale / shift
        # w2_ref  : (C_, 25)   SMEM f32   depthwise taps, col k = kh*5 + kw
        # s2/b2   : (C_,)      SMEM f32   fused BN2 scale / shift
        # o_ref   : (2*C_, TILE_H, W)     output block; [0:C_]=y, [C_:2C_]=z
        # ypad_ref: (C_, T*TILE_H+4, W+4) per-batch zero-padded y map (scratch)
        t = pl.program_id(1)

        # ---- per-batch cv1 pass: fill the zero-padded y map exactly once ---
        @pl.when(t == 0)
        def _():
            ypad_ref[...] = jnp.zeros_like(ypad_ref)          # zero halo border
            for co in range(C_):
                acc = jnp.zeros((H, W), jnp.float32)
                for ci in range(C1):
                    acc = acc + x_ref[ci].astype(jnp.float32) * w1_ref[co, ci]
                y_co = _hardswish(acc * s1_ref[co] + b1_ref[co])
                ypad_ref[co, 2:2 + H, 2:2 + W] = y_co

        # ---- per-row-tile: depthwise 5x5 + BN + Hardswish + both stores ----
        row0 = pl.multiple_of(t * TILE_H, TILE_H)

        for co in range(C_):
            yh = ypad_ref[co, pl.ds(row0, HP), :]             # (HP, WP) f32
            acc = jnp.zeros((TILE_H, W), jnp.float32)
            for j in range(5):                                # 5 W-shifted slabs
                yj = yh[:, j:j + W]                           # (HP, W)
                for i in range(5):                            # 5 cheap row slices
                    acc = acc + yj[i:i + TILE_H, :] * w2_ref[co, i * 5 + j]
            z_co = _hardswish(acc * s2_ref[co] + b2_ref[co])

            # channel "concat": first C_ channels = y half, next C_ = z half
            o_ref[co] = yh[2:2 + TILE_H, 2:2 + W].astype(o_ref.dtype)
            o_ref[C_ + co] = z_co.astype(o_ref.dtype)

    return kernel


# ----------------------------------------------------------------------------
# Wrapper: no HBM padding, no layout transposes — NCHW in, NCHW out.
# ----------------------------------------------------------------------------
def ghost_conv_forward(x_nchw, w1, scale1, shift1, w2, scale2, shift2):
    """x_nchw: (N, C1, H, W). w1: (C_, C1). w2: (C_, 5, 5). Returns (N, 2*C_, H, W)."""
    N, C1, H, W = x_nchw.shape
    C_ = w1.shape[0]
    dtype = x_nchw.dtype

    TILE_H = _pick_tile_h(H)
    T = int(pl.cdiv(H, TILE_H))
    ROWS = T * TILE_H + 4          # padded-y rows (covers last-tile overhang)
    WP = W + 4

    # Per-channel scalars live in SMEM (scalar path), always f32.
    w1f = w1.astype(jnp.float32)                       # (C_, C1)
    w2f = w2.reshape(C_, 25).astype(jnp.float32)       # (C_, 25), col = kh*5+kw
    s1 = scale1.astype(jnp.float32)
    b1 = shift1.astype(jnp.float32)
    s2 = scale2.astype(jnp.float32)
    b2 = shift2.astype(jnp.float32)

    kernel = _make_ghost_kernel(H, W, C1, C_, TILE_H)
    smem_spec = lambda: pl.BlockSpec(memory_space=pltpu.MemorySpace.SMEM)

    # VMEM budget derived from the actual buffers (x block is double-buffered
    # by the pipeline even though it only changes per batch; accounted here
    # instead of risking pipeline_mode tweaks).  Fits v7x's 64 MiB/TC.
    itemsize = jnp.dtype(dtype).itemsize
    x_bytes = C1 * H * W * itemsize
    out_blk_bytes = 2 * C_ * TILE_H * W * itemsize
    ypad_bytes = C_ * ROWS * WP * 4
    need = 2 * x_bytes + 2 * out_blk_bytes + ypad_bytes
    vmem_limit = int(min(64 * 1024 * 1024, max(8 * 1024 * 1024, 2 * need)))

    out = pl.pallas_call(
        kernel,
        out_shape=jax.ShapeDtypeStruct((N, 2 * C_, H, W), dtype),
        grid_spec=pltpu.PrefetchScalarGridSpec(
            num_scalar_prefetch=0,
            grid=(N, T),
            in_specs=[
                # full unpadded image per batch, resident across its row tiles
                pl.BlockSpec((None, C1, H, W), lambda n, t: (n, 0, 0, 0)),
                smem_spec(),   # w1
                smem_spec(),   # scale1
                smem_spec(),   # shift1
                smem_spec(),   # w2 taps
                smem_spec(),   # scale2
                smem_spec(),   # shift2
            ],
            out_specs=pl.BlockSpec((None, 2 * C_, TILE_H, W),
                                   lambda n, t: (n, 0, t, 0)),
            scratch_shapes=[pltpu.VMEM((C_, ROWS, WP), jnp.float32)],
        ),
        compiler_params=pltpu.CompilerParams(
            # n: independent images (megacore-parallel).  t: row tiles share
            # the per-batch ypad scratch -> must stay "arbitrary".
            dimension_semantics=("parallel", "arbitrary"),
            vmem_limit_bytes=vmem_limit),
    )(x_nchw, w1f, s1, b1, w2f, s2, b2)

    return out


# ----------------------------------------------------------------------------
# Pure-JAX reference for verification
# ----------------------------------------------------------------------------
def ghost_conv_reference(x_nchw, w1, scale1, shift1, w2, scale2, shift2):
    C_ = w1.shape[0]
    y = lax.conv_general_dilated(
        x_nchw, w1[:, :, None, None], (1, 1), "VALID",
        dimension_numbers=("NCHW", "OIHW", "NCHW"))
    y = _hardswish(y * scale1[None, :, None, None] + shift1[None, :, None, None])
    z = lax.conv_general_dilated(
        y, w2[:, None, :, :], (1, 1), ((2, 2), (2, 2)),
        dimension_numbers=("NCHW", "OIHW", "NCHW"),
        feature_group_count=C_)
    z = _hardswish(z * scale2[None, :, None, None] + shift2[None, :, None, None])
    return jnp.concatenate([y, z], axis=1)


if __name__ == "__main__":
    # Small shapes: GhostConv(c1=4, c2=8) -> c_ = 4
    N, C1, C2, H, W = 2, 4, 8, 16, 16
    C_ = C2 // 2
    eps = 1e-5

    key = jax.random.PRNGKey(0)
    k1, k2, k3, k4, k5, k6, k7, k8, k9, k10 = jax.random.split(key, 10)

    x = jax.random.normal(k1, (N, C1, H, W), dtype=jnp.float32)

    # cv1: Conv2d(c1, c_, k=1, s=1, p=0, bias=False) -> weight (C_, C1)
    w1 = jax.random.normal(k2, (C_, C1), dtype=jnp.float32) * 0.3
    gamma1 = jax.random.uniform(k3, (C_,), minval=0.5, maxval=1.5)
    beta1 = jax.random.normal(k4, (C_,)) * 0.1
    mean1 = jax.random.normal(k5, (C_,)) * 0.1
    var1 = jax.random.uniform(k6, (C_,), minval=0.5, maxval=1.5)
    scale1 = gamma1 / jnp.sqrt(var1 + eps)
    shift1 = beta1 - mean1 * scale1

    # cv2: Conv2d(c_, c_, k=5, s=1, p=2, groups=c_, bias=False) -> weight (C_, 5, 5)
    w2 = jax.random.normal(k7, (C_, 5, 5), dtype=jnp.float32) * 0.1
    gamma2 = jax.random.uniform(k8, (C_,), minval=0.5, maxval=1.5)
    beta2 = jax.random.normal(k9, (C_,)) * 0.1
    mean2 = jax.random.normal(k10, (C_,)) * 0.1
    var2 = jnp.ones((C_,), jnp.float32)
    scale2 = gamma2 / jnp.sqrt(var2 + eps)
    shift2 = beta2 - mean2 * scale2

    fwd = jax.jit(ghost_conv_forward)
    out = fwd(x, w1, scale1, shift1, w2, scale2, shift2)
    out = jax.block_until_ready(out)

    ref = ghost_conv_reference(x, w1, scale1, shift1, w2, scale2, shift2)
    ref = jax.block_until_ready(ref)

    assert out.shape == (N, C2, H, W), out.shape
    max_err = float(jnp.max(jnp.abs(out - ref)))
    assert jnp.allclose(out, ref, atol=5e-4, rtol=5e-4), max_err

    print("KERNEL_OK")
</pallas_src>

<mosaic_0001>
module attributes {stable_mosaic.version = 11 : i64} {
  func.func @kernel(%arg0: i32, %arg1: i32, %arg2: memref<1x4x16x16xf32, #tpu.memory_space<vmem>>, %arg3: memref<4x4xf32, #tpu.memory_space<smem>>, %arg4: memref<4xf32, #tpu.memory_space<smem>>, %arg5: memref<4xf32, #tpu.memory_space<smem>>, %arg6: memref<4x25xf32, #tpu.memory_space<smem>>, %arg7: memref<4xf32, #tpu.memory_space<smem>>, %arg8: memref<4xf32, #tpu.memory_space<smem>>, %arg9: memref<1x8x16x16xf32, #tpu.memory_space<vmem>>, %arg10: memref<4x20x20xf32, #tpu.memory_space<vmem>>) attributes {dimension_semantics = [#tpu.dimension_semantics<parallel>, #tpu.dimension_semantics<arbitrary>], iteration_bounds = array<i64: 2, 1>, scalar_prefetch = 0 : i64, scratch_operands = 1 : i64, tpu.core_type = #tpu.core_type<tc>, window_params = [{transform_indices = @transform_0, window_bounds = array<i64: 1, 4, 16, 16>}, {transform_indices = @transform_1, window_bounds = array<i64: 4, 4>}, {transform_indices = @transform_2, window_bounds = array<i64: 4>}, {transform_indices = @transform_3, window_bounds = array<i64: 4>}, {transform_indices = @transform_4, window_bounds = array<i64: 4, 25>}, {transform_indices = @transform_5, window_bounds = array<i64: 4>}, {transform_indices = @transform_6, window_bounds = array<i64: 4>}, {transform_indices = @transform_7, window_bounds = array<i64: 1, 8, 16, 16>}]} {
    %c0_i32 = arith.constant 0 : i32
    %0 = arith.cmpi eq, %arg1, %c0_i32 : i32
    %1 = arith.extui %0 : i1 to i32
    %c0_i32_0 = arith.constant 0 : i32
    %2 = arith.cmpi ne, %1, %c0_i32_0 : i32
    scf.if %2 {
      %cst_243 = arith.constant 0.000000e+00 : f32
      %629 = vector.broadcast %cst_243 : f32 to vector<4x20x20xf32>
      %c0_244 = arith.constant 0 : index
      %c0_245 = arith.constant 0 : index
      %c0_246 = arith.constant 0 : index
      %630 = vector.load %arg10[%c0_244, %c0_245, %c0_246] : memref<4x20x20xf32, #tpu.memory_space<vmem>>, vector<4x20x20xf32>
      tpu.vector_store %arg10[%c0_244, %c0_245, %c0_246], %629 {strides = array<i32>} : memref<4x20x20xf32, #tpu.memory_space<vmem>>, vector<4x20x20xf32>,
      %cst_247 = arith.constant 0.000000e+00 : f32
      %631 = vector.broadcast %cst_247 : f32 to vector<16x16xf32>
      %c0_248 = arith.constant 0 : index
      %c0_249 = arith.constant 0 : index
      %c0_250 = arith.constant 0 : index
      %c0_251 = arith.constant 0 : index
      %632 = vector.load %arg2[%c0_248, %c0_249, %c0_250, %c0_251] : memref<1x4x16x16xf32, #tpu.memory_space<vmem>>, vector<1x1x16x16xf32>
      %633 = vector.shape_cast %632 : vector<1x1x16x16xf32> to vector<16x16xf32>
      %c0_252 = arith.constant 0 : index
      %c0_253 = arith.constant 0 : index
      %634 = memref.load %arg3[%c0_252, %c0_253] : memref<4x4xf32, #tpu.memory_space<smem>>
      %635 = vector.broadcast %634 : f32 to vector<16x16xf32>
      %636 = arith.mulf %633, %635 : vector<16x16xf32>
      %637 = arith.addf %631, %636 : vector<16x16xf32>
      %c0_254 = arith.constant 0 : index
      %c1_255 = arith.constant 1 : index
      %c0_256 = arith.constant 0 : index
      %c0_257 = arith.constant 0 : index
      %638 = vector.load %arg2[%c0_254, %c1_255, %c0_256, %c0_257] : memref<1x4x16x16xf32, #tpu.memory_space<vmem>>, vector<1x1x16x16xf32>
      %639 = vector.shape_cast %638 : vector<1x1x16x16xf32> to vector<16x16xf32>
      %c0_258 = arith.constant 0 : index
      %c1_259 = arith.constant 1 : index
      %640 = memref.load %arg3[%c0_258, %c1_259] : memref<4x4xf32, #tpu.memory_space<smem>>
      %641 = vector.broadcast %640 : f32 to vector<16x16xf32>
      %642 = arith.mulf %639, %641 : vector<16x16xf32>
      %643 = arith.addf %637, %642 : vector<16x16xf32>
      %c0_260 = arith.constant 0 : index
      %c2_261 = arith.constant 2 : index
      %c0_262 = arith.constant 0 : index
      %c0_263 = arith.constant 0 : index
      %644 = vector.load %arg2[%c0_260, %c2_261, %c0_262, %c0_263] : memref<1x4x16x16xf32, #tpu.memory_space<vmem>>, vector<1x1x16x16xf32>
      %645 = vector.shape_cast %644 : vector<1x1x16x16xf32> to vector<16x16xf32>
      %c0_264 = arith.constant 0 : index
      %c2_265 = arith.constant 2 : index
      %646 = memref.load %arg3[%c0_264, %c2_265] : memref<4x4xf32, #tpu.memory_space<smem>>
      %647 = vector.broadcast %646 : f32 to vector<16x16xf32>
      %648 = arith.mulf %645, %647 : vector<16x16xf32>
      %649 = arith.addf %643, %648 : vector<16x16xf32>
      %c0_266 = arith.constant 0 : index
      %c3_267 = arith.constant 3 : index
      %c0_268 = arith.constant 0 : index
      %c0_269 = arith.constant 0 : index
      %650 = vector.load %arg2[%c0_266, %c3_267, %c0_268, %c0_269] : memref<1x4x16x16xf32, #tpu.memory_space<vmem>>, vector<1x1x16x16xf32>
      %651 = vector.shape_cast %650 : vector<1x1x16x16xf32> to vector<16x16xf32>
      %c0_270 = arith.constant 0 : index
      %c3_271 = arith.constant 3 : index
      %652 = memref.load %arg3[%c0_270, %c3_271] : memref<4x4xf32, #tpu.memory_space<smem>>
      %653 = vector.broadcast %652 : f32 to vector<16x16xf32>
      %654 = arith.mulf %651, %653 : vector<16x16xf32>
      %655 = arith.addf %649, %654 : vector<16x16xf32>
      %c0_272 = arith.constant 0 : index
      %656 = memref.load %arg4[%c0_272] : memref<4xf32, #tpu.memory_space<smem>>
      %657 = vector.broadcast %656 : f32 to vector<16x16xf32>
      %658 = arith.mulf %655, %657 : vector<16x16xf32>
      %c0_273 = arith.constant 0 : index
      %659 = memref.load %arg5[%c0_273] : memref<4xf32, #tpu.memory_space<smem>>
      %660 = vector.broadcast %659 : f32 to vector<16x16xf32>
      %661 = arith.addf %658, %660 : vector<16x16xf32>
      %cst_274 = arith.constant 3.000000e+00 : f32
      %662 = vector.broadcast %cst_274 : f32 to vector<16x16xf32>
      %663 = arith.addf %661, %662 : vector<16x16xf32>
      %cst_275 = arith.constant 0.000000e+00 : f32
      %cst_276 = arith.constant 6.000000e+00 : f32
      %664 = vector.broadcast %cst_275 : f32 to vector<16x16xf32>
      %665 = arith.maximumf %664, %663 : vector<16x16xf32>
      %666 = vector.broadcast %cst_276 : f32 to vector<16x16xf32>
      %667 = arith.minimumf %666, %665 : vector<16x16xf32>
      %668 = arith.mulf %661, %667 : vector<16x16xf32>
      %cst_277 = arith.constant 0.166666672 : f32
      %669 = vector.broadcast %cst_277 : f32 to vector<16x16xf32>
      %670 = arith.mulf %668, %669 : vector<16x16xf32>
      %c0_278 = arith.constant 0 : index
      %c2_279 = arith.constant 2 : index
      %c2_280 = arith.constant 2 : index
      %671 = vector.load %arg10[%c0_278, %c2_279, %c2_280] : memref<4x20x20xf32, #tpu.memory_space<vmem>>, vector<1x16x16xf32>
      %672 = vector.shape_cast %671 : vector<1x16x16xf32> to vector<16x16xf32>
      %673 = vector.shape_cast %670 : vector<16x16xf32> to vector<1x16x16xf32>
      tpu.vector_store %arg10[%c0_278, %c2_279, %c2_280], %673 {strides = array<i32>} : memref<4x20x20xf32, #tpu.memory_space<vmem>>, vector<1x16x16xf32>,
      %cst_281 = arith.constant 0.000000e+00 : f32
      %674 = vector.broadcast %cst_281 : f32 to vector<16x16xf32>
      %c0_282 = arith.constant 0 : index
      %c0_283 = arith.constant 0 : index
      %c0_284 = arith.constant 0 : index
      %c0_285 = arith.constant 0 : index
      %675 = vector.load %arg2[%c0_282, %c0_283, %c0_284, %c0_285] : memref<1x4x16x16xf32, #tpu.memory_space<vmem>>, vector<1x1x16x16xf32>
      %676 = vector.shape_cast %675 : vector<1x1x16x16xf32> to vector<16x16xf32>
      %c1_286 = arith.constant 1 : index
      %c0_287 = arith.constant 0 : index
      %677 = memref.load %arg3[%c1_286, %c0_287] : memref<4x4xf32, #tpu.memory_space<smem>>
      %678 = vector.broadcast %677 : f32 to vector<16x16xf32>
      %679 = arith.mulf %676, %678 : vector<16x16xf32>
      %680 = arith.addf %674, %679 : vector<16x16xf32>
      %c0_288 = arith.constant 0 : index
      %c1_289 = arith.constant 1 : index
      %c0_290 = arith.constant 0 : index
      %c0_291 = arith.constant 0 : index
      %681 = vector.load %arg2[%c0_288, %c1_289, %c0_290, %c0_291] : memref<1x4x16x16xf32, #tpu.memory_space<vmem>>, vector<1x1x16x16xf32>
      %682 = vector.shape_cast %681 : vector<1x1x16x16xf32> to vector<16x16xf32>
      %c1_292 = arith.constant 1 : index
      %c1_293 = arith.constant 1 : index
      %683 = memref.load %arg3[%c1_292, %c1_293] : memref<4x4xf32, #tpu.memory_space<smem>>
      %684 = vector.broadcast %683 : f32 to vector<16x16xf32>
      %685 = arith.mulf %682, %684 : vector<16x16xf32>
      %686 = arith.addf %680, %685 : vector<16x16xf32>
      %c0_294 = arith.constant 0 : index
      %c2_295 = arith.constant 2 : index
      %c0_296 = arith.constant 0 : index
      %c0_297 = arith.constant 0 : index
      %687 = vector.load %arg2[%c0_294, %c2_295, %c0_296, %c0_297] : memref<1x4x16x16xf32, #tpu.memory_space<vmem>>, vector<1x1x16x16xf32>
      %688 = vector.shape_cast %687 : vector<1x1x16x16xf32> to vector<16x16xf32>
      %c1_298 = arith.constant 1 : index
      %c2_299 = arith.constant 2 : index
      %689 = memref.load %arg3[%c1_298, %c2_299] : memref<4x4xf32, #tpu.memory_space<smem>>
      %690 = vector.broadcast %689 : f32 to vector<16x16xf32>
      %691 = arith.mulf %688, %690 : vector<16x16xf32>
      %692 = arith.addf %686, %691 : vector<16x16xf32>
      %c0_300 = arith.constant 0 : index
      %c3_301 = arith.constant 3 : index
      %c0_302 = arith.constant 0 : index
      %c0_303 = arith.constant 0 : index
      %693 = vector.load %arg2[%c0_300, %c3_301, %c0_302, %c0_303] : memref<1x4x16x16xf32, #tpu.memory_space<vmem>>, vector<1x1x16x16xf32>
      %694 = vector.shape_cast %693 : vector<1x1x16x16xf32> to vector<16x16xf32>
      %c1_304 = arith.constant 1 : index
      %c3_305 = arith.constant 3 : index
      %695 = memref.load %arg3[%c1_304, %c3_305] : memref<4x4xf32, #tpu.memory_space<smem>>
      %696 = vector.broadcast %695 : f32 to vector<16x16xf32>
      %697 = arith.mulf %694, %696 : vector<16x16xf32>
      %698 = arith.addf %692, %697 : vector<16x16xf32>
      %c1_306 = arith.constant 1 : index
      %699 = memref.load %arg4[%c1_306] : memref<4xf32, #tpu.memory_space<smem>>
      %700 = vector.broadcast %699 : f32 to vector<16x16xf32>
      %701 = arith.mulf %698, %700 : vector<16x16xf32>
      %c1_307 = arith.constant 1 : index
      %702 = memref.load %arg5[%c1_307] : memref<4xf32, #tpu.memory_space<smem>>
      %703 = vector.broadcast %702 : f32 to vector<16x16xf32>
      %704 = arith.addf %701, %703 : vector<16x16xf32>
      %cst_308 = arith.constant 3.000000e+00 : f32
      %705 = vector.broadcast %cst_308 : f32 to vector<16x16xf32>
      %706 = arith.addf %704, %705 : vector<16x16xf32>
      %cst_309 = arith.constant 0.000000e+00 : f32
      %cst_310 = arith.constant 6.000000e+00 : f32
      %707 = vector.broadcast %cst_309 : f32 to vector<16x16xf32>
      %708 = arith.maximumf %707, %706 : vector<16x16xf32>
      %709 = vector.broadcast %cst_310 : f32 to vector<16x16xf32>
      %710 = arith.minimumf %709, %708 : vector<16x16xf32>
      %711 = arith.mulf %704, %710 : vector<16x16xf32>
      %cst_311 = arith.constant 0.166666672 : f32
      %712 = vector.broadcast %cst_311 : f32 to vector<16x16xf32>
      %713 = arith.mulf %711, %712 : vector<16x16xf32>
      %c1_312 = arith.constant 1 : index
      %c2_313 = arith.constant 2 : index
      %c2_314 = arith.constant 2 : index
      %714 = vector.load %arg10[%c1_312, %c2_313, %c2_314] : memref<4x20x20xf32, #tpu.memory_space<vmem>>, vector<1x16x16xf32>
      %715 = vector.shape_cast %714 : vector<1x16x16xf32> to vector<16x16xf32>
      %716 = vector.shape_cast %713 : vector<16x16xf32> to vector<1x16x16xf32>
      tpu.vector_store %arg10[%c1_312, %c2_313, %c2_314], %716 {strides = array<i32>} : memref<4x20x20xf32, #tpu.memory_space<vmem>>, vector<1x16x16xf32>,
      %cst_315 = arith.constant 0.000000e+00 : f32
      %717 = vector.broadcast %cst_315 : f32 to vector<16x16xf32>
      %c0_316 = arith.constant 0 : index
      %c0_317 = arith.constant 0 : index
      %c0_318 = arith.constant 0 : index
      %c0_319 = arith.constant 0 : index
      %718 = vector.load %arg2[%c0_316, %c0_317, %c0_318, %c0_319] : memref<1x4x16x16xf32, #tpu.memory_space<vmem>>, vector<1x1x16x16xf32>
      %719 = vector.shape_cast %718 : vector<1x1x16x16xf32> to vector<16x16xf32>
      %c2_320 = arith.constant 2 : index
      %c0_321 = arith.constant 0 : index
      %720 = memref.load %arg3[%c2_320, %c0_321] : memref<4x4xf32, #tpu.memory_space<smem>>
      %721 = vector.broadcast %720 : f32 to vector<16x16xf32>
      %722 = arith.mulf %719, %721 : vector<16x16xf32>
      %723 = arith.addf %717, %722 : vector<16x16xf32>
      %c0_322 = arith.constant 0 : index
      %c1_323 = arith.constant 1 : index
      %c0_324 = arith.constant 0 : index
      %c0_325 = arith.constant 0 : index
      %724 = vector.load %arg2[%c0_322, %c1_323, %c0_324, %c0_325] : memref<1x4x16x16xf32, #tpu.memory_space<vmem>>, vector<1x1x16x16xf32>
      %725 = vector.shape_cast %724 : vector<1x1x16x16xf32> to vector<16x16xf32>
      %c2_326 = arith.constant 2 : index
      %c1_327 = arith.constant 1 : index
      %726 = memref.load %arg3[%c2_326, %c1_327] : memref<4x4xf32, #tpu.memory_space<smem>>
      %727 = vector.broadcast %726 : f32 to vector<16x16xf32>
      %728 = arith.mulf %725, %727 : vector<16x16xf32>
      %729 = arith.addf %723, %728 : vector<16x16xf32>
      %c0_328 = arith.constant 0 : index
      %c2_329 = arith.constant 2 : index
      %c0_330 = arith.constant 0 : index
      %c0_331 = arith.constant 0 : index
      %730 = vector.load %arg2[%c0_328, %c2_329, %c0_330, %c0_331] : memref<1x4x16x16xf32, #tpu.memory_space<vmem>>, vector<1x1x16x16xf32>
      %731 = vector.shape_cast %730 : vector<1x1x16x16xf32> to vector<16x16xf32>
      %c2_332 = arith.constant 2 : index
      %c2_333 = arith.constant 2 : index
      %732 = memref.load %arg3[%c2_332, %c2_333] : memref<4x4xf32, #tpu.memory_space<smem>>
      %733 = vector.broadcast %732 : f32 to vector<16x16xf32>
      %734 = arith.mulf %731, %733 : vector<16x16xf32>
      %735 = arith.addf %729, %734 : vector<16x16xf32>
      %c0_334 = arith.constant 0 : index
      %c3_335 = arith.constant 3 : index
      %c0_336 = arith.constant 0 : index
      %c0_337 = arith.constant 0 : index
      %736 = vector.load %arg2[%c0_334, %c3_335, %c0_336, %c0_337] : memref<1x4x16x16xf32, #tpu.memory_space<vmem>>, vector<1x1x16x16xf32>
      %737 = vector.shape_cast %736 : vector<1x1x16x16xf32> to vector<16x16xf32>
      %c2_338 = arith.constant 2 : index
      %c3_339 = arith.constant 3 : index
      %738 = memref.load %arg3[%c2_338, %c3_339] : memref<4x4xf32, #tpu.memory_space<smem>>
      %739 = vector.broadcast %738 : f32 to vector<16x16xf32>
      %740 = arith.mulf %737, %739 : vector<16x16xf32>
      %741 = arith.addf %735, %740 : vector<16x16xf32>
      %c2_340 = arith.constant 2 : index
      %742 = memref.load %arg4[%c2_340] : memref<4xf32, #tpu.memory_space<smem>>
      %743 = vector.broadcast %742 : f32 to vector<16x16xf32>
      %744 = arith.mulf %741, %743 : vector<16x16xf32>
      %c2_341 = arith.constant 2 : index
      %745 = memref.load %arg5[%c2_341] : memref<4xf32, #tpu.memory_space<smem>>
      %746 = vector.broadcast %745 : f32 to vector<16x16xf32>
      %747 = arith.addf %744, %746 : vector<16x16xf32>
      %cst_342 = arith.constant 3.000000e+00 : f32
      %748 = vector.broadcast %cst_342 : f32 to vector<16x16xf32>
      %749 = arith.addf %747, %748 : vector<16x16xf32>
      %cst_343 = arith.constant 0.000000e+00 : f32
      %cst_344 = arith.constant 6.000000e+00 : f32
      %750 = vector.broadcast %cst_343 : f32 to vector<16x16xf32>
      %751 = arith.maximumf %750, %749 : vector<16x16xf32>
      %752 = vector.broadcast %cst_344 : f32 to vector<16x16xf32>
      %753 = arith.minimumf %752, %751 : vector<16x16xf32>
      %754 = arith.mulf %747, %753 : vector<16x16xf32>
      %cst_345 = arith.constant 0.166666672 : f32
      %755 = vector.broadcast %cst_345 : f32 to vector<16x16xf32>
      %756 = arith.mulf %754, %755 : vector<16x16xf32>
      %c2_346 = arith.constant 2 : index
      %c2_347 = arith.constant 2 : index
      %c2_348 = arith.constant 2 : index
      %757 = vector.load %arg10[%c2_346, %c2_347, %c2_348] : memref<4x20x20xf32, #tpu.memory_space<vmem>>, vector<1x16x16xf32>
      %758 = vector.shape_cast %757 : vector<1x16x16xf32> to vector<16x16xf32>
      %759 = vector.shape_cast %756 : vector<16x16xf32> to vector<1x16x16xf32>
      tpu.vector_store %arg10[%c2_346, %c2_347, %c2_348], %759 {strides = array<i32>} : memref<4x20x20xf32, #tpu.memory_space<vmem>>, vector<1x16x16xf32>,
      %cst_349 = arith.constant 0.000000e+00 : f32
      %760 = vector.broadcast %cst_349 : f32 to vector<16x16xf32>
      %c0_350 = arith.constant 0 : index
      %c0_351 = arith.constant 0 : index
      %c0_352 = arith.constant 0 : index
      %c0_353 = arith.constant 0 : index
      %761 = vector.load %arg2[%c0_350, %c0_351, %c0_352, %c0_353] : memref<1x4x16x16xf32, #tpu.memory_space<vmem>>, vector<1x1x16x16xf32>
      %762 = vector.shape_cast %761 : vector<1x1x16x16xf32> to vector<16x16xf32>
      %c3_354 = arith.constant 3 : index
      %c0_355 = arith.constant 0 : index
      %763 = memref.load %arg3[%c3_354, %c0_355] : memref<4x4xf32, #tpu.memory_space<smem>>
      %764 = vector.broadcast %763 : f32 to vector<16x16xf32>
      %765 = arith.mulf %762, %764 : vector<16x16xf32>
      %766 = arith.addf %760, %765 : vector<16x16xf32>
      %c0_356 = arith.constant 0 : index
      %c1_357 = arith.constant 1 : index
      %c0_358 = arith.constant 0 : index
      %c0_359 = arith.constant 0 : index
      %767 = vector.load %arg2[%c0_356, %c1_357, %c0_358, %c0_359] : memref<1x4x16x16xf32, #tpu.memory_space<vmem>>, vector<1x1x16x16xf32>
      %768 = vector.shape_cast %767 : vector<1x1x16x16xf32> to vector<16x16xf32>
      %c3_360 = arith.constant 3 : index
      %c1_361 = arith.constant 1 : index
      %769 = memref.load %arg3[%c3_360, %c1_361] : memref<4x4xf32, #tpu.memory_space<smem>>
      %770 = vector.broadcast %769 : f32 to vector<16x16xf32>
      %771 = arith.mulf %768, %770 : vector<16x16xf32>
      %772 = arith.addf %766, %771 : vector<16x16xf32>
      %c0_362 = arith.constant 0 : index
      %c2_363 = arith.constant 2 : index
      %c0_364 = arith.constant 0 : index
      %c0_365 = arith.constant 0 : index
      %773 = vector.load %arg2[%c0_362, %c2_363, %c0_364, %c0_365] : memref<1x4x16x16xf32, #tpu.memory_space<vmem>>, vector<1x1x16x16xf32>
      %774 = vector.shape_cast %773 : vector<1x1x16x16xf32> to vector<16x16xf32>
      %c3_366 = arith.constant 3 : index
      %c2_367 = arith.constant 2 : index
      %775 = memref.load %arg3[%c3_366, %c2_367] : memref<4x4xf32, #tpu.memory_space<smem>>
      %776 = vector.broadcast %775 : f32 to vector<16x16xf32>
      %777 = arith.mulf %774, %776 : vector<16x16xf32>
      %778 = arith.addf %772, %777 : vector<16x16xf32>
      %c0_368 = arith.constant 0 : index
      %c3_369 = arith.constant 3 : index
      %c0_370 = arith.constant 0 : index
      %c0_371 = arith.constant 0 : index
      %779 = vector.load %arg2[%c0_368, %c3_369, %c0_370, %c0_371] : memref<1x4x16x16xf32, #tpu.memory_space<vmem>>, vector<1x1x16x16xf32>
      %780 = vector.shape_cast %779 : vector<1x1x16x16xf32> to vector<16x16xf32>
      %c3_372 = arith.constant 3 : index
      %c3_373 = arith.constant 3 : index
      %781 = memref.load %arg3[%c3_372, %c3_373] : memref<4x4xf32, #tpu.memory_space<smem>>
      %782 = vector.broadcast %781 : f32 to vector<16x16xf32>
      %783 = arith.mulf %780, %782 : vector<16x16xf32>
      %784 = arith.addf %778, %783 : vector<16x16xf32>
      %c3_374 = arith.constant 3 : index
      %785 = memref.load %arg4[%c3_374] : memref<4xf32, #tpu.memory_space<smem>>
      %786 = vector.broadcast %785 : f32 to vector<16x16xf32>
      %787 = arith.mulf %784, %786 : vector<16x16xf32>
      %c3_375 = arith.constant 3 : index
      %788 = memref.load %arg5[%c3_375] : memref<4xf32, #tpu.memory_space<smem>>
      %789 = vector.broadcast %788 : f32 to vector<16x16xf32>
      %790 = arith.addf %787, %789 : vector<16x16xf32>
      %cst_376 = arith.constant 3.000000e+00 : f32
      %791 = vector.broadcast %cst_376 : f32 to vector<16x16xf32>
      %792 = arith.addf %790, %791 : vector<16x16xf32>
      %cst_377 = arith.constant 0.000000e+00 : f32
      %cst_378 = arith.constant 6.000000e+00 : f32
      %793 = vector.broadcast %cst_377 : f32 to vector<16x16xf32>
      %794 = arith.maximumf %793, %792 : vector<16x16xf32>
      %795 = vector.broadcast %cst_378 : f32 to vector<16x16xf32>
      %796 = arith.minimumf %795, %794 : vector<16x16xf32>
      %797 = arith.mulf %790, %796 : vector<16x16xf32>
      %cst_379 = arith.constant 0.166666672 : f32
      %798 = vector.broadcast %cst_379 : f32 to vector<16x16xf32>
      %799 = arith.mulf %797, %798 : vector<16x16xf32>
      %c3_380 = arith.constant 3 : index
      %c2_381 = arith.constant 2 : index
      %c2_382 = arith.constant 2 : index
      %800 = vector.load %arg10[%c3_380, %c2_381, %c2_382] : memref<4x20x20xf32, #tpu.memory_space<vmem>>, vector<1x16x16xf32>
      %801 = vector.shape_cast %800 : vector<1x16x16xf32> to vector<16x16xf32>
      %802 = vector.shape_cast %799 : vector<16x16xf32> to vector<1x16x16xf32>
      tpu.vector_store %arg10[%c3_380, %c2_381, %c2_382], %802 {strides = array<i32>} : memref<4x20x20xf32, #tpu.memory_space<vmem>>, vector<1x16x16xf32>,
    } else {
    }
    %c16_i32 = arith.constant 16 : i32
    %3 = arith.muli %arg1, %c16_i32 : i32
    %4 = tpu.assume_multiple %3, 16 : i32
    %c0 = arith.constant 0 : index
    %5 = arith.index_cast %4 : i32 to index
    %c0_1 = arith.constant 0 : index
    %6 = vector.load %arg10[%c0, %5, %c0_1] : memref<4x20x20xf32, #tpu.memory_space<vmem>>, vector<1x20x20xf32>
    %7 = vector.shape_cast %6 : vector<1x20x20xf32> to vector<20x20xf32>
    %cst = arith.constant 0.000000e+00 : f32
    %8 = vector.broadcast %cst : f32 to vector<16x16xf32>
    %9 = vector.extract_strided_slice %7 {offsets = [0, 0], sizes = [20, 16], strides = [1, 1]} : vector<20x20xf32> to vector<20x16xf32>
    %10 = vector.extract_strided_slice %9 {offsets = [0, 0], sizes = [16, 16], strides = [1, 1]} : vector<20x16xf32> to vector<16x16xf32>
    %c0_2 = arith.constant 0 : index
    %c0_3 = arith.constant 0 : index
    %11 = memref.load %arg6[%c0_2, %c0_3] : memref<4x25xf32, #tpu.memory_space<smem>>
    %12 = vector.broadcast %11 : f32 to vector<16x16xf32>
    %13 = arith.mulf %10, %12 : vector<16x16xf32>
    %14 = arith.addf %8, %13 : vector<16x16xf32>
    %15 = vector.extract_strided_slice %9 {offsets = [1, 0], sizes = [16, 16], strides = [1, 1]} : vector<20x16xf32> to vector<16x16xf32>
    %c0_4 = arith.constant 0 : index
    %c5 = arith.constant 5 : index
    %16 = memref.load %arg6[%c0_4, %c5] : memref<4x25xf32, #tpu.memory_space<smem>>
    %17 = vector.broadcast %16 : f32 to vector<16x16xf32>
    %18 = arith.mulf %15, %17 : vector<16x16xf32>
    %19 = arith.addf %14, %18 : vector<16x16xf32>
    %20 = vector.extract_strided_slice %9 {offsets = [2, 0], sizes = [16, 16], strides = [1, 1]} : vector<20x16xf32> to vector<16x16xf32>
    %c0_5 = arith.constant 0 : index
    %c10 = arith.constant 10 : index
    %21 = memref.load %arg6[%c0_5, %c10] : memref<4x25xf32, #tpu.memory_space<smem>>
    %22 = vector.broadcast %21 : f32 to vector<16x16xf32>
    %23 = arith.mulf %20, %22 : vector<16x16xf32>
    %24 = arith.addf %19, %23 : vector<16x16xf32>
    %25 = vector.extract_strided_slice %9 {offsets = [3, 0], sizes = [16, 16], strides = [1, 1]} : vector<20x16xf32> to vector<16x16xf32>
    %c0_6 = arith.constant 0 : index
    %c15 = arith.constant 15 : index
    %26 = memref.load %arg6[%c0_6, %c15] : memref<4x25xf32, #tpu.memory_space<smem>>
    %27 = vector.broadcast %26 : f32 to vector<16x16xf32>
    %28 = arith.mulf %25, %27 : vector<16x16xf32>
    %29 = arith.addf %24, %28 : vector<16x16xf32>
    %30 = vector.extract_strided_slice %9 {offsets = [4, 0], sizes = [16, 16], strides = [1, 1]} : vector<20x16xf32> to vector<16x16xf32>
    %c0_7 = arith.constant 0 : index
    %c20 = arith.constant 20 : index
    %31 = memref.load %arg6[%c0_7, %c20] : memref<4x25xf32, #tpu.memory_space<smem>>
    %32 = vector.broadcast %31 : f32 to vector<16x16xf32>
    %33 = arith.mulf %30, %32 : vector<16x16xf32>
    %34 = arith.addf %29, %33 : vector<16x16xf32>
    %35 = vector.extract_strided_slice %7 {offsets = [0, 1], sizes = [20, 16], strides = [1, 1]} : vector<20x20xf32> to vector<20x16xf32>
    %36 = vector.extract_strided_slice %35 {offsets = [0, 0], sizes = [16, 16], strides = [1, 1]} : vector<20x16xf32> to vector<16x16xf32>
    %c0_8 = arith.constant 0 : index
    %c1 = arith.constant 1 : index
    %37 = memref.load %arg6[%c0_8, %c1] : memref<4x25xf32, #tpu.memory_space<smem>>
    %38 = vector.broadcast %37 : f32 to vector<16x16xf32>
    %39 = arith.mulf %36, %38 : vector<16x16xf32>
    %40 = arith.addf %34, %39 : vector<16x16xf32>
    %41 = vector.extract_strided_slice %35 {offsets = [1, 0], sizes = [16, 16], strides = [1, 1]} : vector<20x16xf32> to vector<16x16xf32>
    %c0_9 = arith.constant 0 : index
    %c6 = arith.constant 6 : index
    %42 = memref.load %arg6[%c0_9, %c6] : memref<4x25xf32, #tpu.memory_space<smem>>
    %43 = vector.broadcast %42 : f32 to vector<16x16xf32>
    %44 = arith.mulf %41, %43 : vector<16x16xf32>
    %45 = arith.addf %40, %44 : vector<16x16xf32>
    %46 = vector.extract_strided_slice %35 {offsets = [2, 0], sizes = [16, 16], strides = [1, 1]} : vector<20x16xf32> to vector<16x16xf32>
    %c0_10 = arith.constant 0 : index
    %c11 = arith.constant 11 : index
    %47 = memref.load %arg6[%c0_10, %c11] : memref<4x25xf32, #tpu.memory_space<smem>>
    %48 = vector.broadcast %47 : f32 to vector<16x16xf32>
    %49 = arith.mulf %46, %48 : vector<16x16xf32>
    %50 = arith.addf %45, %49 : vector<16x16xf32>
    %51 = vector.extract_strided_slice %35 {offsets = [3, 0], sizes = [16, 16], strides = [1, 1]} : vector<20x16xf32> to vector<16x16xf32>
    %c0_11 = arith.constant 0 : index
    %c16 = arith.constant 16 : index
    %52 = memref.load %arg6[%c0_11, %c16] : memref<4x25xf32, #tpu.memory_space<smem>>
    %53 = vector.broadcast %52 : f32 to vector<16x16xf32>
    %54 = arith.mulf %51, %53 : vector<16x16xf32>
    %55 = arith.addf %50, %54 : vector<16x16xf32>
    %56 = vector.extract_strided_slice %35 {offsets = [4, 0], sizes = [16, 16], strides = [1, 1]} : vector<20x16xf32> to vector<16x16xf32>
    %c0_12 = arith.constant 0 : index
    %c21 = arith.constant 21 : index
    %57 = memref.load %arg6[%c0_12, %c21] : memref<4x25xf32, #tpu.memory_space<smem>>
    %58 = vector.broadcast %57 : f32 to vector<16x16xf32>
    %59 = arith.mulf %56, %58 : vector<16x16xf32>
    %60 = arith.addf %55, %59 : vector<16x16xf32>
    %61 = vector.extract_strided_slice %7 {offsets = [0, 2], sizes = [20, 16], strides = [1, 1]} : vector<20x20xf32> to vector<20x16xf32>
    %62 = vector.extract_strided_slice %61 {offsets = [0, 0], sizes = [16, 16], strides = [1, 1]} : vector<20x16xf32> to vector<16x16xf32>
    %c0_13 = arith.constant 0 : index
    %c2 = arith.constant 2 : index
    %63 = memref.load %arg6[%c0_13, %c2] : memref<4x25xf32, #tpu.memory_space<smem>>
    %64 = vector.broadcast %63 : f32 to vector<16x16xf32>
    %65 = arith.mulf %62, %64 : vector<16x16xf32>
    %66 = arith.addf %60, %65 : vector<16x16xf32>
    %67 = vector.extract_strided_slice %61 {offsets = [1, 0], sizes = [16, 16], strides = [1, 1]} : vector<20x16xf32> to vector<16x16xf32>
    %c0_14 = arith.constant 0 : index
    %c7 = arith.constant 7 : index
    %68 = memref.load %arg6[%c0_14, %c7] : memref<4x25xf32, #tpu.memory_space<smem>>
    %69 = vector.broadcast %68 : f32 to vector<16x16xf32>
    %70 = arith.mulf %67, %69 : vector<16x16xf32>
    %71 = arith.addf %66, %70 : vector<16x16xf32>
    %72 = vector.extract_strided_slice %61 {offsets = [2, 0], sizes = [16, 16], strides = [1, 1]} : vector<20x16xf32> to vector<16x16xf32>
    %c0_15 = arith.constant 0 : index
    %c12 = arith.constant 12 : index
    %73 = memref.load %arg6[%c0_15, %c12] : memref<4x25xf32, #tpu.memory_space<smem>>
    %74 = vector.broadcast %73 : f32 to vector<16x16xf32>
    %75 = arith.mulf %72, %74 : vector<16x16xf32>
    %76 = arith.addf %71, %75 : vector<16x16xf32>
    %77 = vector.extract_strided_slice %61 {offsets = [3, 0], sizes = [16, 16], strides = [1, 1]} : vector<20x16xf32> to vector<16x16xf32>
    %c0_16 = arith.constant 0 : index
    %c17 = arith.constant 17 : index
    %78 = memref.load %arg6[%c0_16, %c17] : memref<4x25xf32, #tpu.memory_space<smem>>
    %79 = vector.broadcast %78 : f32 to vector<16x16xf32>
    %80 = arith.mulf %77, %79 : vector<16x16xf32>
    %81 = arith.addf %76, %80 : vector<16x16xf32>
    %82 = vector.extract_strided_slice %61 {offsets = [4, 0], sizes = [16, 16], strides = [1, 1]} : vector<20x16xf32> to vector<16x16xf32>
    %c0_17 = arith.constant 0 : index
    %c22 = arith.constant 22 : index
    %83 = memref.load %arg6[%c0_17, %c22] : memref<4x25xf32, #tpu.memory_space<smem>>
    %84 = vector.broadcast %83 : f32 to vector<16x16xf32>
    %85 = arith.mulf %82, %84 : vector<16x16xf32>
    %86 = arith.addf %81, %85 : vector<16x16xf32>
    %87 = vector.extract_strided_slice %7 {offsets = [0, 3], sizes = [20, 16], strides = [1, 1]} : vector<20x20xf32> to vector<20x16xf32>
    %88 = vector.extract_strided_slice %87 {offsets = [0, 0], sizes = [16, 16], strides = [1, 1]} : vector<20x16xf32> to vector<16x16xf32>
    %c0_18 = arith.constant 0 : index
    %c3 = arith.constant 3 : index
    %89 = memref.load %arg6[%c0_18, %c3] : memref<4x25xf32, #tpu.memory_space<smem>>
    %90 = vector.broadcast %89 : f32 to vector<16x16xf32>
    %91 = arith.mulf %88, %90 : vector<16x16xf32>
    %92 = arith.addf %86, %91 : vector<16x16xf32>
    %93 = vector.extract_strided_slice %87 {offsets = [1, 0], sizes = [16, 16], strides = [1, 1]} : vector<20x16xf32> to vector<16x16xf32>
    %c0_19 = arith.constant 0 : index
    %c8 = arith.constant 8 : index
    %94 = memref.load %arg6[%c0_19, %c8] : memref<4x25xf32, #tpu.memory_space<smem>>
    %95 = vector.broadcast %94 : f32 to vector<16x16xf32>
    %96 = arith.mulf %93, %95 : vector<16x16xf32>
    %97 = arith.addf %92, %96 : vector<16x16xf32>
    %98 = vector.extract_strided_slice %87 {offsets = [2, 0], sizes = [16, 16], strides = [1, 1]} : vector<20x16xf32> to vector<16x16xf32>
    %c0_20 = arith.constant 0 : index
    %c13 = arith.constant 13 : index
    %99 = memref.load %arg6[%c0_20, %c13] : memref<4x25xf32, #tpu.memory_space<smem>>
    %100 = vector.broadcast %99 : f32 to vector<16x16xf32>
    %101 = arith.mulf %98, %100 : vector<16x16xf32>
    %102 = arith.addf %97, %101 : vector<16x16xf32>
    %103 = vector.extract_strided_slice %87 {offsets = [3, 0], sizes = [16, 16], strides = [1, 1]} : vector<20x16xf32> to vector<16x16xf32>
    %c0_21 = arith.constant 0 : index
    %c18 = arith.constant 18 : index
    %104 = memref.load %arg6[%c0_21, %c18] : memref<4x25xf32, #tpu.memory_space<smem>>
    %105 = vector.broadcast %104 : f32 to vector<16x16xf32>
    %106 = arith.mulf %103, %105 : vector<16x16xf32>
    %107 = arith.addf %102, %106 : vector<16x16xf32>
    %108 = vector.extract_strided_slice %87 {offsets = [4, 0], sizes = [16, 16], strides = [1, 1]} : vector<20x16xf32> to vector<16x16xf32>
    %c0_22 = arith.constant 0 : index
    %c23 = arith.constant 23 : index
    %109 = memref.load %arg6[%c0_22, %c23] : memref<4x25xf32, #tpu.memory_space<smem>>
    %110 = vector.broadcast %109 : f32 to vector<16x16xf32>
    %111 = arith.mulf %108, %110 : vector<16x16xf32>
    %112 = arith.addf %107, %111 : vector<16x16xf32>
    %113 = vector.extract_strided_slice %7 {offsets = [0, 4], sizes = [20, 16], strides = [1, 1]} : vector<20x20xf32> to vector<20x16xf32>
    %114 = vector.extract_strided_slice %113 {offsets = [0, 0], sizes = [16, 16], strides = [1, 1]} : vector<20x16xf32> to vector<16x16xf32>
    %c0_23 = arith.constant 0 : index
    %c4 = arith.constant 4 : index
    %115 = memref.load %arg6[%c0_23, %c4] : memref<4x25xf32, #tpu.memory_space<smem>>
    %116 = vector.broadcast %115 : f32 to vector<16x16xf32>
    %117 = arith.mulf %114, %116 : vector<16x16xf32>
    %118 = arith.addf %112, %117 : vector<16x16xf32>
    %119 = vector.extract_strided_slice %113 {offsets = [1, 0], sizes = [16, 16], strides = [1, 1]} : vector<20x16xf32> to vector<16x16xf32>
    %c0_24 = arith.constant 0 : index
    %c9 = arith.constant 9 : index
    %120 = memref.load %arg6[%c0_24, %c9] : memref<4x25xf32, #tpu.memory_space<smem>>
    %121 = vector.broadcast %120 : f32 to vector<16x16xf32>
    %122 = arith.mulf %119, %121 : vector<16x16xf32>
    %123 = arith.addf %118, %122 : vector<16x16xf32>
    %124 = vector.extract_strided_slice %113 {offsets = [2, 0], sizes = [16, 16], strides = [1, 1]} : vector<20x16xf32> to vector<16x16xf32>
    %c0_25 = arith.constant 0 : index
    %c14 = arith.constant 14 : index
    %125 = memref.load %arg6[%c0_25, %c14] : memref<4x25xf32, #tpu.memory_space<smem>>
    %126 = vector.broadcast %125 : f32 to vector<16x16xf32>
    %127 = arith.mulf %124, %126 : vector<16x16xf32>
    %128 = arith.addf %123, %127 : vector<16x16xf32>
    %129 = vector.extract_strided_slice %113 {offsets = [3, 0], sizes = [16, 16], strides = [1, 1]} : vector<20x16xf32> to vector<16x16xf32>
    %c0_26 = arith.constant 0 : index
    %c19 = arith.constant 19 : index
    %130 = memref.load %arg6[%c0_26, %c19] : memref<4x25xf32, #tpu.memory_space<smem>>
    %131 = vector.broadcast %130 : f32 to vector<16x16xf32>
    %132 = arith.mulf %129, %131 : vector<16x16xf32>
    %133 = arith.addf %128, %132 : vector<16x16xf32>
    %134 = vector.extract_strided_slice %113 {offsets = [4, 0], sizes = [16, 16], strides = [1, 1]} : vector<20x16xf32> to vector<16x16xf32>
    %c0_27 = arith.constant 0 : index
    %c24 = arith.constant 24 : index
    %135 = memref.load %arg6[%c0_27, %c24] : memref<4x25xf32, #tpu.memory_space<smem>>
    %136 = vector.broadcast %135 : f32 to vector<16x16xf32>
    %137 = arith.mulf %134, %136 : vector<16x16xf32>
    %138 = arith.addf %133, %137 : vector<16x16xf32>
    %c0_28 = arith.constant 0 : index
    %139 = memref.load %arg7[%c0_28] : memref<4xf32, #tpu.memory_space<smem>>
    %140 = vector.broadcast %139 : f32 to vector<16x16xf32>
    %141 = arith.mulf %138, %140 : vector<16x16xf32>
    %c0_29 = arith.constant 0 : index
    %142 = memref.load %arg8[%c0_29] : memref<4xf32, #tpu.memory_space<smem>>
    %143 = vector.broadcast %142 : f32 to vector<16x16xf32>
    %144 = arith.addf %141, %143 : vector<16x16xf32>
    %cst_30 = arith.constant 3.000000e+00 : f32
    %145 = vector.broadcast %cst_30 : f32 to vector<16x16xf32>
    %146 = arith.addf %144, %145 : vector<16x16xf32>
    %cst_31 = arith.constant 0.000000e+00 : f32
    %cst_32 = arith.constant 6.000000e+00 : f32
    %147 = vector.broadcast %cst_31 : f32 to vector<16x16xf32>
    %148 = arith.maximumf %147, %146 : vector<16x16xf32>
    %149 = vector.broadcast %cst_32 : f32 to vector<16x16xf32>
    %150 = arith.minimumf %149, %148 : vector<16x16xf32>
    %151 = arith.mulf %144, %150 : vector<16x16xf32>
    %cst_33 = arith.constant 0.166666672 : f32
    %152 = vector.broadcast %cst_33 : f32 to vector<16x16xf32>
    %153 = arith.mulf %151, %152 : vector<16x16xf32>
    %154 = vector.extract_strided_slice %7 {offsets = [2, 2], sizes = [16, 16], strides = [1, 1]} : vector<20x20xf32> to vector<16x16xf32>
    %c0_34 = arith.constant 0 : index
    %c0_35 = arith.constant 0 : index
    %c0_36 = arith.constant 0 : index
    %c0_37 = arith.constant 0 : index
    %155 = vector.load %arg9[%c0_34, %c0_35, %c0_36, %c0_37] : memref<1x8x16x16xf32, #tpu.memory_space<vmem>>, vector<1x1x16x16xf32>
    %156 = vector.shape_cast %155 : vector<1x1x16x16xf32> to vector<16x16xf32>
    %157 = vector.shape_cast %154 : vector<16x16xf32> to vector<1x1x16x16xf32>
    tpu.vector_store %arg9[%c0_34, %c0_35, %c0_36, %c0_37], %157 {strides = array<i32>} : memref<1x8x16x16xf32, #tpu.memory_space<vmem>>, vector<1x1x16x16xf32>,
    %c0_38 = arith.constant 0 : index
    %c4_39 = arith.constant 4 : index
    %c0_40 = arith.constant 0 : index
    %c0_41 = arith.constant 0 : index
    %158 = vector.load %arg9[%c0_38, %c4_39, %c0_40, %c0_41] : memref<1x8x16x16xf32, #tpu.memory_space<vmem>>, vector<1x1x16x16xf32>
    %159 = vector.shape_cast %158 : vector<1x1x16x16xf32> to vector<16x16xf32>
    %160 = vector.shape_cast %153 : vector<16x16xf32> to vector<1x1x16x16xf32>
    tpu.vector_store %arg9[%c0_38, %c4_39, %c0_40, %c0_41], %160 {strides = array<i32>} : memref<1x8x16x16xf32, #tpu.memory_space<vmem>>, vector<1x1x16x16xf32>,
    %c1_42 = arith.constant 1 : index
    %161 = arith.index_cast %4 : i32 to index
    %c0_43 = arith.constant 0 : index
    %162 = vector.load %arg10[%c1_42, %161, %c0_43] : memref<4x20x20xf32, #tpu.memory_space<vmem>>, vector<1x20x20xf32>
    %163 = vector.shape_cast %162 : vector<1x20x20xf32> to vector<20x20xf32>
    %cst_44 = arith.constant 0.000000e+00 : f32
    %164 = vector.broadcast %cst_44 : f32 to vector<16x16xf32>
    %165 = vector.extract_strided_slice %163 {offsets = [0, 0], sizes = [20, 16], strides = [1, 1]} : vector<20x20xf32> to vector<20x16xf32>
    %166 = vector.extract_strided_slice %165 {offsets = [0, 0], sizes = [16, 16], strides = [1, 1]} : vector<20x16xf32> to vector<16x16xf32>
    %c1_45 = arith.constant 1 : index
    %c0_46 = arith.constant 0 : index
    %167 = memref.load %arg6[%c1_45, %c0_46] : memref<4x25xf32, #tpu.memory_space<smem>>
    %168 = vector.broadcast %167 : f32 to vector<16x16xf32>
    %169 = arith.mulf %166, %168 : vector<16x16xf32>
    %170 = arith.addf %164, %169 : vector<16x16xf32>
    %171 = vector.extract_strided_slice %165 {offsets = [1, 0], sizes = [16, 16], strides = [1, 1]} : vector<20x16xf32> to vector<16x16xf32>
    %c1_47 = arith.constant 1 : index
    %c5_48 = arith.constant 5 : index
    %172 = memref.load %arg6[%c1_47, %c5_48] : memref<4x25xf32, #tpu.memory_space<smem>>
    %173 = vector.broadcast %172 : f32 to vector<16x16xf32>
    %174 = arith.mulf %171, %173 : vector<16x16xf32>
    %175 = arith.addf %170, %174 : vector<16x16xf32>
    %176 = vector.extract_strided_slice %165 {offsets = [2, 0], sizes = [16, 16], strides = [1, 1]} : vector<20x16xf32> to vector<16x16xf32>
    %c1_49 = arith.constant 1 : index
    %c10_50 = arith.constant 10 : index
    %177 = memref.load %arg6[%c1_49, %c10_50] : memref<4x25xf32, #tpu.memory_space<smem>>
    %178 = vector.broadcast %177 : f32 to vector<16x16xf32>
    %179 = arith.mulf %176, %178 : vector<16x16xf32>
    %180 = arith.addf %175, %179 : vector<16x16xf32>
    %181 = vector.extract_strided_slice %165 {offsets = [3, 0], sizes = [16, 16], strides = [1, 1]} : vector<20x16xf32> to vector<16x16xf32>
    %c1_51 = arith.constant 1 : index
    %c15_52 = arith.constant 15 : index
    %182 = memref.load %arg6[%c1_51, %c15_52] : memref<4x25xf32, #tpu.memory_space<smem>>
    %183 = vector.broadcast %182 : f32 to vector<16x16xf32>
    %184 = arith.mulf %181, %183 : vector<16x16xf32>
    %185 = arith.addf %180, %184 : vector<16x16xf32>
    %186 = vector.extract_strided_slice %165 {offsets = [4, 0], sizes = [16, 16], strides = [1, 1]} : vector<20x16xf32> to vector<16x16xf32>
    %c1_53 = arith.constant 1 : index
    %c20_54 = arith.constant 20 : index
    %187 = memref.load %arg6[%c1_53, %c20_54] : memref<4x25xf32, #tpu.memory_space<smem>>
    %188 = vector.broadcast %187 : f32 to vector<16x16xf32>
    %189 = arith.mulf %186, %188 : vector<16x16xf32>
    %190 = arith.addf %185, %189 : vector<16x16xf32>
    %191 = vector.extract_strided_slice %163 {offsets = [0, 1], sizes = [20, 16], strides = [1, 1]} : vector<20x20xf32> to vector<20x16xf32>
    %192 = vector.extract_strided_slice %191 {offsets = [0, 0], sizes = [16, 16], strides = [1, 1]} : vector<20x16xf32> to vector<16x16xf32>
    %c1_55 = arith.constant 1 : index
    %c1_56 = arith.constant 1 : index
    %193 = memref.load %arg6[%c1_55, %c1_56] : memref<4x25xf32, #tpu.memory_space<smem>>
    %194 = vector.broadcast %193 : f32 to vector<16x16xf32>
    %195 = arith.mulf %192, %194 : vector<16x16xf32>
    %196 = arith.addf %190, %195 : vector<16x16xf32>
    %197 = vector.extract_strided_slice %191 {offsets = [1, 0], sizes = [16, 16], strides = [1, 1]} : vector<20x16xf32> to vector<16x16xf32>
    %c1_57 = arith.constant 1 : index
    %c6_58 = arith.constant 6 : index
    %198 = memref.load %arg6[%c1_57, %c6_58] : memref<4x25xf32, #tpu.memory_space<smem>>
    %199 = vector.broadcast %198 : f32 to vector<16x16xf32>
    %200 = arith.mulf %197, %199 : vector<16x16xf32>
    %201 = arith.addf %196, %200 : vector<16x16xf32>
    %202 = vector.extract_strided_slice %191 {offsets = [2, 0], sizes = [16, 16], strides = [1, 1]} : vector<20x16xf32> to vector<16x16xf32>
    %c1_59 = arith.constant 1 : index
    %c11_60 = arith.constant 11 : index
    %203 = memref.load %arg6[%c1_59, %c11_60] : memref<4x25xf32, #tpu.memory_space<smem>>
    %204 = vector.broadcast %203 : f32 to vector<16x16xf32>
    %205 = arith.mulf %202, %204 : vector<16x16xf32>
    %206 = arith.addf %201, %205 : vector<16x16xf32>
    %207 = vector.extract_strided_slice %191 {offsets = [3, 0], sizes = [16, 16], strides = [1, 1]} : vector<20x16xf32> to vector<16x16xf32>
    %c1_61 = arith.constant 1 : index
    %c16_62 = arith.constant 16 : index
    %208 = memref.load %arg6[%c1_61, %c16_62] : memref<4x25xf32, #tpu.memory_space<smem>>
    %209 = vector.broadcast %208 : f32 to vector<16x16xf32>
    %210 = arith.mulf %207, %209 : vector<16x16xf32>
    %211 = arith.addf %206, %210 : vector<16x16xf32>
    %212 = vector.extract_strided_slice %191 {offsets = [4, 0], sizes = [16, 16], strides = [1, 1]} : vector<20x16xf32> to vector<16x16xf32>
    %c1_63 = arith.constant 1 : index
    %c21_64 = arith.constant 21 : index
    %213 = memref.load %arg6[%c1_63, %c21_64] : memref<4x25xf32, #tpu.memory_space<smem>>
    %214 = vector.broadcast %213 : f32 to vector<16x16xf32>
    %215 = arith.mulf %212, %214 : vector<16x16xf32>
    %216 = arith.addf %211, %215 : vector<16x16xf32>
    %217 = vector.extract_strided_slice %163 {offsets = [0, 2], sizes = [20, 16], strides = [1, 1]} : vector<20x20xf32> to vector<20x16xf32>
    %218 = vector.extract_strided_slice %217 {offsets = [0, 0], sizes = [16, 16], strides = [1, 1]} : vector<20x16xf32> to vector<16x16xf32>
    %c1_65 = arith.constant 1 : index
    %c2_66 = arith.constant 2 : index
    %219 = memref.load %arg6[%c1_65, %c2_66] : memref<4x25xf32, #tpu.memory_space<smem>>
    %220 = vector.broadcast %219 : f32 to vector<16x16xf32>
    %221 = arith.mulf %218, %220 : vector<16x16xf32>
    %222 = arith.addf %216, %221 : vector<16x16xf32>
    %223 = vector.extract_strided_slice %217 {offsets = [1, 0], sizes = [16, 16], strides = [1, 1]} : vector<20x16xf32> to vector<16x16xf32>
    %c1_67 = arith.constant 1 : index
    %c7_68 = arith.constant 7 : index
    %224 = memref.load %arg6[%c1_67, %c7_68] : memref<4x25xf32, #tpu.memory_space<smem>>
    %225 = vector.broadcast %224 : f32 to vector<16x16xf32>
    %226 = arith.mulf %223, %225 : vector<16x16xf32>
    %227 = arith.addf %222, %226 : vector<16x16xf32>
    %228 = vector.extract_strided_slice %217 {offsets = [2, 0], sizes = [16, 16], strides = [1, 1]} : vector<20x16xf32> to vector<16x16xf32>
    %c1_69 = arith.constant 1 : index
    %c12_70 = arith.constant 12 : index
    %229 = memref.load %arg6[%c1_69, %c12_70] : memref<4x25xf32, #tpu.memory_space<smem>>
    %230 = vector.broadcast %229 : f32 to vector<16x16xf32>
    %231 = arith.mulf %228, %230 : vector<16x16xf32>
    %232 = arith.addf %227, %231 : vector<16x16xf32>
    %233 = vector.extract_strided_slice %217 {offsets = [3, 0], sizes = [16, 16], strides = [1, 1]} : vector<20x16xf32> to vector<16x16xf32>
    %c1_71 = arith.constant 1 : index
    %c17_72 = arith.constant 17 : index
    %234 = memref.load %arg6[%c1_71, %c17_72] : memref<4x25xf32, #tpu.memory_space<smem>>
    %235 = vector.broadcast %234 : f32 to vector<16x16xf32>
    %236 = arith.mulf %233, %235 : vector<16x16xf32>
    %237 = arith.addf %232, %236 : vector<16x16xf32>
    %238 = vector.extract_strided_slice %217 {offsets = [4, 0], sizes = [16, 16], strides = [1, 1]} : vector<20x16xf32> to vector<16x16xf32>
    %c1_73 = arith.constant 1 : index
    %c22_74 = arith.constant 22 : index
    %239 = memref.load %arg6[%c1_73, %c22_74] : memref<4x25xf32, #tpu.memory_space<smem>>
    %240 = vector.broadcast %239 : f32 to vector<16x16xf32>
    %241 = arith.mulf %238, %240 : vector<16x16xf32>
    %242 = arith.addf %237, %241 : vector<16x16xf32>
    %243 = vector.extract_strided_slice %163 {offsets = [0, 3], sizes = [20, 16], strides = [1, 1]} : vector<20x20xf32> to vector<20x16xf32>
    %244 = vector.extract_strided_slice %243 {offsets = [0, 0], sizes = [16, 16], strides = [1, 1]} : vector<20x16xf32> to vector<16x16xf32>
    %c1_75 = arith.constant 1 : index
    %c3_76 = arith.constant 3 : index
    %245 = memref.load %arg6[%c1_75, %c3_76] : memref<4x25xf32, #tpu.memory_space<smem>>
    %246 = vector.broadcast %245 : f32 to vector<16x16xf32>
    %247 = arith.mulf %244, %246 : vector<16x16xf32>
    %248 = arith.addf %242, %247 : vector<16x16xf32>
    %249 = vector.extract_strided_slice %243 {offsets = [1, 0], sizes = [16, 16], strides = [1, 1]} : vector<20x16xf32> to vector<16x16xf32>
    %c1_77 = arith.constant 1 : index
    %c8_78 = arith.constant 8 : index
    %250 = memref.load %arg6[%c1_77, %c8_78] : memref<4x25xf32, #tpu.memory_space<smem>>
    %251 = vector.broadcast %250 : f32 to vector<16x16xf32>
    %252 = arith.mulf %249, %251 : vector<16x16xf32>
    %253 = arith.addf %248, %252 : vector<16x16xf32>
    %254 = vector.extract_strided_slice %243 {offsets = [2, 0], sizes = [16, 16], strides = [1, 1]} : vector<20x16xf32> to vector<16x16xf32>
    %c1_79 = arith.constant 1 : index
    %c13_80 = arith.constant 13 : index
    %255 = memref.load %arg6[%c1_79, %c13_80] : memref<4x25xf32, #tpu.memory_space<smem>>
    %256 = vector.broadcast %255 : f32 to vector<16x16xf32>
    %257 = arith.mulf %254, %256 : vector<16x16xf32>
    %258 = arith.addf %253, %257 : vector<16x16xf32>
    %259 = vector.extract_strided_slice %243 {offsets = [3, 0], sizes = [16, 16], strides = [1, 1]} : vector<20x16xf32> to vector<16x16xf32>
    %c1_81 = arith.constant 1 : index
    %c18_82 = arith.constant 18 : index
    %260 = memref.load %arg6[%c1_81, %c18_82] : memref<4x25xf32, #tpu.memory_space<smem>>
    %261 = vector.broadcast %260 : f32 to vector<16x16xf32>
    %262 = arith.mulf %259, %261 : vector<16x16xf32>
    %263 = arith.addf %258, %262 : vector<16x16xf32>
    %264 = vector.extract_strided_slice %243 {offsets = [4, 0], sizes = [16, 16], strides = [1, 1]} : vector<20x16xf32> to vector<16x16xf32>
    %c1_83 = arith.constant 1 : index
    %c23_84 = arith.constant 23 : index
    %265 = memref.load %arg6[%c1_83, %c23_84] : memref<4x25xf32, #tpu.memory_space<smem>>
    %266 = vector.broadcast %265 : f32 to vector<16x16xf32>
    %267 = arith.mulf %264, %266 : vector<16x16xf32>
    %268 = arith.addf %263, %267 : vector<16x16xf32>
    %269 = vector.extract_strided_slice %163 {offsets = [0, 4], sizes = [20, 16], strides = [1, 1]} : vector<20x20xf32> to vector<20x16xf32>
    %270 = vector.extract_strided_slice %269 {offsets = [0, 0], sizes = [16, 16], strides = [1, 1]} : vector<20x16xf32> to vector<16x16xf32>
    %c1_85 = arith.constant 1 : index
    %c4_86 = arith.constant 4 : index
    %271 = memref.load %arg6[%c1_85, %c4_86] : memref<4x25xf32, #tpu.memory_space<smem>>
    %272 = vector.broadcast %271 : f32 to vector<16x16xf32>
    %273 = arith.mulf %270, %272 : vector<16x16xf32>
    %274 = arith.addf %268, %273 : vector<16x16xf32>
    %275 = vector.extract_strided_slice %269 {offsets = [1, 0], sizes = [16, 16], strides = [1, 1]} : vector<20x16xf32> to vector<16x16xf32>
    %c1_87 = arith.constant 1 : index
    %c9_88 = arith.constant 9 : index
    %276 = memref.load %arg6[%c1_87, %c9_88] : memref<4x25xf32, #tpu.memory_space<smem>>
    %277 = vector.broadcast %276 : f32 to vector<16x16xf32>
    %278 = arith.mulf %275, %277 : vector<16x16xf32>
    %279 = arith.addf %274, %278 : vector<16x16xf32>
    %280 = vector.extract_strided_slice %269 {offsets = [2, 0], sizes = [16, 16], strides = [1, 1]} : vector<20x16xf32> to vector<16x16xf32>
    %c1_89 = arith.constant 1 : index
    %c14_90 = arith.constant 14 : index
    %281 = memref.load %arg6[%c1_89, %c14_90] : memref<4x25xf32, #tpu.memory_space<smem>>
    %282 = vector.broadcast %281 : f32 to vector<16x16xf32>
    %283 = arith.mulf %280, %282 : vector<16x16xf32>
    %284 = arith.addf %279, %283 : vector<16x16xf32>
    %285 = vector.extract_strided_slice %269 {offsets = [3, 0], sizes = [16, 16], strides = [1, 1]} : vector<20x16xf32> to vector<16x16xf32>
    %c1_91 = arith.constant 1 : index
    %c19_92 = arith.constant 19 : index
    %286 = memref.load %arg6[%c1_91, %c19_92] : memref<4x25xf32, #tpu.memory_space<smem>>
    %287 = vector.broadcast %286 : f32 to vector<16x16xf32>
    %288 = arith.mulf %285, %287 : vector<16x16xf32>
    %289 = arith.addf %284, %288 : vector<16x16xf32>
    %290 = vector.extract_strided_slice %269 {offsets = [4, 0], sizes = [16, 16], strides = [1, 1]} : vector<20x16xf32> to vector<16x16xf32>
    %c1_93 = arith.constant 1 : index
    %c24_94 = arith.constant 24 : index
    %291 = memref.load %arg6[%c1_93, %c24_94] : memref<4x25xf32, #tpu.memory_space<smem>>
    %292 = vector.broadcast %291 : f32 to vector<16x16xf32>
    %293 = arith.mulf %290, %292 : vector<16x16xf32>
    %294 = arith.addf %289, %293 : vector<16x16xf32>
    %c1_95 = arith.constant 1 : index
    %295 = memref.load %arg7[%c1_95] : memref<4xf32, #tpu.memory_space<smem>>
    %296 = vector.broadcast %295 : f32 to vector<16x16xf32>
    %297 = arith.mulf %294, %296 : vector<16x16xf32>
    %c1_96 = arith.constant 1 : index
    %298 = memref.load %arg8[%c1_96] : memref<4xf32, #tpu.memory_space<smem>>
    %299 = vector.broadcast %298 : f32 to vector<16x16xf32>
    %300 = arith.addf %297, %299 : vector<16x16xf32>
    %cst_97 = arith.constant 3.000000e+00 : f32
    %301 = vector.broadcast %cst_97 : f32 to vector<16x16xf32>
    %302 = arith.addf %300, %301 : vector<16x16xf32>
    %cst_98 = arith.constant 0.000000e+00 : f32
    %cst_99 = arith.constant 6.000000e+00 : f32
    %303 = vector.broadcast %cst_98 : f32 to vector<16x16xf32>
    %304 = arith.maximumf %303, %302 : vector<16x16xf32>
    %305 = vector.broadcast %cst_99 : f32 to vector<16x16xf32>
    %306 = arith.minimumf %305, %304 : vector<16x16xf32>
    %307 = arith.mulf %300, %306 : vector<16x16xf32>
    %cst_100 = arith.constant 0.166666672 : f32
    %308 = vector.broadcast %cst_100 : f32 to vector<16x16xf32>
    %309 = arith.mulf %307, %308 : vector<16x16xf32>
    %310 = vector.extract_strided_slice %163 {offsets = [2, 2], sizes = [16, 16], strides = [1, 1]} : vector<20x20xf32> to vector<16x16xf32>
    %c0_101 = arith.constant 0 : index
    %c1_102 = arith.constant 1 : index
    %c0_103 = arith.constant 0 : index
    %c0_104 = arith.constant 0 : index
    %311 = vector.load %arg9[%c0_101, %c1_102, %c0_103, %c0_104] : memref<1x8x16x16xf32, #tpu.memory_space<vmem>>, vector<1x1x16x16xf32>
    %312 = vector.shape_cast %311 : vector<1x1x16x16xf32> to vector<16x16xf32>
    %313 = vector.shape_cast %310 : vector<16x16xf32> to vector<1x1x16x16xf32>
    tpu.vector_store %arg9[%c0_101, %c1_102, %c0_103, %c0_104], %313 {strides = array<i32>} : memref<1x8x16x16xf32, #tpu.memory_space<vmem>>, vector<1x1x16x16xf32>,
    %c0_105 = arith.constant 0 : index
    %c5_106 = arith.constant 5 : index
    %c0_107 = arith.constant 0 : index
    %c0_108 = arith.constant 0 : index
    %314 = vector.load %arg9[%c0_105, %c5_106, %c0_107, %c0_108] : memref<1x8x16x16xf32, #tpu.memory_space<vmem>>, vector<1x1x16x16xf32>
    %315 = vector.shape_cast %314 : vector<1x1x16x16xf32> to vector<16x16xf32>
    %316 = vector.shape_cast %309 : vector<16x16xf32> to vector<1x1x16x16xf32>
    tpu.vector_store %arg9[%c0_105, %c5_106, %c0_107, %c0_108], %316 {strides = array<i32>} : memref<1x8x16x16xf32, #tpu.memory_space<vmem>>, vector<1x1x16x16xf32>,
    %c2_109 = arith.constant 2 : index
    %317 = arith.index_cast %4 : i32 to index
    %c0_110 = arith.constant 0 : index
    %318 = vector.load %arg10[%c2_109, %317, %c0_110] : memref<4x20x20xf32, #tpu.memory_space<vmem>>, vector<1x20x20xf32>
    %319 = vector.shape_cast %318 : vector<1x20x20xf32> to vector<20x20xf32>
    %cst_111 = arith.constant 0.000000e+00 : f32
    %320 = vector.broadcast %cst_111 : f32 to vector<16x16xf32>
    %321 = vector.extract_strided_slice %319 {offsets = [0, 0], sizes = [20, 16], strides = [1, 1]} : vector<20x20xf32> to vector<20x16xf32>
    %322 = vector.extract_strided_slice %321 {offsets = [0, 0], sizes = [16, 16], strides = [1, 1]} : vector<20x16xf32> to vector<16x16xf32>
    %c2_112 = arith.constant 2 : index
    %c0_113 = arith.constant 0 : index
    %323 = memref.load %arg6[%c2_112, %c0_113] : memref<4x25xf32, #tpu.memory_space<smem>>
    %324 = vector.broadcast %323 : f32 to vector<16x16xf32>
    %325 = arith.mulf %322, %324 : vector<16x16xf32>
    %326 = arith.addf %320, %325 : vector<16x16xf32>
    %327 = vector.extract_strided_slice %321 {offsets = [1, 0], sizes = [16, 16], strides = [1, 1]} : vector<20x16xf32> to vector<16x16xf32>
    %c2_114 = arith.constant 2 : index
    %c5_115 = arith.constant 5 : index
    %328 = memref.load %arg6[%c2_114, %c5_115] : memref<4x25xf32, #tpu.memory_space<smem>>
    %329 = vector.broadcast %328 : f32 to vector<16x16xf32>
    %330 = arith.mulf %327, %329 : vector<16x16xf32>
    %331 = arith.addf %326, %330 : vector<16x16xf32>
    %332 = vector.extract_strided_slice %321 {offsets = [2, 0], sizes = [16, 16], strides = [1, 1]} : vector<20x16xf32> to vector<16x16xf32>
    %c2_116 = arith.constant 2 : index
    %c10_117 = arith.constant 10 : index
    %333 = memref.load %arg6[%c2_116, %c10_117] : memref<4x25xf32, #tpu.memory_space<smem>>
    %334 = vector.broadcast %333 : f32 to vector<16x16xf32>
    %335 = arith.mulf %332, %334 : vector<16x16xf32>
    %336 = arith.addf %331, %335 : vector<16x16xf32>
    %337 = vector.extract_strided_slice %321 {offsets = [3, 0], sizes = [16, 16], strides = [1, 1]} : vector<20x16xf32> to vector<16x16xf32>
    %c2_118 = arith.constant 2 : index
    %c15_119 = arith.constant 15 : index
    %338 = memref.load %arg6[%c2_118, %c15_119] : memref<4x25xf32, #tpu.memory_space<smem>>
    %339 = vector.broadcast %338 : f32 to vector<16x16xf32>
    %340 = arith.mulf %337, %339 : vector<16x16xf32>
    %341 = arith.addf %336, %340 : vector<16x16xf32>
    %342 = vector.extract_strided_slice %321 {offsets = [4, 0], sizes = [16, 16], strides = [1, 1]} : vector<20x16xf32> to vector<16x16xf32>
    %c2_120 = arith.constant 2 : index
    %c20_121 = arith.constant 20 : index
    %343 = memref.load %arg6[%c2_120, %c20_121] : memref<4x25xf32, #tpu.memory_space<smem>>
    %344 = vector.broadcast %343 : f32 to vector<16x16xf32>
    %345 = arith.mulf %342, %344 : vector<16x16xf32>
    %346 = arith.addf %341, %345 : vector<16x16xf32>
    %347 = vector.extract_strided_slice %319 {offsets = [0, 1], sizes = [20, 16], strides = [1, 1]} : vector<20x20xf32> to vector<20x16xf32>
    %348 = vector.extract_strided_slice %347 {offsets = [0, 0], sizes = [16, 16], strides = [1, 1]} : vector<20x16xf32> to vector<16x16xf32>
    %c2_122 = arith.constant 2 : index
    %c1_123 = arith.constant 1 : index
    %349 = memref.load %arg6[%c2_122, %c1_123] : memref<4x25xf32, #tpu.memory_space<smem>>
    %350 = vector.broadcast %349 : f32 to vector<16x16xf32>
    %351 = arith.mulf %348, %350 : vector<16x16xf32>
    %352 = arith.addf %346, %351 : vector<16x16xf32>
    %353 = vector.extract_strided_slice %347 {offsets = [1, 0], sizes = [16, 16], strides = [1, 1]} : vector<20x16xf32> to vector<16x16xf32>
    %c2_124 = arith.constant 2 : index
    %c6_125 = arith.constant 6 : index
    %354 = memref.load %arg6[%c2_124, %c6_125] : memref<4x25xf32, #tpu.memory_space<smem>>
    %355 = vector.broadcast %354 : f32 to vector<16x16xf32>
    %356 = arith.mulf %353, %355 : vector<16x16xf32>
    %357 = arith.addf %352, %356 : vector<16x16xf32>
    %358 = vector.extract_strided_slice %347 {offsets = [2, 0], sizes = [16, 16], strides = [1, 1]} : vector<20x16xf32> to vector<16x16xf32>
    %c2_126 = arith.constant 2 : index
    %c11_127 = arith.constant 11 : index
    %359 = memref.load %arg6[%c2_126, %c11_127] : memref<4x25xf32, #tpu.memory_space<smem>>
    %360 = vector.broadcast %359 : f32 to vector<16x16xf32>
    %361 = arith.mulf %358, %360 : vector<16x16xf32>
    %362 = arith.addf %357, %361 : vector<16x16xf32>
    %363 = vector.extract_strided_slice %347 {offsets = [3, 0], sizes = [16, 16], strides = [1, 1]} : vector<20x16xf32> to vector<16x16xf32>
    %c2_128 = arith.constant 2 : index
    %c16_129 = arith.constant 16 : index
    %364 = memref.load %arg6[%c2_128, %c16_129] : memref<4x25xf32, #tpu.memory_space<smem>>
    %365 = vector.broadcast %364 : f32 to vector<16x16xf32>
    %366 = arith.mulf %363, %365 : vector<16x16xf32>
    %367 = arith.addf %362, %366 : vector<16x16xf32>
    %368 = vector.extract_strided_slice %347 {offsets = [4, 0], sizes = [16, 16], strides = [1, 1]} : vector<20x16xf32> to vector<16x16xf32>
    %c2_130 = arith.constant 2 : index
    %c21_131 = arith.constant 21 : index
    %369 = memref.load %arg6[%c2_130, %c21_131] : memref<4x25xf32, #tpu.memory_space<smem>>
    %370 = vector.broadcast %369 : f32 to vector<16x16xf32>
    %371 = arith.mulf %368, %370 : vector<16x16xf32>
    %372 = arith.addf %367, %371 : vector<16x16xf32>
    %373 = vector.extract_strided_slice %319 {offsets = [0, 2], sizes = [20, 16], strides = [1, 1]} : vector<20x20xf32> to vector<20x16xf32>
    %374 = vector.extract_strided_slice %373 {offsets = [0, 0], sizes = [16, 16], strides = [1, 1]} : vector<20x16xf32> to vector<16x16xf32>
    %c2_132 = arith.constant 2 : index
    %c2_133 = arith.constant 2 : index
    %375 = memref.load %arg6[%c2_132, %c2_133] : memref<4x25xf32, #tpu.memory_space<smem>>
    %376 = vector.broadcast %375 : f32 to vector<16x16xf32>
    %377 = arith.mulf %374, %376 : vector<16x16xf32>
    %378 = arith.addf %372, %377 : vector<16x16xf32>
    %379 = vector.extract_strided_slice %373 {offsets = [1, 0], sizes = [16, 16], strides = [1, 1]} : vector<20x16xf32> to vector<16x16xf32>
    %c2_134 = arith.constant 2 : index
    %c7_135 = arith.constant 7 : index
    %380 = memref.load %arg6[%c2_134, %c7_135] : memref<4x25xf32, #tpu.memory_space<smem>>
    %381 = vector.broadcast %380 : f32 to vector<16x16xf32>
    %382 = arith.mulf %379, %381 : vector<16x16xf32>
    %383 = arith.addf %378, %382 : vector<16x16xf32>
    %384 = vector.extract_strided_slice %373 {offsets = [2, 0], sizes = [16, 16], strides = [1, 1]} : vector<20x16xf32> to vector<16x16xf32>
    %c2_136 = arith.constant 2 : index
    %c12_137 = arith.constant 12 : index
    %385 = memref.load %arg6[%c2_136, %c12_137] : memref<4x25xf32, #tpu.memory_space<smem>>
    %386 = vector.broadcast %385 : f32 to vector<16x16xf32>
    %387 = arith.mulf %384, %386 : vector<16x16xf32>
    %388 = arith.addf %383, %387 : vector<16x16xf32>
    %389 = vector.extract_strided_slice %373 {offsets = [3, 0], sizes = [16, 16], strides = [1, 1]} : vector<20x16xf32> to vector<16x16xf32>
    %c2_138 = arith.constant 2 : index
    %c17_139 = arith.constant 17 : index
    %390 = memref.load %arg6[%c2_138, %c17_139] : memref<4x25xf32, #tpu.memory_space<smem>>
    %391 = vector.broadcast %390 : f32 to vector<16x16xf32>
    %392 = arith.mulf %389, %391 : vector<16x16xf32>
    %393 = arith.addf %388, %392 : vector<16x16xf32>
    %394 = vector.extract_strided_slice %373 {offsets = [4, 0], sizes = [16, 16], strides = [1, 1]} : vector<20x16xf32> to vector<16x16xf32>
    %c2_140 = arith.constant 2 : index
    %c22_141 = arith.constant 22 : index
    %395 = memref.load %arg6[%c2_140, %c22_141] : memref<4x25xf32, #tpu.memory_space<smem>>
    %396 = vector.broadcast %395 : f32 to vector<16x16xf32>
    %397 = arith.mulf %394, %396 : vector<16x16xf32>
    %398 = arith.addf %393, %397 : vector<16x16xf32>
    %399 = vector.extract_strided_slice %319 {offsets = [0, 3], sizes = [20, 16], strides = [1, 1]} : vector<20x20xf32> to vector<20x16xf32>
    %400 = vector.extract_strided_slice %399 {offsets = [0, 0], sizes = [16, 16], strides = [1, 1]} : vector<20x16xf32> to vector<16x16xf32>
    %c2_142 = arith.constant 2 : index
    %c3_143 = arith.constant 3 : index
    %401 = memref.load %arg6[%c2_142, %c3_143] : memref<4x25xf32, #tpu.memory_space<smem>>
    %402 = vector.broadcast %401 : f32 to vector<16x16xf32>
    %403 = arith.mulf %400, %402 : vector<16x16xf32>
    %404 = arith.addf %398, %403 : vector<16x16xf32>
    %405 = vector.extract_strided_slice %399 {offsets = [1, 0], sizes = [16, 16], strides = [1, 1]} : vector<20x16xf32> to vector<16x16xf32>
    %c2_144 = arith.constant 2 : index
    %c8_145 = arith.constant 8 : index
    %406 = memref.load %arg6[%c2_144, %c8_145] : memref<4x25xf32, #tpu.memory_space<smem>>
    %407 = vector.broadcast %406 : f32 to vector<16x16xf32>
    %408 = arith.mulf %405, %407 : vector<16x16xf32>
    %409 = arith.addf %404, %408 : vector<16x16xf32>
    %410 = vector.extract_strided_slice %399 {offsets = [2, 0], sizes = [16, 16], strides = [1, 1]} : vector<20x16xf32> to vector<16x16xf32>
    %c2_146 = arith.constant 2 : index
    %c13_147 = arith.constant 13 : index
    %411 = memref.load %arg6[%c2_146, %c13_147] : memref<4x25xf32, #tpu.memory_space<smem>>
    %412 = vector.broadcast %411 : f32 to vector<16x16xf32>
    %413 = arith.mulf %410, %412 : vector<16x16xf32>
    %414 = arith.addf %409, %413 : vector<16x16xf32>
    %415 = vector.extract_strided_slice %399 {offsets = [3, 0], sizes = [16, 16], strides = [1, 1]} : vector<20x16xf32> to vector<16x16xf32>
    %c2_148 = arith.constant 2 : index
    %c18_149 = arith.constant 18 : index
    %416 = memref.load %arg6[%c2_148, %c18_149] : memref<4x25xf32, #tpu.memory_space<smem>>
    %417 = vector.broadcast %416 : f32 to vector<16x16xf32>
    %418 = arith.mulf %415, %417 : vector<16x16xf32>
    %419 = arith.addf %414, %418 : vector<16x16xf32>
    %420 = vector.extract_strided_slice %399 {offsets = [4, 0], sizes = [16, 16], strides = [1, 1]} : vector<20x16xf32> to vector<16x16xf32>
    %c2_150 = arith.constant 2 : index
    %c23_151 = arith.constant 23 : index
    %421 = memref.load %arg6[%c2_150, %c23_151] : memref<4x25xf32, #tpu.memory_space<smem>>
    %422 = vector.broadcast %421 : f32 to vector<16x16xf32>
    %423 = arith.mulf %420, %422 : vector<16x16xf32>
    %424 = arith.addf %419, %423 : vector<16x16xf32>
    %425 = vector.extract_strided_slice %319 {offsets = [0, 4], sizes = [20, 16], strides = [1, 1]} : vector<20x20xf32> to vector<20x16xf32>
    %426 = vector.extract_strided_slice %425 {offsets = [0, 0], sizes = [16, 16], strides = [1, 1]} : vector<20x16xf32> to vector<16x16xf32>
    %c2_152 = arith.constant 2 : index
    %c4_153 = arith.constant 4 : index
    %427 = memref.load %arg6[%c2_152, %c4_153] : memref<4x25xf32, #tpu.memory_space<smem>>
    %428 = vector.broadcast %427 : f32 to vector<16x16xf32>
    %429 = arith.mulf %426, %428 : vector<16x16xf32>
    %430 = arith.addf %424, %429 : vector<16x16xf32>
    %431 = vector.extract_strided_slice %425 {offsets = [1, 0], sizes = [16, 16], strides = [1, 1]} : vector<20x16xf32> to vector<16x16xf32>
    %c2_154 = arith.constant 2 : index
    %c9_155 = arith.constant 9 : index
    %432 = memref.load %arg6[%c2_154, %c9_155] : memref<4x25xf32, #tpu.memory_space<smem>>
    %433 = vector.broadcast %432 : f32 to vector<16x16xf32>
    %434 = arith.mulf %431, %433 : vector<16x16xf32>
    %435 = arith.addf %430, %434 : vector<16x16xf32>
    %436 = vector.extract_strided_slice %425 {offsets = [2, 0], sizes = [16, 16], strides = [1, 1]} : vector<20x16xf32> to vector<16x16xf32>
    %c2_156 = arith.constant 2 : index
    %c14_157 = arith.constant 14 : index
    %437 = memref.load %arg6[%c2_156, %c14_157] : memref<4x25xf32, #tpu.memory_space<smem>>
    %438 = vector.broadcast %437 : f32 to vector<16x16xf32>
    %439 = arith.mulf %436, %438 : vector<16x16xf32>
    %440 = arith.addf %435, %439 : vector<16x16xf32>
    %441 = vector.extract_strided_slice %425 {offsets = [3, 0], sizes = [16, 16], strides = [1, 1]} : vector<20x16xf32> to vector<16x16xf32>
    %c2_158 = arith.constant 2 : index
    %c19_159 = arith.constant 19 : index
    %442 = memref.load %arg6[%c2_158, %c19_159] : memref<4x25xf32, #tpu.memory_space<smem>>
    %443 = vector.broadcast %442 : f32 to vector<16x16xf32>
    %444 = arith.mulf %441, %443 : vector<16x16xf32>
    %445 = arith.addf %440, %444 : vector<16x16xf32>
    %446 = vector.extract_strided_slice %425 {offsets = [4, 0], sizes = [16, 16], strides = [1, 1]} : vector<20x16xf32> to vector<16x16xf32>
    %c2_160 = arith.constant 2 : index
    %c24_161 = arith.constant 24 : index
    %447 = memref.load %arg6[%c2_160, %c24_161] : memref<4x25xf32, #tpu.memory_space<smem>>
    %448 = vector.broadcast %447 : f32 to vector<16x16xf32>
    %449 = arith.mulf %446, %448 : vector<16x16xf32>
    %450 = arith.addf %445, %449 : vector<16x16xf32>
    %c2_162 = arith.constant 2 : index
    %451 = memref.load %arg7[%c2_162] : memref<4xf32, #tpu.memory_space<smem>>
    %452 = vector.broadcast %451 : f32 to vector<16x16xf32>
    %453 = arith.mulf %450, %452 : vector<16x16xf32>
    %c2_163 = arith.constant 2 : index
    %454 = memref.load %arg8[%c2_163] : memref<4xf32, #tpu.memory_space<smem>>
    %455 = vector.broadcast %454 : f32 to vector<16x16xf32>
    %456 = arith.addf %453, %455 : vector<16x16xf32>
    %cst_164 = arith.constant 3.000000e+00 : f32
    %457 = vector.broadcast %cst_164 : f32 to vector<16x16xf32>
    %458 = arith.addf %456, %457 : vector<16x16xf32>
    %cst_165 = arith.constant 0.000000e+00 : f32
    %cst_166 = arith.constant 6.000000e+00 : f32
    %459 = vector.broadcast %cst_165 : f32 to vector<16x16xf32>
    %460 = arith.maximumf %459, %458 : vector<16x16xf32>
    %461 = vector.broadcast %cst_166 : f32 to vector<16x16xf32>
    %462 = arith.minimumf %461, %460 : vector<16x16xf32>
    %463 = arith.mulf %456, %462 : vector<16x16xf32>
    %cst_167 = arith.constant 0.166666672 : f32
    %464 = vector.broadcast %cst_167 : f32 to vector<16x16xf32>
    %465 = arith.mulf %463, %464 : vector<16x16xf32>
    %466 = vector.extract_strided_slice %319 {offsets = [2, 2], sizes = [16, 16], strides = [1, 1]} : vector<20x20xf32> to vector<16x16xf32>
    %c0_168 = arith.constant 0 : index
    %c2_169 = arith.constant 2 : index
    %c0_170 = arith.constant 0 : index
    %c0_171 = arith.constant 0 : index
    %467 = vector.load %arg9[%c0_168, %c2_169, %c0_170, %c0_171] : memref<1x8x16x16xf32, #tpu.memory_space<vmem>>, vector<1x1x16x16xf32>
    %468 = vector.shape_cast %467 : vector<1x1x16x16xf32> to vector<16x16xf32>
    %469 = vector.shape_cast %466 : vector<16x16xf32> to vector<1x1x16x16xf32>
    tpu.vector_store %arg9[%c0_168, %c2_169, %c0_170, %c0_171], %469 {strides = array<i32>} : memref<1x8x16x16xf32, #tpu.memory_space<vmem>>, vector<1x1x16x16xf32>,
    %c0_172 = arith.constant 0 : index
    %c6_173 = arith.constant 6 : index
    %c0_174 = arith.constant 0 : index
    %c0_175 = arith.constant 0 : index
    %470 = vector.load %arg9[%c0_172, %c6_173, %c0_174, %c0_175] : memref<1x8x16x16xf32, #tpu.memory_space<vmem>>, vector<1x1x16x16xf32>
    %471 = vector.shape_cast %470 : vector<1x1x16x16xf32> to vector<16x16xf32>
    %472 = vector.shape_cast %465 : vector<16x16xf32> to vector<1x1x16x16xf32>
    tpu.vector_store %arg9[%c0_172, %c6_173, %c0_174, %c0_175], %472 {strides = array<i32>} : memref<1x8x16x16xf32, #tpu.memory_space<vmem>>, vector<1x1x16x16xf32>,
    %c3_176 = arith.constant 3 : index
    %473 = arith.index_cast %4 : i32 to index
    %c0_177 = arith.constant 0 : index
    %474 = vector.load %arg10[%c3_176, %473, %c0_177] : memref<4x20x20xf32, #tpu.memory_space<vmem>>, vector<1x20x20xf32>
    %475 = vector.shape_cast %474 : vector<1x20x20xf32> to vector<20x20xf32>
    %cst_178 = arith.constant 0.000000e+00 : f32
    %476 = vector.broadcast %cst_178 : f32 to vector<16x16xf32>
    %477 = vector.extract_strided_slice %475 {offsets = [0, 0], sizes = [20, 16], strides = [1, 1]} : vector<20x20xf32> to vector<20x16xf32>
    %478 = vector.extract_strided_slice %477 {offsets = [0, 0], sizes = [16, 16], strides = [1, 1]} : vector<20x16xf32> to vector<16x16xf32>
    %c3_179 = arith.constant 3 : index
    %c0_180 = arith.constant 0 : index
    %479 = memref.load %arg6[%c3_179, %c0_180] : memref<4x25xf32, #tpu.memory_space<smem>>
    %480 = vector.broadcast %479 : f32 to vector<16x16xf32>
    %481 = arith.mulf %478, %480 : vector<16x16xf32>
    %482 = arith.addf %476, %481 : vector<16x16xf32>
    %483 = vector.extract_strided_slice %477 {offsets = [1, 0], sizes = [16, 16], strides = [1, 1]} : vector<20x16xf32> to vector<16x16xf32>
    %c3_181 = arith.constant 3 : index
    %c5_182 = arith.constant 5 : index
    %484 = memref.load %arg6[%c3_181, %c5_182] : memref<4x25xf32, #tpu.memory_space<smem>>
    %485 = vector.broadcast %484 : f32 to vector<16x16xf32>
    %486 = arith.mulf %483, %485 : vector<16x16xf32>
    %487 = arith.addf %482, %486 : vector<16x16xf32>
    %488 = vector.extract_strided_slice %477 {offsets = [2, 0], sizes = [16, 16], strides = [1, 1]} : vector<20x16xf32> to vector<16x16xf32>
    %c3_183 = arith.constant 3 : index
    %c10_184 = arith.constant 10 : index
    %489 = memref.load %arg6[%c3_183, %c10_184] : memref<4x25xf32, #tpu.memory_space<smem>>
    %490 = vector.broadcast %489 : f32 to vector<16x16xf32>
    %491 = arith.mulf %488, %490 : vector<16x16xf32>
    %492 = arith.addf %487, %491 : vector<16x16xf32>
    %493 = vector.extract_strided_slice %477 {offsets = [3, 0], sizes = [16, 16], strides = [1, 1]} : vector<20x16xf32> to vector<16x16xf32>
    %c3_185 = arith.constant 3 : index
    %c15_186 = arith.constant 15 : index
    %494 = memref.load %arg6[%c3_185, %c15_186] : memref<4x25xf32, #tpu.memory_space<smem>>
    %495 = vector.broadcast %494 : f32 to vector<16x16xf32>
    %496 = arith.mulf %493, %495 : vector<16x16xf32>
    %497 = arith.addf %492, %496 : vector<16x16xf32>
    %498 = vector.extract_strided_slice %477 {offsets = [4, 0], sizes = [16, 16], strides = [1, 1]} : vector<20x16xf32> to vector<16x16xf32>
    %c3_187 = arith.constant 3 : index
    %c20_188 = arith.constant 20 : index
    %499 = memref.load %arg6[%c3_187, %c20_188] : memref<4x25xf32, #tpu.memory_space<smem>>
    %500 = vector.broadcast %499 : f32 to vector<16x16xf32>
    %501 = arith.mulf %498, %500 : vector<16x16xf32>
    %502 = arith.addf %497, %501 : vector<16x16xf32>
    %503 = vector.extract_strided_slice %475 {offsets = [0, 1], sizes = [20, 16], strides = [1, 1]} : vector<20x20xf32> to vector<20x16xf32>
    %504 = vector.extract_strided_slice %503 {offsets = [0, 0], sizes = [16, 16], strides = [1, 1]} : vector<20x16xf32> to vector<16x16xf32>
    %c3_189 = arith.constant 3 : index
    %c1_190 = arith.constant 1 : index
    %505 = memref.load %arg6[%c3_189, %c1_190] : memref<4x25xf32, #tpu.memory_space<smem>>
    %506 = vector.broadcast %505 : f32 to vector<16x16xf32>
    %507 = arith.mulf %504, %506 : vector<16x16xf32>
    %508 = arith.addf %502, %507 : vector<16x16xf32>
    %509 = vector.extract_strided_slice %503 {offsets = [1, 0], sizes = [16, 16], strides = [1, 1]} : vector<20x16xf32> to vector<16x16xf32>
    %c3_191 = arith.constant 3 : index
    %c6_192 = arith.constant 6 : index
    %510 = memref.load %arg6[%c3_191, %c6_192] : memref<4x25xf32, #tpu.memory_space<smem>>
    %511 = vector.broadcast %510 : f32 to vector<16x16xf32>
    %512 = arith.mulf %509, %511 : vector<16x16xf32>
    %513 = arith.addf %508, %512 : vector<16x16xf32>
    %514 = vector.extract_strided_slice %503 {offsets = [2, 0], sizes = [16, 16], strides = [1, 1]} : vector<20x16xf32> to vector<16x16xf32>
    %c3_193 = arith.constant 3 : index
    %c11_194 = arith.constant 11 : index
    %515 = memref.load %arg6[%c3_193, %c11_194] : memref<4x25xf32, #tpu.memory_space<smem>>
    %516 = vector.broadcast %515 : f32 to vector<16x16xf32>
    %517 = arith.mulf %514, %516 : vector<16x16xf32>
    %518 = arith.addf %513, %517 : vector<16x16xf32>
    %519 = vector.extract_strided_slice %503 {offsets = [3, 0], sizes = [16, 16], strides = [1, 1]} : vector<20x16xf32> to vector<16x16xf32>
    %c3_195 = arith.constant 3 : index
    %c16_196 = arith.constant 16 : index
    %520 = memref.load %arg6[%c3_195, %c16_196] : memref<4x25xf32, #tpu.memory_space<smem>>
    %521 = vector.broadcast %520 : f32 to vector<16x16xf32>
    %522 = arith.mulf %519, %521 : vector<16x16xf32>
    %523 = arith.addf %518, %522 : vector<16x16xf32>
    %524 = vector.extract_strided_slice %503 {offsets = [4, 0], sizes = [16, 16], strides = [1, 1]} : vector<20x16xf32> to vector<16x16xf32>
    %c3_197 = arith.constant 3 : index
    %c21_198 = arith.constant 21 : index
    %525 = memref.load %arg6[%c3_197, %c21_198] : memref<4x25xf32, #tpu.memory_space<smem>>
    %526 = vector.broadcast %525 : f32 to vector<16x16xf32>
    %527 = arith.mulf %524, %526 : vector<16x16xf32>
    %528 = arith.addf %523, %527 : vector<16x16xf32>
    %529 = vector.extract_strided_slice %475 {offsets = [0, 2], sizes = [20, 16], strides = [1, 1]} : vector<20x20xf32> to vector<20x16xf32>
    %530 = vector.extract_strided_slice %529 {offsets = [0, 0], sizes = [16, 16], strides = [1, 1]} : vector<20x16xf32> to vector<16x16xf32>
    %c3_199 = arith.constant 3 : index
    %c2_200 = arith.constant 2 : index
    %531 = memref.load %arg6[%c3_199, %c2_200] : memref<4x25xf32, #tpu.memory_space<smem>>
    %532 = vector.broadcast %531 : f32 to vector<16x16xf32>
    %533 = arith.mulf %530, %532 : vector<16x16xf32>
    %534 = arith.addf %528, %533 : vector<16x16xf32>
    %535 = vector.extract_strided_slice %529 {offsets = [1, 0], sizes = [16, 16], strides = [1, 1]} : vector<20x16xf32> to vector<16x16xf32>
    %c3_201 = arith.constant 3 : index
    %c7_202 = arith.constant 7 : index
    %536 = memref.load %arg6[%c3_201, %c7_202] : memref<4x25xf32, #tpu.memory_space<smem>>
    %537 = vector.broadcast %536 : f32 to vector<16x16xf32>
    %538 = arith.mulf %535, %537 : vector<16x16xf32>
    %539 = arith.addf %534, %538 : vector<16x16xf32>
    %540 = vector.extract_strided_slice %529 {offsets = [2, 0], sizes = [16, 16], strides = [1, 1]} : vector<20x16xf32> to vector<16x16xf32>
    %c3_203 = arith.constant 3 : index
    %c12_204 = arith.constant 12 : index
    %541 = memref.load %arg6[%c3_203, %c12_204] : memref<4x25xf32, #tpu.memory_space<smem>>
    %542 = vector.broadcast %541 : f32 to vector<16x16xf32>
    %543 = arith.mulf %540, %542 : vector<16x16xf32>
    %544 = arith.addf %539, %543 : vector<16x16xf32>
    %545 = vector.extract_strided_slice %529 {offsets = [3, 0], sizes = [16, 16], strides = [1, 1]} : vector<20x16xf32> to vector<16x16xf32>
    %c3_205 = arith.constant 3 : index
    %c17_206 = arith.constant 17 : index
    %546 = memref.load %arg6[%c3_205, %c17_206] : memref<4x25xf32, #tpu.memory_space<smem>>
    %547 = vector.broadcast %546 : f32 to vector<16x16xf32>
    %548 = arith.mulf %545, %547 : vector<16x16xf32>
    %549 = arith.addf %544, %548 : vector<16x16xf32>
    %550 = vector.extract_strided_slice %529 {offsets = [4, 0], sizes = [16, 16], strides = [1, 1]} : vector<20x16xf32> to vector<16x16xf32>
    %c3_207 = arith.constant 3 : index
    %c22_208 = arith.constant 22 : index
    %551 = memref.load %arg6[%c3_207, %c22_208] : memref<4x25xf32, #tpu.memory_space<smem>>
    %552 = vector.broadcast %551 : f32 to vector<16x16xf32>
    %553 = arith.mulf %550, %552 : vector<16x16xf32>
    %554 = arith.addf %549, %553 : vector<16x16xf32>
    %555 = vector.extract_strided_slice %475 {offsets = [0, 3], sizes = [20, 16], strides = [1, 1]} : vector<20x20xf32> to vector<20x16xf32>
    %556 = vector.extract_strided_slice %555 {offsets = [0, 0], sizes = [16, 16], strides = [1, 1]} : vector<20x16xf32> to vector<16x16xf32>
    %c3_209 = arith.constant 3 : index
    %c3_210 = arith.constant 3 : index
    %557 = memref.load %arg6[%c3_209, %c3_210] : memref<4x25xf32, #tpu.memory_space<smem>>
    %558 = vector.broadcast %557 : f32 to vector<16x16xf32>
    %559 = arith.mulf %556, %558 : vector<16x16xf32>
    %560 = arith.addf %554, %559 : vector<16x16xf32>
    %561 = vector.extract_strided_slice %555 {offsets = [1, 0], sizes = [16, 16], strides = [1, 1]} : vector<20x16xf32> to vector<16x16xf32>
    %c3_211 = arith.constant 3 : index
    %c8_212 = arith.constant 8 : index
    %562 = memref.load %arg6[%c3_211, %c8_212] : memref<4x25xf32, #tpu.memory_space<smem>>
    %563 = vector.broadcast %562 : f32 to vector<16x16xf32>
    %564 = arith.mulf %561, %563 : vector<16x16xf32>
    %565 = arith.addf %560, %564 : vector<16x16xf32>
    %566 = vector.extract_strided_slice %555 {offsets = [2, 0], sizes = [16, 16], strides = [1, 1]} : vector<20x16xf32> to vector<16x16xf32>
    %c3_213 = arith.constant 3 : index
    %c13_214 = arith.constant 13 : index
    %567 = memref.load %arg6[%c3_213, %c13_214] : memref<4x25xf32, #tpu.memory_space<smem>>
    %568 = vector.broadcast %567 : f32 to vector<16x16xf32>
    %569 = arith.mulf %566, %568 : vector<16x16xf32>
    %570 = arith.addf %565, %569 : vector<16x16xf32>
    %571 = vector.extract_strided_slice %555 {offsets = [3, 0], sizes = [16, 16], strides = [1, 1]} : vector<20x16xf32> to vector<16x16xf32>
    %c3_215 = arith.constant 3 : index
    %c18_216 = arith.constant 18 : index
    %572 = memref.load %arg6[%c3_215, %c18_216] : memref<4x25xf32, #tpu.memory_space<smem>>
    %573 = vector.broadcast %572 : f32 to vector<16x16xf32>
    %574 = arith.mulf %571, %573 : vector<16x16xf32>
    %575 = arith.addf %570, %574 : vector<16x16xf32>
    %576 = vector.extract_strided_slice %555 {offsets = [4, 0], sizes = [16, 16], strides = [1, 1]} : vector<20x16xf32> to vector<16x16xf32>
    %c3_217 = arith.constant 3 : index
    %c23_218 = arith.constant 23 : index
    %577 = memref.load %arg6[%c3_217, %c23_218] : memref<4x25xf32, #tpu.memory_space<smem>>
    %578 = vector.broadcast %577 : f32 to vector<16x16xf32>
    %579 = arith.mulf %576, %578 : vector<16x16xf32>
    %580 = arith.addf %575, %579 : vector<16x16xf32>
    %581 = vector.extract_strided_slice %475 {offsets = [0, 4], sizes = [20, 16], strides = [1, 1]} : vector<20x20xf32> to vector<20x16xf32>
    %582 = vector.extract_strided_slice %581 {offsets = [0, 0], sizes = [16, 16], strides = [1, 1]} : vector<20x16xf32> to vector<16x16xf32>
    %c3_219 = arith.constant 3 : index
    %c4_220 = arith.constant 4 : index
    %583 = memref.load %arg6[%c3_219, %c4_220] : memref<4x25xf32, #tpu.memory_space<smem>>
    %584 = vector.broadcast %583 : f32 to vector<16x16xf32>
    %585 = arith.mulf %582, %584 : vector<16x16xf32>
    %586 = arith.addf %580, %585 : vector<16x16xf32>
    %587 = vector.extract_strided_slice %581 {offsets = [1, 0], sizes = [16, 16], strides = [1, 1]} : vector<20x16xf32> to vector<16x16xf32>
    %c3_221 = arith.constant 3 : index
    %c9_222 = arith.constant 9 : index
    %588 = memref.load %arg6[%c3_221, %c9_222] : memref<4x25xf32, #tpu.memory_space<smem>>
    %589 = vector.broadcast %588 : f32 to vector<16x16xf32>
    %590 = arith.mulf %587, %589 : vector<16x16xf32>
    %591 = arith.addf %586, %590 : vector<16x16xf32>
    %592 = vector.extract_strided_slice %581 {offsets = [2, 0], sizes = [16, 16], strides = [1, 1]} : vector<20x16xf32> to vector<16x16xf32>
    %c3_223 = arith.constant 3 : index
    %c14_224 = arith.constant 14 : index
    %593 = memref.load %arg6[%c3_223, %c14_224] : memref<4x25xf32, #tpu.memory_space<smem>>
    %594 = vector.broadcast %593 : f32 to vector<16x16xf32>
    %595 = arith.mulf %592, %594 : vector<16x16xf32>
    %596 = arith.addf %591, %595 : vector<16x16xf32>
    %597 = vector.extract_strided_slice %581 {offsets = [3, 0], sizes = [16, 16], strides = [1, 1]} : vector<20x16xf32> to vector<16x16xf32>
    %c3_225 = arith.constant 3 : index
    %c19_226 = arith.constant 19 : index
    %598 = memref.load %arg6[%c3_225, %c19_226] : memref<4x25xf32, #tpu.memory_space<smem>>
    %599 = vector.broadcast %598 : f32 to vector<16x16xf32>
    %600 = arith.mulf %597, %599 : vector<16x16xf32>
    %601 = arith.addf %596, %600 : vector<16x16xf32>
    %602 = vector.extract_strided_slice %581 {offsets = [4, 0], sizes = [16, 16], strides = [1, 1]} : vector<20x16xf32> to vector<16x16xf32>
    %c3_227 = arith.constant 3 : index
    %c24_228 = arith.constant 24 : index
    %603 = memref.load %arg6[%c3_227, %c24_228] : memref<4x25xf32, #tpu.memory_space<smem>>
    %604 = vector.broadcast %603 : f32 to vector<16x16xf32>
    %605 = arith.mulf %602, %604 : vector<16x16xf32>
    %606 = arith.addf %601, %605 : vector<16x16xf32>
    %c3_229 = arith.constant 3 : index
    %607 = memref.load %arg7[%c3_229] : memref<4xf32, #tpu.memory_space<smem>>
    %608 = vector.broadcast %607 : f32 to vector<16x16xf32>
    %609 = arith.mulf %606, %608 : vector<16x16xf32>
    %c3_230 = arith.constant 3 : index
    %610 = memref.load %arg8[%c3_230] : memref<4xf32, #tpu.memory_space<smem>>
    %611 = vector.broadcast %610 : f32 to vector<16x16xf32>
    %612 = arith.addf %609, %611 : vector<16x16xf32>
    %cst_231 = arith.constant 3.000000e+00 : f32
    %613 = vector.broadcast %cst_231 : f32 to vector<16x16xf32>
    %614 = arith.addf %612, %613 : vector<16x16xf32>
    %cst_232 = arith.constant 0.000000e+00 : f32
    %cst_233 = arith.constant 6.000000e+00 : f32
    %615 = vector.broadcast %cst_232 : f32 to vector<16x16xf32>
    %616 = arith.maximumf %615, %614 : vector<16x16xf32>
    %617 = vector.broadcast %cst_233 : f32 to vector<16x16xf32>
    %618 = arith.minimumf %617, %616 : vector<16x16xf32>
    %619 = arith.mulf %612, %618 : vector<16x16xf32>
    %cst_234 = arith.constant 0.166666672 : f32
    %620 = vector.broadcast %cst_234 : f32 to vector<16x16xf32>
    %621 = arith.mulf %619, %620 : vector<16x16xf32>
    %622 = vector.extract_strided_slice %475 {offsets = [2, 2], sizes = [16, 16], strides = [1, 1]} : vector<20x20xf32> to vector<16x16xf32>
    %c0_235 = arith.constant 0 : index
    %c3_236 = arith.constant 3 : index
    %c0_237 = arith.constant 0 : index
    %c0_238 = arith.constant 0 : index
    %623 = vector.load %arg9[%c0_235, %c3_236, %c0_237, %c0_238] : memref<1x8x16x16xf32, #tpu.memory_space<vmem>>, vector<1x1x16x16xf32>
    %624 = vector.shape_cast %623 : vector<1x1x16x16xf32> to vector<16x16xf32>
    %625 = vector.shape_cast %622 : vector<16x16xf32> to vector<1x1x16x16xf32>
    tpu.vector_store %arg9[%c0_235, %c3_236, %c0_237, %c0_238], %625 {strides = array<i32>} : memref<1x8x16x16xf32, #tpu.memory_space<vmem>>, vector<1x1x16x16xf32>,
    %c0_239 = arith.constant 0 : index
    %c7_240 = arith.constant 7 : index
    %c0_241 = arith.constant 0 : index
    %c0_242 = arith.constant 0 : index
    %626 = vector.load %arg9[%c0_239, %c7_240, %c0_241, %c0_242] : memref<1x8x16x16xf32, #tpu.memory_space<vmem>>, vector<1x1x16x16xf32>
    %627 = vector.shape_cast %626 : vector<1x1x16x16xf32> to vector<16x16xf32>
    %628 = vector.shape_cast %621 : vector<16x16xf32> to vector<1x1x16x16xf32>
    tpu.vector_store %arg9[%c0_239, %c7_240, %c0_241, %c0_242], %628 {strides = array<i32>} : memref<1x8x16x16xf32, #tpu.memory_space<vmem>>, vector<1x1x16x16xf32>,
    return
  }
  func.func @transform_0(%arg0: i32, %arg1: i32) -> (i32, i32, i32, i32) {
    %c0_i32 = arith.constant 0 : i32
    %c0_i32_0 = arith.constant 0 : i32
    %c0_i32_1 = arith.constant 0 : i32
    %c0_i32_2 = arith.constant 0 : i32
    return %arg0, %c0_i32, %c0_i32_0, %c0_i32_1 : i32, i32, i32, i32
  }
  func.func @transform_1(%arg0: i32, %arg1: i32) -> (i32, i32) {
    %c0_i32 = arith.constant 0 : i32
    %c0_i32_0 = arith.constant 0 : i32
    %c0_i32_1 = arith.constant 0 : i32
    return %c0_i32, %c0_i32_0 : i32, i32
  }
  func.func @transform_2(%arg0: i32, %arg1: i32) -> i32 {
    %c0_i32 = arith.constant 0 : i32
    %c0_i32_0 = arith.constant 0 : i32
    return %c0_i32 : i32
  }
  func.func @transform_3(%arg0: i32, %arg1: i32) -> i32 {
    %c0_i32 = arith.constant 0 : i32
    %c0_i32_0 = arith.constant 0 : i32
    return %c0_i32 : i32
  }
  func.func @transform_4(%arg0: i32, %arg1: i32) -> (i32, i32) {
    %c0_i32 = arith.constant 0 : i32
    %c0_i32_0 = arith.constant 0 : i32
    %c0_i32_1 = arith.constant 0 : i32
    return %c0_i32, %c0_i32_0 : i32, i32
  }
  func.func @transform_5(%arg0: i32, %arg1: i32) -> i32 {
    %c0_i32 = arith.constant 0 : i32
    %c0_i32_0 = arith.constant 0 : i32
    return %c0_i32 : i32
  }
  func.func @transform_6(%arg0: i32, %arg1: i32) -> i32 {
    %c0_i32 = arith.constant 0 : i32
    %c0_i32_0 = arith.constant 0 : i32
    return %c0_i32 : i32
  }
  func.func @transform_7(%arg0: i32, %arg1: i32) -> (i32, i32, i32, i32) {
    %c0_i32 = arith.constant 0 : i32
    %c0_i32_0 = arith.constant 0 : i32
    %c0_i32_1 = arith.constant 0 : i32
    return %arg0, %c0_i32, %arg1, %c0_i32_0 : i32, i32, i32, i32
  }
}

</mosaic_0001>

<bundles_post_ra>
// kernel: ghost_conv_forward.1
= control target key start
LH: loop header
LB: loop body
LE: loop exit
PB: predicated region body
PF: predicated region fallthrough
CT: control target
= control target key end

     0   :  { %s5259_s0 = inlined_call_operand.hbm [shape: f32[2,4,16,16], index: 0, kind: input, shape index: {}]   ;;  %s5260_s1 = inlined_call_operand.vmem [shape: f32[4,4], index: 1, kind: input, shape index: {}]   ;;  %s5261_s2 = inlined_call_operand.vmem [shape: f32[4], index: 2, kind: input, shape index: {}]   ;;  %s5262_s3 = inlined_call_operand.vmem [shape: f32[4], index: 3, kind: input, shape index: {}]   ;;  %s5263_s4 = inlined_call_operand.vmem [shape: f32[4,25], index: 4, kind: input, shape index: {}]   ;;  %s5264_s5 = inlined_call_operand.vmem [shape: f32[4], index: 5, kind: input, shape index: {}]   ;;  %s5265_s6 = inlined_call_operand.vmem [shape: f32[4], index: 6, kind: input, shape index: {}]   ;;  %s5266_s7 = inlined_call_operand.hbm [shape: f32[2,8,16,16], index: 7, kind: output, shape index: {}]  }
   0x1   :  { %5276 = sst [smem:[#allocation24_spill]] %s5259_s0 }
   0x2   :  { %5277 = sst [smem:[#allocation25_spill]] %s5260_s1 }
   0x3   :  { %5278 = sst [smem:[#allocation26_spill]] %s5261_s2 }
   0x4   :  { %5279 = sst [smem:[#allocation27_spill]] %s5262_s3 }
   0x5   :  { %5280 = sst [smem:[#allocation28_spill]] %s5263_s4 }
   0x6   :  { %5281 = sst [smem:[#allocation29_spill]] %s5264_s5 }
   0x7   :  { %5282 = sst [smem:[#allocation30_spill]] %s5265_s6 }
   0x8   :  { %12 = vsyncpa [#allocation4], 0 }
   0x9   :  { %14 = vsyncpa [#allocation4 + $0x1], 0 }
   0xa   :  { %15 = vsyncpa [#allocation6], 0 }
   0xb   :  { %16 = vsyncpa [#allocation9], 0 }
   0xc   :  { %17 = vsyncpa [#allocation12], 0 }
   0xd   :  { %18 = vsyncpa [#allocation15], 0 }
   0xe   :  { %19 = vsyncpa [#allocation5], 0 }
   0xf   :  { %21 = vsyncpa [#allocation5 + $0x1], 0  ;;  %s3487_s24 = smov 0   ;;  %s3489_s25 = smov 0  }
  0x10   :  { %s3491_s26 = smov 0   ;;  %s3493_s27 = smov 0  }
  0x11   :  { %s3495_s28 = smov 0   ;;  %s3497_s29 = smov 0  }
  0x12 LB: > { %s5283_s2 = sld [smem:[#allocation26_spill]]  ;;  %s2863_s10 = sadd.s32 4294967295, %s3427_s29   ;;  %s3427_s29 = sphi %s3497_s29, %s27_s29   ;;  %s3423_s28 = sphi %s3495_s28, %s5313_s28   ;;  %s3419_s27 = sphi %s3493_s27, %s5312_s27   ;;  %s3415_s26 = sphi %s3491_s26, %s5311_s26   ;;  %s3411_s25 = sphi %s3489_s25, %s5310_s25   ;;  %s3407_s24 = sphi %s3487_s24, %s5309_s24  }
  0x13   : > { %p2865_p0 = scmp.ge.s32.totalorder %s3427_s29, 1  ;;  %p3524_p1 = scmp.eq.s32.totalorder %s2863_s10, 0 }
  0x14   : > { %p224_p2 = scmp.lt.s32.totalorder %s3427_s29, 3  ;;  %s5286_s4 = sld [smem:[#allocation28_spill]] }
  0x15   : > { %s5284_s11 = scalar_select %p3524_p1, 1, 0 }
  0x16   : > { %p3529_p3 = pnand %p2865_p0, %p224_p2  ;;  %s5287_s1 = sld [smem:[#allocation25_spill]] }
  0x17   : > { %s5289_s3 = sld [smem:[#allocation27_spill]] }
  0x18   : > { %s248_s9 = sshll.u32 %s5283_s2, 4  ;;  %p3096_p5 = pneg %p3529_p3  ;;  %s249_s9 = int_to_ptr.vmem [resolvable:$true] %s248_s9 }
  0x19   : > { %s5285_s12 = scalar_select %p3529_p3, 1, 0 }
  0x1a   : > { %s270_s15 = sshll.u32 %s5286_s4, 4  ;;  %p3544_p6 = pnand %p3096_p5, %p3524_p1  ;;  %s271_s15 = int_to_ptr.vmem [resolvable:$true] %s270_s15 }
  0x1b   : > { %s3209_s23 = scalar_lea.vmem %s249_s9, 16  ;;  %p3217_p11 = scmp.lt.s32.totalorder %s249_s9, %s249_s9 }
  0x1c   : > { %s237_s18 = sshll.u32 %s5287_s1, 4  ;;  %p3210_p7 = scmp.ne.s32.totalorder %s249_s9, %s3209_s23  ;;  %s3548_s18 = int_to_ptr.vmem [resolvable:$true] %s237_s18 }
  0x1d   : > { %s259_s22 = sshll.u32 %s5289_s3, 4  ;;  %p3555_p8 = pneg %p3544_p6  ;;  %s260_s22 = int_to_ptr.vmem [resolvable:$true] %s259_s22 }
  0x1e   : > { %p3218_p12 = scmp.lt.s32.totalorder %s3209_s23, %s3209_s23 }
  0x1f   : > { %p3212_p9 = pnand %p3555_p8, %p3210_p7 }
  0x20   : > { %p3219_p13 = por %p3218_p12, %p3217_p11 }
  0x21   : > { %p3213_p10 = pneg %p3212_p9 }
  0x23   : > { %p3220_p0 = pnand %p3219_p13, %p3213_p10 }
  0x25   : > { %3223 = shalt.err (!%p3220_p0)
}
  0x26   : > { %s3429_s8 = smov [#allocation8]   ;;  %s3224_s13 = scalar_lea.vmem %s271_s15, 64 }
  0x27   : > { %3102 = dma.vmem_to_smem (!%p3544_p6), %s249_s9, 16, %s3429_s8, [#allocation9]  }
  0x28   : > { %p3225_p2 = scmp.ne.s32.totalorder %s271_s15, %s3224_s13  ;;  %p3232_p3 = scmp.lt.s32.totalorder %s271_s15, %s271_s15 }
  0x29   : > { %p3233_p1 = scmp.lt.s32.totalorder %s3224_s13, %s3224_s13 }
  0x2a   : > { %p3227_p5 = pnand %p3225_p2, %p3555_p8 }
  0x2b   : > { %p3234_p7 = por %p3233_p1, %p3232_p3 }
  0x2c   : > { %p3228_p4 = pneg %p3227_p5 }
  0x2e   : > { %p3235_p9 = pnand %p3234_p7, %p3228_p4 }
  0x30   : > { %3238 = shalt.err (!%p3235_p9)
}
  0x31   : > { %s3430_s14 = smov [#allocation11]   ;;  %s3239_s16 = scalar_lea.vmem %s3548_s18, 64 }
  0x32   : > { %3108 = dma.vmem_to_smem (!%p3544_p6), %s271_s15, 64, %s3430_s14, [#allocation12]  }
  0x33   : > { %p3240_p10 = scmp.ne.s32.totalorder %s3548_s18, %s3239_s16  ;;  %p3247_p13 = scmp.lt.s32.totalorder %s3548_s18, %s3548_s18 }
  0x34   : > { %p3248_p0 = scmp.lt.s32.totalorder %s3239_s16, %s3239_s16 }
  0x35   : > { %p3242_p11 = pnand %p3240_p10, %p3555_p8 }
  0x36   : > { %p3249_p2 = por %p3248_p0, %p3247_p13 }
  0x37   : > { %p3243_p12 = pneg %p3242_p11 }
  0x39   : > { %p3250_p1 = pnand %p3249_p2, %p3243_p12 }
  0x3b   : > { %3253 = shalt.err (!%p3250_p1)
}
  0x3c   : > { %s3431_s9 = smov [#allocation7]   ;;  %s3254_s15 = scalar_lea.vmem %s260_s22, 16 }
  0x3d   : > { %3099 = dma.vmem_to_smem (!%p3544_p6), %s3548_s18, 64, %s3431_s9, [#allocation6]  }
  0x3e   : > { %p3255_p3 = scmp.ne.s32.totalorder %s260_s22, %s3254_s15  ;;  %p3262_p7 = scmp.lt.s32.totalorder %s260_s22, %s260_s22 }
  0x3f   : > { %p3263_p9 = scmp.lt.s32.totalorder %s3254_s15, %s3254_s15 }
  0x40   : > { %p3257_p4 = pnand %p3255_p3, %p3555_p8 }
  0x41   : > { %p3264_p10 = por %p3263_p9, %p3262_p7 }
  0x42   : > { %p3258_p5 = pneg %p3257_p4 }
  0x44   : > { %p3265_p11 = pnand %p3264_p10, %p3258_p5 }
  0x46   : > { %3268 = shalt.err (!%p3265_p11)
}
  0x47   : > { %s3432_s21 = smov [#allocation10]   ;;  %s5291_s5 = sld [smem:[#allocation29_spill]] }
  0x48   : > { %3105 = dma.vmem_to_smem (!%p3544_p6), %s260_s22, 16, %s3432_s21, [#allocation9]  }
  0x49   : > { %s5292_s6 = sld [smem:[#allocation30_spill]] }
  0x4d   : > { %s281_s8 = sshll.u32 %s5291_s5, 4  ;;  %s282_s8 = int_to_ptr.vmem [resolvable:$true] %s281_s8 }
  0x4e   : > { %s3269_s9 = scalar_lea.vmem %s282_s8, 16  ;;  %p3277_p2 = scmp.lt.s32.totalorder %s282_s8, %s282_s8 }
  0x4f   : > { %s292_s16 = sshll.u32 %s5292_s6, 4  ;;  %p3270_p12 = scmp.ne.s32.totalorder %s282_s8, %s3269_s9  ;;  %s293_s16 = int_to_ptr.vmem [resolvable:$true] %s292_s16 }
  0x50   : > { %p3278_p1 = scmp.lt.s32.totalorder %s3269_s9, %s3269_s9 }
  0x51   : > { %p3272_p13 = pnand %p3270_p12, %p3555_p8 }
  0x52   : > { %p3279_p3 = por %p3278_p1, %p3277_p2 }
  0x53   : > { %p3273_p0 = pneg %p3272_p13 }
  0x55   : > { %p3280_p4 = pnand %p3279_p3, %p3273_p0 }
  0x57   : > { %3283 = shalt.err (!%p3280_p4)
}
  0x58   : > { %s3433_s22 = smov [#allocation13]   ;;  %s3284_s17 = scalar_lea.vmem %s293_s16, 16 }
  0x59   : > { %3111 = dma.vmem_to_smem (!%p3544_p6), %s282_s8, 16, %s3433_s22, [#allocation12]  }
  0x5a   : > { %p3285_p5 = scmp.ne.s32.totalorder %s293_s16, %s3284_s17  ;;  %p3292_p10 = scmp.lt.s32.totalorder %s293_s16, %s293_s16 }
  0x5b   : > { %p3293_p11 = scmp.lt.s32.totalorder %s3284_s17, %s3284_s17 }
  0x5c   : > { %p3287_p7 = pnand %p3285_p5, %p3555_p8 }
  0x5d   : > { %p3294_p12 = por %p3293_p11, %p3292_p10 }
  0x5e   : > { %p3288_p9 = pneg %p3287_p7 }
  0x60   : > { %p3295_p13 = pnand %p3294_p12, %p3288_p9 }
  0x62   : > { %3298 = shalt.err (!%p3295_p13)
}
  0x63   : > { %s3434_s20 = smov [#allocation14]   ;;  %s2864_s30 = sadd.s32 4294967294, %s3427_s29  }
  0x64   : > { %3114 = dma.vmem_to_smem (!%p3544_p6), %s293_s16, 16, %s3434_s20, [#allocation15]  }
  0x65   : > { %s39_s15 = sadd.s32 1, %s3423_s28  ;;  %s46_s21 = sadd.s32 1, %s3415_s26 }
  0x66   : > { %p41_p8 = scmp.ge.s32.totalorder %s39_s15, 2  ;;  %p53_p0 = scmp.ne.s32.totalorder %s3415_s26, %s3411_s25 }
  0x67   : > { %p54_p2 = scmp.eq.s32.totalorder %s3427_s29, 0  ;;  %p59_p3 = scmp.ne.s32.totalorder %s3411_s25, %s3407_s24 }
  0x68   : > { %s5315_s15 = smov (%p41_p8, %s39_s15), 0  ;;  %p211_p6 = scmp.eq.s32.totalorder %s2863_s10, 1 }
  0x69   : > { %5293 = sst [smem:[#allocation23_spill]] %s5315_s15  ;;  %p3606_p1 = por %p54_p2, %p53_p0 }
  0x6a   : > { %s43_s18 = ssub.s32 %s3423_s28, %s5315_s15  ;;  %p5295_p5 = scmp.ne.s32.totalorder %s5284_s11, 0 }
  0x6b   : > { %p44_p4 = scmp.eq.s32.totalorder %s43_s18, 0  ;;  %p3622_p9 = por %p211_p6, %p53_p0 }
  0x6c   : > { %p3618_p7 = por %p5295_p5, %p59_p3  ;;  %p217_p10 = scmp.eq.s32.totalorder %s2864_s30, 1 }
  0x6d   : > { %s5297_s8 = scalar_select %p3622_p9, 1, 0 }
  0x6e   : > { %s3627_s13 = scalar_select %p44_p4, %s3415_s26, %s46_s21  }
  0x6f   : > { %p3629_p11 = por %p217_p10, %p59_p3  ;;  %p3129_p12 = scmp.lt.s32.totalorder %s3427_s29, 2 }
  0x70   : > { %s303_s16 = sand.u32 1, %s3415_s26   ;;  %s3066_s10 = sshll.u32 %s3423_s28, 10 }
  0x71   : > { %s5298_s14 = scalar_select %p3629_p11, 1, 0 }
  0x72   : > { %s2873_s9 = sshll.u32 %s303_s16, 6  ;;  %s5299_s0 = sld [smem:[#allocation24_spill]] }
  0x73   : > { %s307_s30 = scalar_lea.vmem [#allocation3], %s2873_s9  ;;  %p3643_p13 = pnand %p3129_p12, %p3606_p1 }
  0x74   : > { %s314_s21 = sshll.u32 %s307_s30, 4  ;;  %s3649_s1 = scalar_lea.sflag [#allocation4], %s303_s16  ;;  %s3647_s21 = int_to_ptr.vmem [resolvable:$true] %s314_s21 }
  0x75   : > { %p3301_p0 = pneg %p3643_p13 }
  0x78   : > { %s3639_s20 = scalar_lea.hbm %s5299_s0, %s3066_s10  ;;  %s3304_s9 = scalar_lea.hbm %s5299_s0, 2048 }
  0x79   : > { %s3299_s22 = scalar_lea.hbm %s3639_s20, 1024  ;;  %p3305_p1 = scmp.lt.u32.totalorder %s3639_s20, %s5299_s0 }
  0x7a   : > { %p3300_p8 = scmp.ne.s32.totalorder %s3639_s20, %s3299_s22  ;;  %p3306_p6 = scmp.lt.u32.totalorder %s3304_s9, %s3299_s22 }
  0x7b   : > { %p3308_p5 = scmp.lt.u32.totalorder %s3299_s22, %s3639_s20 }
  0x7c   : > { %p3302_p2 = pnand %p3301_p0, %p3300_p8  ;;  %p3307_p4 = por %p3306_p6, %p3305_p1 }
  0x7e   : > { %p3303_p3 = pneg %p3302_p2  ;;  %p3309_p10 = por %p3308_p5, %p3307_p4 }
  0x80   : > { %p3310_p12 = pnand %p3309_p10, %p3303_p3 }
  0x82   : > { %3313 = shalt.err (!%p3310_p12)
}
  0x83   : > { %s3314_s16 = scalar_lea.vmem %s3647_s21, 1024  ;;  %s3435_s10 = smov [#allocation3]  }
  0x84   : > { %p3315_p8 = scmp.ne.s32.totalorder %s3647_s21, %s3314_s16  ;;  %s3319_s19 = sshll.u32 %s3435_s10, 4  ;;  %s3320_s19 = int_to_ptr.vmem [resolvable:$false] %s3319_s19 }
  0x85   : > { %s3321_s17 = scalar_lea.vmem %s3320_s19, 2048  ;;  %p3322_p9 = scmp.lt.s32.totalorder %s3647_s21, %s3320_s19 }
  0x86   : > { %p3317_p2 = pnand %p3315_p8, %p3301_p0  ;;  %p3323_p1 = scmp.lt.s32.totalorder %s3321_s17, %s3314_s16 }
  0x88   : > { %p3318_p11 = pneg %p3317_p2  ;;  %p3324_p6 = por %p3323_p1, %p3322_p9 }
  0x8a   : > { %p3325_p4 = pnand %p3324_p6, %p3318_p11 }
  0x8c   : > { %3328 = shalt.err (!%p3325_p4)
}
  0x8d   : > { %s3436_s22 = smov 128   ;;  %s3437_s9 = smov 8  }
  0x8e   : > { %3118 = dma.hbm_to_vmem [thread:$0]  (!%p3643_p13), %s3639_s20, 1024, %s3647_s21, %s3649_s1, %s3436_s22, %s3436_s22, %s3437_s9  }
  0x8f   : > { %p5301_p0 = scmp.ne.s32.totalorder %s5285_s12, 0 }
  0x90   : > { %s3680_s30 = sand.u32 (!%p5301_p0), 1, %s3411_s25  }
  0x91   : > { %326 = sbr.rel (%p5301_p0) target bundleno = 795 (0x31b), region = 48  ;;  %s2877_s16 = sshll.u32 (!%p5301_p0), %s3680_s30, 6 }
  0x92   : > { %s329_s10 = scalar_lea.sflag (!%p5301_p0), [#allocation4], %s3680_s30  ;;  %s332_s19 = scalar_lea.vmem (!%p5301_p0), [#allocation3], %s2877_s16 }
  0x98   : > { %3382 = dma.done.wait (%p3618_p7), %s329_s10, 1024  }
  0x99   : > { %3384 = vsyncadd (%p3618_p7), %s329_s10, 4294966272  ;;  %p5302_p9 = scmp.ne.s32.totalorder %s5284_s11, 0 }
  0x9b   : > { %3386 = dma.done.wait (%p5302_p9), [#allocation6], 64  }
  0x9c   : > { %3388 = vsyncadd (%p5302_p9), [#allocation6], 4294967232 }
  0x9d   : > { %3390 = dma.done.wait (%p5302_p9), [#allocation9], 32  }
  0x9e   : > { %3392 = vsyncadd (%p5302_p9), [#allocation9], 4294967264 }
  0x9f   : > { %3394 = dma.done.wait (%p5302_p9), [#allocation12], 80  }
  0xa0   : > { %3396 = vsyncadd (%p5302_p9), [#allocation12], 4294967216 }
  0xa1   : > { %3398 = dma.done.wait (%p5302_p9), [#allocation15], 16  }
  0xa2   : > { %3400 = vsyncadd (%p5302_p9), [#allocation15], 4294967280 }
  0xa3   : > { %361 = sfence }
  0xa4   : > { %s409_s1 = sld [smem:[#allocation7]]  ;;  %s2887_s12 = sld [smem:[#allocation7 + $0x1]]  ;;  %v3704_v0 = vld [vmem:[%s332_s19] sm:$0xff]  ;;  %v3710_v1 = vld [vmem:[%s332_s19 + $0x8] sm:$0xff]  ;;  %v3712_v2 = vld [vmem:[%s332_s19 + $0x10] sm:$0xff]  ;;  %vm393_vm0 = vcmask 162816  }
  0xa5   : > { %s2890_s23 = sld [smem:[#allocation7 + $0x2]]  ;;  %s2893_s20 = sld [smem:[#allocation7 + $0x3]]  ;;  %v3718_v3 = vld [vmem:[%s332_s19 + $0x18] sm:$0xff]  ;;  %v3720_v4 = vld [vmem:[%s332_s19 + $0x20] sm:$0xff]  ;;  %v3726_v6 = vld [vmem:[%s332_s19 + $0x28] sm:$0xff]  ;;  %vm396_vm1 = vcmask 158720  }
  0xa6   : > { %s3706_s21 = sld [smem:[#allocation8]]  ;;  %s3716_s22 = sld [smem:[#allocation7 + $0x81]]  ;;  %v3728_v7 = vld [vmem:[%s332_s19 + $0x30] sm:$0xff]  ;;  %v3730_v8 = vld [vmem:[%s332_s19 + $0x38] sm:$0xff]  ;;  %vm468_vm2 = vcmask 146448   ;;  %vm709_vm3 = vcmask 1044480  }
  0xa7   : > { %s3708_s18 = sld [smem:[#allocation10]]  ;;  %s3722_s11 = sld [smem:[#allocation7 + $0x82]]  ;;  %vm727_vm4 = vcmask 1043456   ;;  %vm673_vm5 = vcmask 1046528   ;;  %vm691_vm6 = vcmask 1045504   ;;  %vm1159_vm7 = vcmask 130050  }
  0xa8   : > { %s3714_s17 = sld [smem:[#allocation7 + $0x80]]  ;;  %s3724_s9 = sld [smem:[#allocation7 + $0x83]]  ;;  %vm1161_vm8 = vcmask 130048   ;;  %vm1163_vm9 = vcmask 123904  }
  0xa9   : > { %s3734_s16 = sld [smem:[#allocation8 + $0x1]]  ;;  %s3740_s19 = sld [smem:[#allocation7 + $0x100]] }
  0xaa   : > { %v410_v5 = vstv %s409_s1  ;;  %v419_v11 = vstv %s2887_s12  ;;  %s3736_s10 = sld [smem:[#allocation10 + $0x1]]  ;;  %s3750_s12 = sld [smem:[#allocation7 + $0x102]] }
  0xab   : > { %v411_v9 = vmul.f32 %v410_v5, %v3704_v0  ;;  %v412_v10 = vmul.f32 %v410_v5, %v3710_v1  ;;  %v420_v12 = vmul.f32 %v3712_v2, %v419_v11  ;;  %v421_v13 = vmul.f32 %v3718_v3, %v419_v11  ;;  %s3742_s1 = sld [smem:[#allocation7 + $0x101]]  ;;  %s3877_s2 = sld [smem:[#allocation11 + $0x17]] }
  0xac   : > { %v428_v14 = vstv %s2890_s23  ;;  %v437_v15 = vstv %s2893_s20  ;;  %v443_v22 = vstv %s3706_s21  ;;  %s3752_s23 = sld [smem:[#allocation7 + $0x103]]  ;;  %v482_v25 = vstv %s3716_s22  ;;  %s3760_s20 = sld [smem:[#allocation8 + $0x2]] }
  0xad   : > { %v429_v16 = vmul.f32 %v3720_v4, %v428_v14  ;;  %v430_v17 = vmul.f32 %v3726_v6, %v428_v14  ;;  %v438_v18 = vmul.f32 %v3728_v7, %v437_v15  ;;  %v439_v19 = vmul.f32 %v3730_v8, %v437_v15  ;;  %s3766_s21 = sld [smem:[#allocation10 + $0x2]]  ;;  %s3875_s0 = sld [smem:[#allocation11 + $0x81]] }
  0xae   : > { %v422_v20 = vadd.f32 %v420_v12, %v411_v9  ;;  %v423_v21 = vadd.f32 %v421_v13, %v412_v10  ;;  %v447_v23 = vstv %s3708_s18  ;;  %v474_v24 = vstv %s3714_s17  ;;  %s3779_s18 = sld [smem:[#allocation7 + $0x180]]  ;;  %s3784_s17 = sld [smem:[#allocation7 + $0x181]] }
  0xaf   : > { %v490_v26 = vstv %s3722_s11  ;;  %v498_v27 = vstv %s3724_s9  ;;  %v475_v30 = vmul.f32 %v474_v24, %v3704_v0  ;;  %v476_v31 = vmul.f32 %v474_v24, %v3710_v1  ;;  %s3788_s22 = sld [smem:[#allocation7 + $0x182]]  ;;  %s3790_s11 = sld [smem:[#allocation7 + $0x183]] }
  0xb0   : > { %v431_v28 = vadd.f32 %v429_v16, %v422_v20  ;;  %v432_v29 = vadd.f32 %v430_v17, %v423_v21  ;;  %v483_v32 = vmul.f32 %v3712_v2, %v482_v25  ;;  %v484_v33 = vmul.f32 %v3718_v3, %v482_v25  ;;  %s3794_s9 = sld [smem:[#allocation8 + $0x3]]  ;;  %s3879_s3 = sld [smem:[#allocation11 + $0x82]] }
  0xb1   : > { %v491_v34 = vmul.f32 %v3720_v4, %v490_v26  ;;  %v492_v35 = vmul.f32 %v3726_v6, %v490_v26  ;;  %v499_v38 = vmul.f32 %v3728_v7, %v498_v27  ;;  %v500_v39 = vmul.f32 %v3730_v8, %v498_v27  ;;  %s3881_s4 = sld [smem:[#allocation11 + $0x83]]  ;;  %s3887_s5 = sld [smem:[#allocation11 + $0xe]] }
  0xb2   : > { %v440_v36 = vadd.f32 %v438_v18, %v431_v28  ;;  %v441_v37 = vadd.f32 %v439_v19, %v432_v29  ;;  %v485_v40 = vadd.f32 %v483_v32, %v475_v30  ;;  %v486_v41 = vadd.f32 %v484_v33, %v476_v31  ;;  %s3892_s6 = sld [smem:[#allocation11 + $0x18]]  ;;  %s5303_s15 = smov 126  }
  0xb3   : > { %v504_v42 = vstv %s3734_s16  ;;  %v508_v43 = vstv %s3736_s10  ;;  %v535_v46 = vstv %s3740_s19  ;;  %v543_v47 = vstv %s3742_s1  ;;  %s3807_s16 = sld [smem:[#allocation10 + $0x3]]  ;;  %s3439_s10 = smov 2  }
  0xb4   : > { %v444_v44 = vmul.f32 %v443_v22, %v440_v36  ;;  %v445_v45 = vmul.f32 %v443_v22, %v441_v37  ;;  %v493_v48 = vadd.f32 %v491_v34, %v485_v40  ;;  %v494_v49 = vadd.f32 %v492_v35, %v486_v41  ;;  %s2934_s19 = sld [smem:[#allocation11 + $0x1]]  ;;  %s3833_s1 = sld [smem:[#allocation11 + $0x2]] }
  0xb5   : > { %v537_v50 = vmul.f32 %v535_v46, %v3710_v1  ;;  %v545_v51 = vmul.f32 %v3718_v3, %v543_v47  ;;  %v551_v54 = vstv %s3750_s12  ;;  %v559_v55 = vstv %s3752_s23  ;;  %s5271_s12 = smov 126   ;;  %s3838_s23 = sld [smem:[#allocation11 + $0x3]] }
  0xb6   : > { %v448_v52 = vadd.f32 %v447_v23, %v444_v44  ;;  %v449_v53 = vadd.f32 %v447_v23, %v445_v45  ;;  %v501_v56 = vadd.f32 %v499_v38, %v493_v48  ;;  %v502_v57 = vadd.f32 %v500_v39, %v494_v49  ;;  %p5305_p11 = scmp.ne.s32.totalorder %s5297_s8, 0 }
  0xb7   : > { %v547_v58 = vadd.f32 %v545_v51, %v537_v50  ;;  %v553_v59 = vmul.f32 %v3726_v6, %v551_v54  ;;  %v561_v62 = vmul.f32 %v3730_v8, %v559_v55  ;;  %v565_v63 = vstv %s3760_s20  ;;  %s3840_s20 = sld [smem:[#allocation11 + $0x4]] }
  0xb8   : > { %v450_v60 = vadd.f32 3.0, %v448_v52  ;;  %v451_v61 = vadd.f32 3.0, %v449_v53  ;;  %v505_v5 = vmul.f32 %v504_v42, %v501_v56  ;;  %v506_v9 = vmul.f32 %v504_v42, %v502_v57 }
  0xb9   : > { %v555_v10 = vadd.f32 %v553_v59, %v547_v58  ;;  %v569_v11 = vstv %s3766_s21  ;;  %v536_v14 = vmul.f32 %v535_v46, %v3704_v0  ;;  %v544_v15 = vmul.f32 %v3712_v2, %v543_v47  ;;  %s3842_s21 = sld [smem:[#allocation11 + $0x6]] }
  0xba   : > { %v452_v12 = vmax.f32 %v450_v60, 0.0  ;;  %v453_v13 = vmax.f32 %v451_v61, 0.0  ;;  %v509_v16 = vadd.f32 %v508_v43, %v505_v5  ;;  %v510_v17 = vadd.f32 %v508_v43, %v506_v9 }
  0xbb   : > { %v563_v18 = vadd.f32 %v561_v62, %v555_v10  ;;  %v552_v19 = vmul.f32 %v3720_v4, %v551_v54  ;;  %v546_v22 = vadd.f32 %v544_v15, %v536_v14  ;;  %v560_v23 = vmul.f32 %v3728_v7, %v559_v55 }
  0xbc   : > { %v454_v20 = vmin.f32 %v452_v12, 6.0  ;;  %v455_v21 = vmin.f32 %v453_v13, 6.0  ;;  %v511_v24 = vadd.f32 3.0, %v509_v16  ;;  %v512_v25 = vadd.f32 3.0, %v510_v17 }
  0xbd   : > { %v567_v26 = vmul.f32 %v565_v63, %v563_v18  ;;  %v554_v29 = vadd.f32 %v552_v19, %v546_v22  ;;  %v3438_v33 = vmov 0.0   ;;  %v596_v34 = vstv %s3779_s18  ;;  %s3848_s18 = sld [smem:[#allocation11 + $0xb]] }
  0xbe   : > { %v456_v27 = vmul.f32 %v454_v20, %v448_v52  ;;  %v457_v28 = vmul.f32 %v455_v21, %v449_v53  ;;  %v513_v30 = vmax.f32 %v511_v24, 0.0  ;;  %v514_v31 = vmax.f32 %v512_v25, 0.0  ;;  %394 = vst.msk [vmem:[#allocation2] sm:$0xff] %vm393_vm0, %v3438_v33  ;;  %395 = vst.msk [vmem:[#allocation2 + $0x8] sm:$0xff] %vm393_vm0, %v3438_v33 }
  0xbf   : > { %v571_v32 = vadd.f32 %v569_v11, %v567_v26  ;;  %398 = vst.msk [vmem:[#allocation2 + $0x18] sm:$0xff] %vm393_vm0, %v3438_v33  ;;  %399 = vst.msk [vmem:[#allocation2 + $0x20] sm:$0xff] %vm393_vm0, %v3438_v33  ;;  %v562_v37 = vadd.f32 %v560_v23, %v554_v29  ;;  %v598_v38 = vmul.f32 %v596_v34, %v3710_v1  ;;  %v604_v42 = vstv %s3784_s17  ;;  %s3854_s17 = sld [smem:[#allocation11 + $0x10]] }
  0xc0   : > { %401 = vst.msk [vmem:[#allocation2 + $0x30] sm:$0xff] %vm393_vm0, %v3438_v33  ;;  %402 = vst.msk [vmem:[#allocation2 + $0x38] sm:$0xff] %vm393_vm0, %v3438_v33  ;;  %v458_v35 = vmul.f32 0.16666667, %v456_v27  ;;  %v459_v36 = vmul.f32 0.16666667, %v457_v28  ;;  %v606_v44 = vmul.f32 %v3718_v3, %v604_v42  ;;  %v612_v45 = vstv %s3788_s22 }
  0xc1   : > { %404 = vst.msk [vmem:[#allocation2 + $0x48] sm:$0xff] %vm393_vm0, %v3438_v33  ;;  %405 = vst.msk [vmem:[#allocation2 + $0x50] sm:$0xff] %vm393_vm0, %v3438_v33  ;;  %v515_v39 = vmin.f32 %v513_v30, 6.0  ;;  %v516_v40 = vmin.f32 %v514_v31, 6.0  ;;  %v573_v41 = vadd.f32 3.0, %v571_v32  ;;  %v566_v43 = vmul.f32 %v565_v63, %v562_v37  ;;  %s3856_s22 = sld [smem:[#allocation11 + $0x15]] }
  0xc2   : > { %462 = vrot.lane.b32.xlu0 %v458_v35, %s3439_s10  ;;  %v620_v46 = vstv %s3790_s11  ;;  %v614_v1 = vmul.f32 %v3726_v6, %v612_v45  ;;  %v608_v51 = vadd.f32 %v606_v44, %v598_v38  ;;  %v626_v55 = vstv %s3794_s9  ;;  %397 = vst.msk [vmem:[#allocation2 + $0x10] sm:$0xf] %vm396_vm1, %v3438_v33  ;;  %400 = vst.msk [vmem:[#allocation2 + $0x28] sm:$0xf] %vm396_vm1, %v3438_v33  ;;  %s3858_s11 = sld [smem:[#allocation11 + $0x7]]  ;;  %s3863_s9 = sld [smem:[#allocation11 + $0xc]] }
  0xc3   : > { %v517_v47 = vmul.f32 %v515_v39, %v509_v16  ;;  %v518_v48 = vmul.f32 %v516_v40, %v510_v17  ;;  %v575_v49 = vmax.f32 %v573_v41, 0.0  ;;  %v570_v50 = vadd.f32 %v569_v11, %v566_v43  ;;  %403 = vst.msk [vmem:[#allocation2 + $0x40] sm:$0xf] %vm396_vm1, %v3438_v33  ;;  %406 = vst.msk [vmem:[#allocation2 + $0x58] sm:$0xf] %vm396_vm1, %v3438_v33 }
  0xc4   : > { %v622_v52 = vmul.f32 %v3730_v8, %v620_v46  ;;  %v616_v57 = vadd.f32 %v614_v1, %v608_v51  ;;  %v597_v3 = vmul.f32 %v596_v34, %v3704_v0  ;;  %v605_v58 = vmul.f32 %v3712_v2, %v604_v42 }
  0xc5   : > { %v519_v53 = vmul.f32 0.16666667, %v517_v47  ;;  %v577_v54 = vmin.f32 %v575_v49, 6.0  ;;  %v572_v56 = vadd.f32 3.0, %v570_v50  ;;  %v520_v59 = vmul.f32 0.16666667, %v518_v48 }
  0xc6   : > { %464 = vrot.lane.b32.xlu0 %v459_v36, %s3439_s10  ;;  %v613_v60 = vmul.f32 %v3720_v4, %v612_v45  ;;  %v624_v61 = vadd.f32 %v622_v52, %v616_v57  ;;  %v607_v62 = vadd.f32 %v605_v58, %v597_v3  ;;  %v621_v63 = vmul.f32 %v3728_v7, %v620_v46 }
  0xc7   : > { %523 = vrot.lane.b32.xlu1 %v519_v53, %s3439_s10  ;;  %v579_v6 = vmul.f32 %v577_v54, %v571_v32  ;;  %v574_v8 = vmax.f32 %v572_v56, 0.0  ;;  %v630_v5 = vstv %s3807_s16  ;;  %v738_v32 = vstv %s2934_s19  ;;  %s3865_s16 = sld [smem:[#allocation11 + $0x11]]  ;;  %s3871_s19 = sld [smem:[#allocation11 + $0x12]] }
  0xc8   : > { %v628_v9 = vmul.f32 %v626_v55, %v624_v61  ;;  %v615_v2 = vadd.f32 %v613_v60, %v607_v62  ;;  %v836_v37 = vstv %s3833_s1  ;;  %s3885_s1 = sld [smem:[#allocation11 + $0x9]]  ;;  %v934_v40 = vstv %s3838_s23  ;;  %s3442_s23 = smov 125  }
  0xc9   : > { %v576_v0 = vmin.f32 %v574_v8, 6.0  ;;  %v581_v10 = vmul.f32 0.16666667, %v579_v6  ;;  %v1032_v41 = vstv %s3840_s20  ;;  %v752_v42 = vstv %s3842_s21  ;;  %s4128_s20 = sld [smem:[#allocation11 + $0x8]]  ;;  %s4147_s21 = sld [smem:[#allocation11 + $0xd]] }
  0xca   : > { %v632_v12 = vadd.f32 %v630_v5, %v628_v9  ;;  %v623_v4 = vadd.f32 %v621_v63, %v615_v2  ;;  %v773_v46 = vstv %s3848_s18  ;;  %v3902_v47 = vstv %s3854_s17  ;;  %s2965_s18 = sld [smem:[#allocation11 + $0x86]]  ;;  %s2966_s17 = sld [smem:[#allocation11 + $0x8b]] }
  0xcb   : > { %525 = vrot.lane.b32.xlu1 %v520_v59, %s3439_s10  ;;  %v578_v11 = vmul.f32 %v576_v0, %v570_v50  ;;  %v3906_v48 = vstv %s3856_s22  ;;  %v3909_v49 = vstv %s3858_s11  ;;  %v3912_v1 = vstv %s3863_s9  ;;  %s2967_s22 = sld [smem:[#allocation11 + $0x90]]  ;;  %s2968_s11 = sld [smem:[#allocation11 + $0x95]] }
  0xcc   : > { %v634_v14 = vadd.f32 3.0, %v632_v12  ;;  %v627_v15 = vmul.f32 %v626_v55, %v623_v4  ;;  %v1248_v54 = vstv %s3875_s0  ;;  %v1346_v55 = vstv %s3879_s3  ;;  %s3443_s0 = smov 124   ;;  %s4002_s3 = sld [smem:[#allocation11]] }
  0xcd   : > { %v580_v13 = vmul.f32 0.16666667, %v578_v11  ;;  %v3915_v50 = vstv %s3865_s16  ;;  %v990_v53 = vstv %s3871_s19  ;;  %v1444_v56 = vstv %s3881_s4  ;;  %s4024_s4 = sld [smem:[#allocation11 + $0x5]]  ;;  %s2970_s9 = sld [smem:[#allocation11 + $0x87]] }
  0xce   : > { %v636_v7 = vmax.f32 %v634_v14, 0.0  ;;  %v631_v16 = vadd.f32 %v630_v5, %v627_v15  ;;  %v1011_v57 = vstv %s3877_s2  ;;  %v1046_v6 = vstv %s3885_s1  ;;  %s5304_s2 = smov 127   ;;  %s2971_s16 = sld [smem:[#allocation11 + $0x8c]] }
  0xcf   : > { %586 = vrot.lane.b32.xlu1 %v581_v10, %s3439_s10  ;;  %584 = vrot.lane.b32.xlu0 %v580_v13, %s3439_s10  ;;  %v1067_v60 = vstv %s3887_s5  ;;  %v3947_v0 = vstv %s3892_s6  ;;  %s4026_s5 = sld [smem:[#allocation11 + $0xa]]  ;;  %s4040_s6 = sld [smem:[#allocation11 + $0xf]] }
  0xd0   : > { %v638_v17 = vmin.f32 %v636_v7, 6.0  ;;  %v633_v18 = vadd.f32 3.0, %v631_v16  ;;  %s2973_s19 = sld [smem:[#allocation11 + $0x96]]  ;;  %s2884_s1 = sshll.u32 %s3680_s30, 7 }
  0xd2   : > { %v640_v19 = vmul.f32 %v638_v17, %v632_v12  ;;  %v635_v20 = vmax.f32 %v633_v18, 0.0 }
  0xd4   : > { %v642_v21 = vmul.f32 0.16666667, %v640_v19  ;;  %v637_v22 = vmin.f32 %v635_v20, 6.0 }
  0xd6   : > { %647 = vrot.lane.b32.xlu1 %v642_v21, %s3439_s10  ;;  %v639_v23 = vmul.f32 %v637_v22, %v631_v16 }
  0xd8   : > { %v641_v24 = vmul.f32 0.16666667, %v639_v23 }
  0xda   : > { %645 = vrot.lane.b32.xlu0 %v641_v24, %s3439_s10  ;;  %s3869_s10 = sld [smem:[#allocation11 + $0x16]] }
  0xe0   : > { %v3923_v52 = vstv %s3869_s10  ;;  %s2972_s10 = sld [smem:[#allocation11 + $0x91]] }
 0x134   : > { %v463_v25 = vpop.permute.xlu0 %462 }
 0x135   : > { %469 = vst.msk [vmem:[#allocation2 + $0x2] sm:$0xff] %vm468_vm2, %v463_v25 }
 0x138   : > { %v465_v26 = vpop.permute.xlu0 %464 }
 0x139   : > { %470 = vst.msk [vmem:[#allocation2 + $0xa] sm:$0xff] %vm468_vm2, %v465_v26  ;;  %v524_v27 = vpop.permute.xlu1 %523 }
 0x13a   : > { %530 = vst.msk [vmem:[#allocation2 + $0x1a] sm:$0xff] %vm468_vm2, %v524_v27 }
 0x13c   : > { %v3831_v28 = vld [vmem:[#allocation2] sm:$0xff] }
 0x13d   : > { %1150 = vrot.lane.b32.xlu0 %v3831_v28, %s5271_s12  ;;  %v526_v29 = vpop.permute.xlu1 %525  ;;  %v739_v36 = vmul.f32 %v738_v32, %v3831_v28  ;;  %v837_v39 = vmul.f32 %v836_v37, %v3831_v28  ;;  %v935_v45 = vmul.f32 %v934_v40, %v3831_v28  ;;  %v3920_v51 = vmul.f32 %v752_v42, %v3831_v28 }
 0x13e   : > { %531 = vst.msk [vmem:[#allocation2 + $0x22] sm:$0xff] %vm468_vm2, %v526_v29  ;;  %v1033_v59 = vmul.f32 %v1032_v41, %v3831_v28  ;;  %v3955_v11 = vmul.f32 %v773_v46, %v3831_v28  ;;  %v991_v17 = vmul.f32 %v990_v53, %v3831_v28  ;;  %v1012_v29 = vmul.f32 %v1011_v57, %v3831_v28 }
 0x13f   : > { %v759_v10 = vrot.slane %v3920_v51, 1  ;;  %v660_v51 = vstv %s4002_s3  ;;  %s2975_s3 = sld [smem:[#allocation11 + $0x88]] }
 0x140   : > { %v3844_v30 = vld [vmem:[#allocation2 + $0x8] sm:$0xff]  ;;  %v3846_v31 = vld [vmem:[#allocation2 + $0x10] sm:$0xf]  ;;  %v997_v23 = vrot.slane %v991_v17, 3 }
 0x141   : > { %1152 = vrot.lane.b32.xlu1 %v3844_v30, %s5271_s12  ;;  %1154 = vrot.lane.b32.xlu0 %v3846_v31, %s5271_s12  ;;  %v587_v33 = vpop.permute.xlu1 %586  ;;  %v585_v34 = vpop.permute.xlu0 %584  ;;  %v740_v35 = vmul.f32 %v738_v32, %v3844_v30  ;;  %s5273_s12 = smov 127   ;;  %v838_v38 = vmul.f32 %v836_v37, %v3844_v30  ;;  %v936_v44 = vmul.f32 %v934_v40, %v3844_v30  ;;  %v3935_v8 = vld [vmem:[#allocation2 + $0x18] sm:$0xff]  ;;  %v1018_v37 = vrot.slane %v1012_v29, 4 }
 0x142   : > { %592 = vst.msk [vmem:[#allocation2 + $0x3a] sm:$0xff] %vm468_vm2, %v587_v33  ;;  %591 = vst.msk [vmem:[#allocation2 + $0x32] sm:$0xff] %vm468_vm2, %v585_v34  ;;  %v1034_v58 = vmul.f32 %v1032_v41, %v3844_v30  ;;  %v3940_v62 = vmul.f32 %v752_v42, %v3844_v30  ;;  %v3943_v63 = vmul.f32 %v752_v42, %v3846_v31 }
 0x143   : > { %v1249_v9 = vmul.f32 %v3935_v8, %v1248_v54  ;;  %v1347_v12 = vmul.f32 %v3935_v8, %v1346_v55  ;;  %v1445_v4 = vmul.f32 %v3935_v8, %v1444_v56  ;;  %v3960_v13 = vmul.f32 %v773_v46, %v3844_v30 }
 0x144   : > { %v992_v14 = vmul.f32 %v990_v53, %v3844_v30  ;;  %v3964_v15 = vmul.f32 %v773_v46, %v3846_v31  ;;  %v3968_v7 = vmul.f32 %v3902_v47, %v3844_v30  ;;  %v993_v16 = vmul.f32 %v990_v53, %v3846_v31 }
 0x145   : > { %745 = vrot.lane.b32.xlu1 %v740_v35, %s5273_s12  ;;  %743 = vrot.lane.b32.xlu0 %v739_v36, %s5273_s12  ;;  %s3890_s12 = sld [smem:[#allocation11 + $0x13]]  ;;  %v3937_v61 = vld [vmem:[#allocation2 + $0x20] sm:$0xff]  ;;  %v760_v18 = vrot.slane %v3940_v62, 1  ;;  %v762_v19 = vrot.slane %v3943_v63, 1  ;;  %v3976_v20 = vmul.f32 %v3902_v47, %v3846_v31  ;;  %v1013_v24 = vmul.f32 %v1011_v57, %v3844_v30 }
 0x146   : > { %v1250_v2 = vmul.f32 %v3937_v61, %v1248_v54  ;;  %v998_v21 = vrot.slane %v992_v14, 3  ;;  %v1000_v22 = vrot.slane %v993_v16, 3  ;;  %v1014_v25 = vmul.f32 %v1011_v57, %v3846_v31 }
 0x147   : > { %v1348_v26 = vmul.f32 %v3937_v61, %v1346_v55  ;;  %v1446_v27 = vmul.f32 %v3937_v61, %v1444_v56  ;;  %v1048_v32 = vmul.f32 %v1046_v6, %v3844_v30  ;;  %v1019_v35 = vrot.slane %v1013_v24, 4 }
 0x148   : > { %v648_v43 = vpop.permute.xlu1 %647  ;;  %v3987_v33 = vsel %vm709_vm3, %v998_v21, %v1000_v22  ;;  %v3990_v34 = vsel %vm709_vm3, %v997_v23, %v998_v21  ;;  %v1021_v36 = vrot.slane %v1014_v25, 4  ;;  %v1047_v40 = vmul.f32 %v1046_v6, %v3831_v28 }
 0x149   : > { %843 = vrot.lane.b32.xlu1 %v838_v38, %s5303_s15  ;;  %841 = vrot.lane.b32.xlu0 %v837_v39, %s5303_s15  ;;  %653 = vst.msk [vmem:[#allocation2 + $0x52] sm:$0xff] %vm468_vm2, %v648_v43  ;;  %v1049_v38 = vmul.f32 %v1046_v6, %v3846_v31  ;;  %v1054_v39 = vrot.slane %v1048_v32, 1  ;;  %v781_v41 = vrot.slane %v3960_v13, 2  ;;  %v1069_v43 = vmul.f32 %v1067_v60, %v3844_v30 }
 0x14a   : > { %v3998_v42 = vsel %vm727_vm4, %v1019_v35, %v1021_v36  ;;  %v1053_v53 = vrot.slane %v1047_v40, 1  ;;  %v1068_v54 = vmul.f32 %v1067_v60, %v3831_v28  ;;  %v1110_v13 = vmul.f32 %v3947_v0, %v3831_v28 }
 0x14b   : > { %v1088_v5 = vstv %s3890_s12  ;;  %v1056_v46 = vrot.slane %v1049_v38, 1  ;;  %v1075_v55 = vrot.slane %v1069_v43, 2  ;;  %v763_v14 = vsel %vm673_vm5, %v760_v18, %v762_v19  ;;  %s4056_s12 = sld [smem:[#allocation11 + $0x14]] }
 0x14c   : > { %v646_v3 = vpop.permute.xlu0 %645  ;;  %v1090_v57 = vmul.f32 %v1088_v5, %v3844_v30  ;;  %v1074_v6 = vrot.slane %v1068_v54, 2  ;;  %v1089_v62 = vmul.f32 %v1088_v5, %v3831_v28  ;;  %v783_v16 = vrot.slane %v3964_v15, 2 }
 0x14d   : > { %941 = vrot.lane.b32.xlu1 %v936_v44, %s3442_s23  ;;  %939 = vrot.lane.b32.xlu0 %v935_v45, %s3442_s23  ;;  %652 = vst.msk [vmem:[#allocation2 + $0x4a] sm:$0xff] %vm468_vm2, %v646_v3  ;;  %v1070_v44 = vmul.f32 %v1067_v60, %v3846_v31  ;;  %v4005_v45 = vsel %vm727_vm4, %v1018_v37, %v1019_v35  ;;  %v1116_v25 = vrot.slane %v1110_v13, 4  ;;  %v804_v37 = vrot.slane %v3976_v20, 3 }
 0x14e   : > { %v1091_v3 = vmul.f32 %v1088_v5, %v3846_v31  ;;  %v1096_v63 = vrot.slane %v1090_v57, 3  ;;  %v1095_v5 = vrot.slane %v1089_v62, 3  ;;  %v761_v22 = vsel %vm673_vm5, %v759_v10, %v760_v18 }
 0x14f   : > { %v1077_v56 = vrot.slane %v1070_v44, 2  ;;  %v795_v15 = vmul.f32 %v3902_v47, %v3831_v28  ;;  %v817_v19 = vmul.f32 %v3906_v48, %v3844_v30  ;;  %v818_v10 = vmul.f32 %v3906_v48, %v3846_v31 }
 0x150   : > { %v4046_v23 = vsel %vm709_vm3, %v1095_v5, %v1096_v63  ;;  %v852_v18 = vmul.f32 %v3909_v49, %v3844_v30  ;;  %v802_v47 = vrot.slane %v3968_v7, 3  ;;  %v853_v29 = vmul.f32 %v3909_v49, %v3846_v31 }
 0x151   : > { %1039 = vrot.lane.b32.xlu1 %v1034_v58, %s3443_s0  ;;  %1037 = vrot.lane.b32.xlu0 %v1033_v59, %s3443_s0  ;;  %v4011_v58 = vsel %vm673_vm5, %v1054_v39, %v1056_v46  ;;  %v4014_v59 = vsel %vm673_vm5, %v1053_v53, %v1054_v39  ;;  %v4020_v60 = vsel %vm691_vm6, %v1075_v55, %v1077_v56  ;;  %v666_v39 = vstv %s4024_s4  ;;  %s4252_s4 = sld [smem:[#allocation11 + $0x8d]] }
 0x152   : > { %v851_v32 = vmul.f32 %v3909_v49, %v3831_v28  ;;  %v784_v35 = vsel %vm691_vm6, %v781_v41, %v783_v16  ;;  %v873_v38 = vmul.f32 %v3912_v1, %v3844_v30  ;;  %v874_v7 = vmul.f32 %v3912_v1, %v3846_v31 }
 0x153   : > { %v684_v49 = vstv %s4026_s5  ;;  %v823_v40 = vrot.slane %v817_v19, 4  ;;  %v825_v43 = vrot.slane %v818_v10, 4  ;;  %v872_v20 = vmul.f32 %v3912_v1, %v3831_v28  ;;  %s4258_s5 = scalar_lea.vmem [#allocation16], %s2884_s1  ;;  %s4407_s1 = sld [smem:[#allocation11 + $0x107]] }
 0x154   : > { %v860_v53 = vrot.slane %v853_v29, 1  ;;  %v702_v54 = vstv %s4040_s6  ;;  %v857_v56 = vrot.slane %v851_v32, 1  ;;  %v879_v57 = vrot.slane %v873_v38, 2  ;;  %s2977_s6 = sld [smem:[#allocation11 + $0x92]] }
 0x155   : > { %1253 = vrot.lane.b32.xlu1 %v1249_v9, %s5304_s2  ;;  %1255 = vrot.lane.b32.xlu0 %v1250_v2, %s5304_s2  ;;  %v1098_v9 = vrot.slane %v1091_v3, 3  ;;  %v1111_v2 = vmul.f32 %v3947_v0, %v3844_v30  ;;  %v4093_v3 = vmul.f32 %v3915_v50, %v3844_v30  ;;  %v4099_v1 = vmul.f32 %v3915_v50, %v3846_v31 }
 0x156   : > { %v4103_v62 = vmul.f32 %v3915_v50, %v3831_v28  ;;  %v669_v16 = vmul.f32 %v666_v39, %v3846_v31  ;;  %v687_v50 = vmul.f32 %v684_v49, %v3846_v31  ;;  %v668_v29 = vmul.f32 %v666_v39, %v3844_v30 }
 0x157   : > { %v4038_v17 = vsel %vm709_vm3, %v1096_v63, %v1098_v9  ;;  %v1117_v21 = vrot.slane %v1111_v2, 4  ;;  %v720_v63 = vstv %s4056_s12  ;;  %v826_v9 = vsel %vm727_vm4, %v823_v40, %v825_v43  ;;  %s2978_s12 = sld [smem:[#allocation11 + $0x97]] }
 0x158   : > { %v677_v19 = vrot.slane %v669_v16, 1  ;;  %v723_v10 = vmul.f32 %v720_v63, %v3846_v31  ;;  %v675_v38 = vrot.slane %v668_v29, 1  ;;  %v969_v29 = vstv %s4147_s21  ;;  %s4316_s21 = sld [smem:[#allocation11 + $0x84]] }
 0x159   : > { %1351 = vrot.lane.b32.xlu1 %v1347_v12, %s5303_s15  ;;  %1353 = vrot.lane.b32.xlu0 %v1348_v26, %s5303_s15  ;;  %v4029_v12 = vsel %vm691_vm6, %v1074_v6, %v1075_v55  ;;  %v805_v55 = vsel %vm709_vm3, %v802_v47, %v804_v37  ;;  %v881_v6 = vrot.slane %v874_v7, 2  ;;  %v722_v37 = vmul.f32 %v720_v63, %v3844_v30 }
 0x15a   : > { %v731_v32 = vrot.slane %v723_v10, 4  ;;  %v667_v7 = vmul.f32 %v666_v39, %v3831_v28 }
 0x15d   : > { %1449 = vrot.lane.b32.xlu1 %v1445_v4, %s3442_s23  ;;  %1451 = vrot.lane.b32.xlu0 %v1446_v27, %s3442_s23  ;;  %v1112_v4 = vmul.f32 %v3947_v0, %v3846_v31  ;;  %v780_v0 = vrot.slane %v3955_v11, 2  ;;  %v4066_v11 = vsel %vm727_vm4, %v1116_v25, %v1117_v21  ;;  %v816_v27 = vmul.f32 %v3906_v48, %v3831_v28 }
 0x15e   : > { %v801_v48 = vrot.slane %v795_v15, 3  ;;  %v705_v25 = vmul.f32 %v702_v54, %v3846_v31  ;;  %v902_v15 = vrot.slane %v4099_v1, 3 }
 0x15f   : > { %v1119_v24 = vrot.slane %v1112_v4, 4  ;;  %v782_v36 = vsel %vm691_vm6, %v780_v0, %v781_v41  ;;  %v858_v41 = vrot.slane %v852_v18, 1  ;;  %v822_v46 = vrot.slane %v816_v27, 4 }
 0x160   : > { %v803_v44 = vsel %vm709_vm3, %v801_v48, %v802_v47  ;;  %v878_v4 = vrot.slane %v872_v20, 2  ;;  %v882_v0 = vsel %vm691_vm6, %v879_v57, %v881_v6  ;;  %v695_v18 = vrot.slane %v687_v50, 2 }
 0x161   : > { %766 = vrot.lane.b32.xlu1 %v763_v14, %s5304_s2  ;;  %764 = vrot.lane.b32.xlu0 %v761_v22, %s5304_s2  ;;  %v4063_v26 = vsel %vm727_vm4, %v1117_v21, %v1119_v24  ;;  %v824_v2 = vsel %vm727_vm4, %v822_v46, %v823_v40  ;;  %v859_v5 = vsel %vm673_vm5, %v857_v56, %v858_v41  ;;  %v900_v22 = vrot.slane %v4093_v3, 3 }
 0x162   : > { %v861_v13 = vsel %vm673_vm5, %v858_v41, %v860_v53  ;;  %v4112_v14 = vmul.f32 %v3923_v52, %v3844_v30  ;;  %v880_v21 = vsel %vm691_vm6, %v878_v4, %v879_v57  ;;  %v4120_v24 = vmul.f32 %v3923_v52, %v3846_v31 }
 0x163   : > { %v713_v47 = vrot.slane %v705_v25, 3  ;;  %v662_v27 = vmul.f32 %v660_v51, %v3844_v30  ;;  %v661_v48 = vmul.f32 %v660_v51, %v3831_v28  ;;  %v685_v40 = vmul.f32 %v684_v49, %v3831_v28 }
 0x164   : > { %v729_v20 = vrot.slane %v722_v37, 4  ;;  %v678_v46 = vsel %vm673_vm5, %v675_v38, %v677_v19  ;;  %v674_v53 = vrot.slane %v667_v7, 1  ;;  %v721_v56 = vmul.f32 %v720_v63, %v3831_v28 }
 0x165   : > { %787 = vrot.lane.b32.xlu1 %v784_v35, %s5304_s2  ;;  %785 = vrot.lane.b32.xlu0 %v782_v36, %s5304_s2  ;;  %v686_v35 = vmul.f32 %v684_v49, %v3844_v30  ;;  %v704_v36 = vmul.f32 %v702_v54, %v3844_v30  ;;  %v682_v51 = vadd.f32 %v678_v46, %v662_v27  ;;  %v948_v4 = vstv %s4128_s20  ;;  %s2980_s20 = sld [smem:[#allocation11 + $0x89]] }
 0x166   : > { %v732_v57 = vsel %vm727_vm4, %v729_v20, %v731_v32  ;;  %v676_v3 = vsel %vm673_vm5, %v674_v53, %v675_v38  ;;  %v728_v1 = vrot.slane %v721_v56, 4  ;;  %v914_v63 = vmul.f32 %v3923_v52, %v3831_v28 }
 0x167   : > { %v693_v43 = vrot.slane %v686_v35, 2  ;;  %v711_v41 = vrot.slane %v704_v36, 3  ;;  %v921_v50 = vrot.slane %v4112_v14, 4  ;;  %v923_v25 = vrot.slane %v4120_v24, 4 }
 0x168   : > { %v730_v16 = vsel %vm727_vm4, %v728_v1, %v729_v20  ;;  %v950_v10 = vmul.f32 %v948_v4, %v3844_v30  ;;  %v949_v24 = vmul.f32 %v948_v4, %v3831_v28  ;;  %v971_v36 = vmul.f32 %v969_v29, %v3844_v30 }
 0x169   : > { %808 = vrot.lane.b32.xlu1 %v805_v55, %s5304_s2  ;;  %806 = vrot.lane.b32.xlu0 %v803_v44, %s5304_s2  ;;  %v703_v44 = vmul.f32 %v702_v54, %v3831_v28  ;;  %v692_v55 = vrot.slane %v685_v40, 2  ;;  %v696_v39 = vsel %vm691_vm6, %v693_v43, %v695_v18  ;;  %v714_v49 = vsel %vm709_vm3, %v711_v41, %v713_v47 }
 0x16a   : > { %v920_v18 = vrot.slane %v914_v63, 4  ;;  %v924_v27 = vsel %vm727_vm4, %v921_v50, %v923_v25  ;;  %v956_v32 = vrot.slane %v950_v10, 1  ;;  %v972_v37 = vmul.f32 %v969_v29, %v3846_v31 }
 0x16b   : > { %v694_v54 = vsel %vm691_vm6, %v692_v55, %v693_v43  ;;  %v710_v6 = vrot.slane %v703_v44, 3  ;;  %v955_v38 = vrot.slane %v949_v24, 1  ;;  %v977_v43 = vrot.slane %v971_v36, 2 }
 0x16c   : > { %v1304_v55 = vstv %s2967_s22  ;;  %v1423_v36 = vstv %s2973_s19  ;;  %s2983_s22 = sld [smem:[#allocation11 + $0x98]]  ;;  %s3003_s19 = sld [smem:[#allocation11 + $0x115]] }
 0x16d   : > { %829 = vrot.lane.b32.xlu1 %v826_v9, %s5304_s2  ;;  %827 = vrot.lane.b32.xlu0 %v824_v2, %s5304_s2  ;;  %v700_v9 = vadd.f32 %v696_v39, %v682_v51  ;;  %v681_v2 = vadd.f32 %v676_v3, %v661_v48  ;;  %v970_v48 = vmul.f32 %v969_v29, %v3831_v28  ;;  %v1262_v28 = vstv %s2965_s18  ;;  %s2981_s18 = sld [smem:[#allocation11 + $0x8e]] }
 0x16e   : > { %v957_v40 = vsel %vm673_vm5, %v955_v38, %v956_v32  ;;  %v1305_v39 = vmul.f32 %v3935_v8, %v1304_v55  ;;  %v1306_v3 = vmul.f32 %v3937_v61, %v1304_v55 }
 0x16f   : > { %v699_v19 = vadd.f32 %v694_v54, %v681_v2  ;;  %v976_v30 = vrot.slane %v970_v48, 2 }
 0x170   : > { %v1312_v2 = vrot.slane %v1306_v3, 3 }
 0x171   : > { %864 = vrot.lane.b32.xlu1 %v861_v13, %s5303_s15  ;;  %862 = vrot.lane.b32.xlu0 %v859_v5, %s5303_s15  ;;  %v899_v5 = vrot.slane %v4103_v62, 3  ;;  %v712_v13 = vsel %vm709_vm3, %v710_v6, %v711_v41  ;;  %v951_v62 = vmul.f32 %v948_v4, %v3846_v31  ;;  %v979_v41 = vrot.slane %v972_v37, 2 }
 0x172   : > { %v717_v14 = vadd.f32 %v712_v13, %v699_v19  ;;  %v978_v20 = vsel %vm691_vm6, %v976_v30, %v977_v43  ;;  %v1311_v6 = vrot.slane %v1305_v39, 3  ;;  %v1381_v13 = vstv %s2971_s16  ;;  %s3001_s16 = sld [smem:[#allocation11 + $0x10b]] }
 0x173   : > { %v901_v52 = vsel %vm709_vm3, %v899_v5, %v900_v22  ;;  %v958_v35 = vrot.slane %v951_v62, 1  ;;  %v980_v31 = vsel %vm691_vm6, %v977_v43, %v979_v41  ;;  %v1402_v62 = vstv %s2972_s10  ;;  %s3002_s10 = sld [smem:[#allocation11 + $0x110]] }
 0x174   : > { %v1313_v19 = vsel %vm709_vm3, %v1311_v6, %v1312_v2  ;;  %v1403_v48 = vmul.f32 %v3935_v8, %v1402_v62 }
 0x175   : > { %885 = vrot.lane.b32.xlu1 %v882_v0, %s5303_s15  ;;  %883 = vrot.lane.b32.xlu0 %v880_v21, %s5303_s15  ;;  %v718_v0 = vadd.f32 %v714_v49, %v700_v9  ;;  %v903_v21 = vsel %vm709_vm3, %v900_v22, %v902_v15  ;;  %v922_v15 = vsel %vm727_vm4, %v920_v18, %v921_v50 }
 0x176   : > { %v4176_v22 = vadd.f32 %v730_v16, %v717_v14  ;;  %v959_v7 = vsel %vm673_vm5, %v956_v32, %v958_v35  ;;  %v1383_v32 = vmul.f32 %v3937_v61, %v1381_v13 }
 0x177   : > { %v4170_v47 = vadd.f32 %v732_v57, %v718_v0 }
 0x178   : > { %v1389_v30 = vrot.slane %v1383_v32, 2 }
 0x179   : > { %906 = vrot.lane.b32.xlu1 %v903_v21, %s5303_s15  ;;  %904 = vrot.lane.b32.xlu0 %v901_v52, %s5303_s15 }
 0x17d   : > { %927 = vrot.lane.b32.xlu1 %v924_v27, %s5303_s15  ;;  %925 = vrot.lane.b32.xlu0 %v922_v15, %s5303_s15  ;;  %v1382_v27 = vmul.f32 %v3935_v8, %v1381_v13 }
 0x17f   : > { %v1388_v41 = vrot.slane %v1382_v27, 2 }
 0x181   : > { %962 = vrot.lane.b32.xlu1 %v959_v7, %s3442_s23  ;;  %960 = vrot.lane.b32.xlu0 %v957_v40, %s3442_s23  ;;  %v1404_v7 = vmul.f32 %v3937_v61, %v1402_v62 }
 0x185   : > { %983 = vrot.lane.b32.xlu1 %v980_v31, %s3442_s23  ;;  %981 = vrot.lane.b32.xlu0 %v978_v20, %s3442_s23  ;;  %v1458_v20 = vstv %s2975_s3  ;;  %s4413_s3 = sld [smem:[#allocation11 + $0x85]] }
 0x186   : > { %v1459_v39 = vmul.f32 %v3935_v8, %v1458_v20  ;;  %v1460_v3 = vmul.f32 %v3937_v61, %v1458_v20 }
 0x189   : > { %1004 = vrot.lane.b32.xlu1 %v3987_v33, %s3442_s23  ;;  %1002 = vrot.lane.b32.xlu0 %v3990_v34, %s3442_s23  ;;  %v4207_v33 = vld [vmem:[#allocation2 + $0x28] sm:$0xf]  ;;  %v1263_v34 = vmul.f32 %v3935_v8, %v1262_v28 }
 0x18a   : > { %v1307_v54 = vmul.f32 %v4207_v33, %v1304_v55  ;;  %v1384_v35 = vmul.f32 %v4207_v33, %v1381_v13  ;;  %v1405_v40 = vmul.f32 %v4207_v33, %v1402_v62  ;;  %v1466_v13 = vrot.slane %v1460_v3, 1 }
 0x18c   : > { %v1314_v5 = vrot.slane %v1307_v54, 3  ;;  %v1391_v31 = vrot.slane %v1384_v35, 2  ;;  %v1461_v54 = vmul.f32 %v4207_v33, %v1458_v20 }
 0x18d   : > { %1025 = vrot.lane.b32.xlu1 %v3998_v42, %s3442_s23  ;;  %1023 = vrot.lane.b32.xlu0 %v4005_v45, %s3442_s23  ;;  %v1264_v42 = vmul.f32 %v3937_v61, %v1262_v28  ;;  %v1265_v45 = vmul.f32 %v4207_v33, %v1262_v28 }
 0x18e   : > { %v1315_v21 = vsel %vm709_vm3, %v1312_v2, %v1314_v5  ;;  %v1500_v2 = vstv %s2977_s6  ;;  %s4422_s6 = sld [smem:[#allocation11 + $0x10c]] }
 0x18f   : > { %v1272_v46 = vrot.slane %v1265_v45, 1  ;;  %v1410_v45 = vrot.slane %v1404_v7, 3 }
 0x191   : > { %1060 = vrot.lane.b32.xlu1 %v4011_v58, %s3443_s0  ;;  %1058 = vrot.lane.b32.xlu0 %v4014_v59, %s3443_s0  ;;  %v1283_v58 = vstv %s2966_s17  ;;  %v1269_v59 = vrot.slane %v1263_v34, 1  ;;  %s2982_s17 = sld [smem:[#allocation11 + $0x93]] }
 0x192   : > { %v1285_v44 = vmul.f32 %v3937_v61, %v1283_v58  ;;  %v1286_v53 = vmul.f32 %v4207_v33, %v1283_v58 }
 0x194   : > { %v1291_v51 = vrot.slane %v1285_v44, 2  ;;  %v1293_v57 = vrot.slane %v1286_v53, 2  ;;  %v1425_v44 = vmul.f32 %v3937_v61, %v1423_v36  ;;  %v1479_v53 = vstv %s4252_s4  ;;  %s4416_s4 = sld [smem:[#allocation11 + $0x102]] }
 0x195   : > { %1081 = vrot.lane.b32.xlu1 %v4020_v60, %s3443_s0  ;;  %1079 = vrot.lane.b32.xlu0 %v4029_v12, %s3443_s0  ;;  %v1270_v60 = vrot.slane %v1264_v42, 1  ;;  %v1284_v12 = vmul.f32 %v3935_v8, %v1283_v58  ;;  %v1409_v42 = vrot.slane %v1403_v48, 3  ;;  %v1412_v58 = vrot.slane %v1405_v40, 3 }
 0x196   : > { %v1294_v9 = vsel %vm691_vm6, %v1291_v51, %v1293_v57 }
 0x197   : > { %v1290_v56 = vrot.slane %v1284_v12, 2  ;;  %v1273_v49 = vsel %vm673_vm5, %v1270_v60, %v1272_v46  ;;  %v1392_v12 = vsel %vm691_vm6, %v1389_v30, %v1391_v31  ;;  %v1426_v46 = vmul.f32 %v4207_v33, %v1423_v36 }
 0x199   : > { %1102 = vrot.lane.b32.xlu1 %v4038_v17, %s3443_s0  ;;  %1100 = vrot.lane.b32.xlu0 %v4046_v23, %s3443_s0  ;;  %v1325_v17 = vstv %s2968_s11  ;;  %v1271_v23 = vsel %vm673_vm5, %v1269_v59, %v1270_v60  ;;  %v1424_v59 = vmul.f32 %v3935_v8, %v1423_v36  ;;  %v1390_v60 = vsel %vm691_vm6, %v1388_v41, %v1389_v30  ;;  %s3000_s11 = sld [smem:[#allocation11 + $0x106]] }
 0x19a   : > { %v1326_v1 = vmul.f32 %v3935_v8, %v1325_v17  ;;  %v1327_v63 = vmul.f32 %v3937_v61, %v1325_v17  ;;  %v1328_v4 = vmul.f32 %v4207_v33, %v1325_v17  ;;  %v1433_v57 = vrot.slane %v1426_v46, 4 }
 0x19b   : > { %v1556_v30 = vstv %s2980_s20  ;;  %s4428_s20 = sld [smem:[#allocation11 + $0x8a]] }
 0x19c   : > { %v1332_v16 = vrot.slane %v1326_v1, 4  ;;  %v1333_v50 = vrot.slane %v1327_v63, 4  ;;  %v1335_v52 = vrot.slane %v1328_v4, 4  ;;  %v1465_v1 = vrot.slane %v1459_v39, 1 }
 0x19d   : > { %1123 = vrot.lane.b32.xlu1 %v4063_v26, %s3443_s0  ;;  %1121 = vrot.lane.b32.xlu0 %v4066_v11, %s3443_s0  ;;  %v1360_v26 = vstv %s2970_s9  ;;  %v1292_v11 = vsel %vm691_vm6, %v1290_v56, %v1291_v51  ;;  %v1413_v56 = vsel %vm709_vm3, %v1410_v45, %v1412_v58  ;;  %v1430_v51 = vrot.slane %v1424_v59, 4  ;;  %s4368_s9 = sld [smem:[#allocation11 + $0x101]] }
 0x19e   : > { %v1361_v25 = vmul.f32 %v3935_v8, %v1360_v26  ;;  %v1362_v0 = vmul.f32 %v3937_v61, %v1360_v26  ;;  %v1363_v10 = vmul.f32 %v4207_v33, %v1360_v26  ;;  %v1334_v18 = vsel %vm727_vm4, %v1332_v16, %v1333_v50 }
 0x19f   : > { %v1336_v15 = vsel %vm727_vm4, %v1333_v50, %v1335_v52  ;;  %v1480_v26 = vmul.f32 %v3935_v8, %v1479_v53  ;;  %v1481_v63 = vmul.f32 %v3937_v61, %v1479_v53  ;;  %v1468_v16 = vrot.slane %v1461_v54, 1 }
 0x1a0   : > { %v1367_v14 = vrot.slane %v1361_v25, 1  ;;  %v1368_v24 = vrot.slane %v1362_v0, 1  ;;  %v1370_v29 = vrot.slane %v1363_v10, 1  ;;  %v1501_v52 = vmul.f32 %v3935_v8, %v1500_v2 }
 0x1a1   : > { %1274 = vrot.lane.b32.xlu1 %v1271_v23, %s5304_s2  ;;  %1276 = vrot.lane.b32.xlu0 %v1273_v49, %s5304_s2  ;;  %v1411_v23 = vsel %vm709_vm3, %v1409_v42, %v1410_v45  ;;  %v1431_v49 = vrot.slane %v1425_v44, 4  ;;  %v1486_v50 = vrot.slane %v1480_v26, 2  ;;  %v1502_v10 = vmul.f32 %v3937_v61, %v1500_v2 }
 0x1a2   : > { %v1369_v38 = vsel %vm673_vm5, %v1367_v14, %v1368_v24  ;;  %v1371_v43 = vsel %vm673_vm5, %v1368_v24, %v1370_v29  ;;  %v1467_v62 = vsel %vm673_vm5, %v1465_v1, %v1466_v13  ;;  %v1503_v14 = vmul.f32 %v4207_v33, %v1500_v2 }
 0x1a3   : > { %v1432_v5 = vsel %vm727_vm4, %v1430_v51, %v1431_v49  ;;  %v1434_v4 = vsel %vm727_vm4, %v1431_v49, %v1433_v57  ;;  %v1521_v24 = vstv %s2978_s12  ;;  %v1507_v35 = vrot.slane %v1501_v52, 3  ;;  %s4426_s12 = sld [smem:[#allocation11 + $0x80]] }
 0x1a4   : > { %v1508_v36 = vrot.slane %v1502_v10, 3  ;;  %v1523_v48 = vmul.f32 %v3937_v61, %v1521_v24  ;;  %v1524_v7 = vmul.f32 %v4207_v33, %v1521_v24  ;;  %v1542_v58 = vstv %s4316_s21  ;;  %s4433_s21 = sld [smem:[#allocation11 + $0x8f]] }
 0x1a5   : > { %1295 = vrot.lane.b32.xlu1 %v1292_v11, %s5304_s2  ;;  %1297 = vrot.lane.b32.xlu0 %v1294_v9, %s5304_s2  ;;  %v1482_v9 = vmul.f32 %v4207_v33, %v1479_v53  ;;  %v1557_v59 = vmul.f32 %v3935_v8, %v1556_v30  ;;  %v1558_v46 = vmul.f32 %v3937_v61, %v1556_v30 }
 0x1a6   : > { %v1509_v41 = vsel %vm709_vm3, %v1507_v35, %v1508_v36  ;;  %v1559_v53 = vmul.f32 %v4207_v33, %v1556_v30  ;;  %v1543_v39 = vmul.f32 %v3935_v8, %v1542_v58  ;;  %v1544_v49 = vmul.f32 %v3937_v61, %v1542_v58 }
 0x1a7   : > { %v1563_v54 = vrot.slane %v1557_v59, 1  ;;  %v1564_v26 = vrot.slane %v1558_v46, 1 }
 0x1a8   : > { %v1566_v1 = vrot.slane %v1559_v53, 1 }
 0x1a9   : > { %1316 = vrot.lane.b32.xlu1 %v1313_v19, %s5304_s2  ;;  %1318 = vrot.lane.b32.xlu0 %v1315_v21, %s5304_s2  ;;  %v1487_v19 = vrot.slane %v1481_v63, 2  ;;  %v1489_v21 = vrot.slane %v1482_v9, 2  ;;  %v1619_v9 = vstv %s2983_s22  ;;  %s4465_s22 = sld [smem:[#allocation11 + $0x94]] }
 0x1ab   : > { %v1488_v29 = vsel %vm691_vm6, %v1486_v50, %v1487_v19  ;;  %v1490_v32 = vsel %vm691_vm6, %v1487_v19, %v1489_v21  ;;  %v1565_v19 = vsel %vm673_vm5, %v1563_v54, %v1564_v26  ;;  %v1567_v21 = vsel %vm673_vm5, %v1564_v26, %v1566_v1 }
 0x1ad   : > { %1337 = vrot.lane.b32.xlu1 %v1334_v18, %s5304_s2  ;;  %1339 = vrot.lane.b32.xlu0 %v1336_v15, %s5304_s2  ;;  %v1469_v18 = vsel %vm673_vm5, %v1466_v13, %v1468_v16 }
 0x1af   : > { %v1151_v37 = vpop.permute.xlu0 %1150 }
 0x1b0   : > { %1160 = vst.msk [vmem:[%s4258_s5 - $0x2] sm:$0xfc] %vm1159_vm7, %v1151_v37  ;;  %v1510_v37 = vrot.slane %v1503_v14, 3 }
 0x1b1   : > { %1372 = vrot.lane.b32.xlu1 %v1369_v38, %s5303_s15  ;;  %1374 = vrot.lane.b32.xlu0 %v1371_v43, %s5303_s15  ;;  %v1522_v38 = vmul.f32 %v3935_v8, %v1521_v24 }
 0x1b2   : > { %v1511_v31 = vsel %vm709_vm3, %v1508_v36, %v1510_v37  ;;  %v1621_v37 = vmul.f32 %v3937_v61, %v1619_v9 }
 0x1b3   : > { %v1153_v28 = vpop.permute.xlu1 %1152  ;;  %v1155_v34 = vpop.permute.xlu0 %1154  ;;  %v1528_v20 = vrot.slane %v1522_v38, 4  ;;  %v1622_v38 = vmul.f32 %v4207_v33, %v1619_v9 }
 0x1b4   : > { %1162 = vst.msk [vmem:[%s4258_s5 + $0x6] sm:$0xff] %vm1161_vm8, %v1153_v28  ;;  %v1529_v28 = vrot.slane %v1523_v48, 4 }
 0x1b5   : > { %1164 = vst.msk [vmem:[%s4258_s5 + $0xe] sm:$0x3] %vm1163_vm9, %v1155_v34  ;;  %1393 = vrot.lane.b32.xlu1 %v1390_v60, %s5303_s15  ;;  %1395 = vrot.lane.b32.xlu0 %v1392_v12, %s5303_s15  ;;  %v1531_v34 = vrot.slane %v1524_v7, 4  ;;  %v1577_v60 = vstv %s2981_s18  ;;  %s4438_s18 = sld [smem:[#allocation11 + $0x111]] }
 0x1b6   : > { %v1530_v12 = vsel %vm727_vm4, %v1528_v20, %v1529_v28  ;;  %v1578_v57 = vmul.f32 %v3935_v8, %v1577_v60  ;;  %v1579_v3 = vmul.f32 %v3937_v61, %v1577_v60  ;;  %v1580_v63 = vmul.f32 %v4207_v33, %v1577_v60 }
 0x1b7   : > { %v4277_v55 = vpop.permute.xlu1 %745  ;;  %v4279_v17 = vpop.permute.xlu0 %743  ;;  %v1532_v44 = vsel %vm727_vm4, %v1529_v28, %v1531_v34  ;;  %v1627_v20 = vrot.slane %v1621_v37, 4  ;;  %v1629_v28 = vrot.slane %v1622_v38, 4 }
 0x1b8   : > { %v1585_v13 = vrot.slane %v1579_v3, 2  ;;  %v1587_v52 = vrot.slane %v1580_v63, 2  ;;  %v750_v34 = vadd.f32 %v4277_v55, %v4170_v47  ;;  %v749_v58 = vadd.f32 %v4279_v17, %v4176_v22  ;;  %v4382_v55 = vld [vmem:[#allocation2 + $0x30] sm:$0xff]  ;;  %v4384_v22 = vld [vmem:[#allocation2 + $0x38] sm:$0xff] }
 0x1b9   : > { %1414 = vrot.lane.b32.xlu1 %v1411_v23, %s5303_s15  ;;  %1416 = vrot.lane.b32.xlu0 %v1413_v56, %s5303_s15  ;;  %v1598_v23 = vstv %s2982_s17  ;;  %v1630_v53 = vsel %vm727_vm4, %v1627_v20, %v1629_v28  ;;  %v1791_v3 = vstv %s3001_s16  ;;  %s4449_s17 = sld [smem:[#allocation11 + $0x116]]  ;;  %s4527_s16 = sld [smem:[#allocation11 + $0x10d]] }
 0x1ba   : > { %v1599_v16 = vmul.f32 %v3935_v8, %v1598_v23  ;;  %v1600_v50 = vmul.f32 %v3937_v61, %v1598_v23  ;;  %v1601_v10 = vmul.f32 %v4207_v33, %v1598_v23  ;;  %v1588_v35 = vsel %vm691_vm6, %v1585_v13, %v1587_v52 }
 0x1bb   : > { %v4289_v11 = vpop.permute.xlu1 %843  ;;  %v4291_v6 = vpop.permute.xlu0 %841  ;;  %v1770_v23 = vstv %s3000_s11  ;;  %s4495_s11 = sld [smem:[#allocation11 + $0x108]] }
 0x1bc   : > { %v1605_v24 = vrot.slane %v1599_v16, 3  ;;  %v1608_v36 = vrot.slane %v1601_v10, 3  ;;  %v1771_v1 = vmul.f32 %v4382_v55, %v1770_v23  ;;  %v1772_v63 = vmul.f32 %v4384_v22, %v1770_v23 }
 0x1bd   : > { %1435 = vrot.lane.b32.xlu1 %v1432_v5, %s5303_s15  ;;  %1437 = vrot.lane.b32.xlu0 %v1434_v4, %s5303_s15  ;;  %v1584_v4 = vrot.slane %v1578_v57, 2  ;;  %v1756_v57 = vstv %s4368_s9  ;;  %s4524_s9 = sld [smem:[#allocation11 + $0x103]] }
 0x1be   : > { %v1777_v52 = vrot.slane %v1771_v1, 1  ;;  %v1778_v10 = vrot.slane %v1772_v63, 1 }
 0x1bf   : > { %v4299_v25 = vpop.permute.xlu1 %941  ;;  %v4301_v0 = vpop.permute.xlu0 %939  ;;  %v1586_v14 = vsel %vm691_vm6, %v1584_v4, %v1585_v13 }
 0x1c0   : > { %v1779_v38 = vsel %vm673_vm5, %v1777_v52, %v1778_v10 }
 0x1c1   : > { %1470 = vrot.lane.b32.xlu1 %v1467_v62, %s3442_s23  ;;  %1472 = vrot.lane.b32.xlu0 %v1469_v18, %s3442_s23 }
 0x1c3   : > { %v4310_v27 = vpop.permute.xlu1 %1039  ;;  %v4312_v15 = vpop.permute.xlu0 %1037 }
 0x1c5   : > { %1491 = vrot.lane.b32.xlu1 %v1488_v29, %s3442_s23  ;;  %1493 = vrot.lane.b32.xlu0 %v1490_v32, %s3442_s23  ;;  %v1606_v29 = vrot.slane %v1600_v50, 3  ;;  %v1620_v32 = vmul.f32 %v3935_v8, %v1619_v9  ;;  %v4389_v9 = vld [vmem:[#allocation2 + $0x40] sm:$0xf]  ;;  %v1757_v50 = vmul.f32 %v4382_v55, %v1756_v57 }
 0x1c6   : > { %v1773_v4 = vmul.f32 %v4389_v9, %v1770_v23 }
 0x1c7   : > { %v4323_v40 = vpop.permute.xlu1 %1253  ;;  %v4325_v43 = vpop.permute.xlu0 %1255  ;;  %v1607_v30 = vsel %vm709_vm3, %v1605_v24, %v1606_v29 }
 0x1c9   : > { %1512 = vrot.lane.b32.xlu1 %v1509_v41, %s3442_s23  ;;  %1514 = vrot.lane.b32.xlu0 %v1511_v31, %s3442_s23  ;;  %v1626_v41 = vrot.slane %v1620_v32, 4  ;;  %v1609_v31 = vsel %vm709_vm3, %v1606_v29, %v1608_v36  ;;  %v1758_v32 = vmul.f32 %v4384_v22, %v1756_v57 }
 0x1cb   : > { %v4331_v42 = vpop.permute.xlu1 %1351  ;;  %v4333_v45 = vpop.permute.xlu0 %1353  ;;  %v1628_v46 = vsel %vm727_vm4, %v1626_v41, %v1627_v20 }
 0x1cd   : > { %1533 = vrot.lane.b32.xlu1 %v1530_v12, %s3442_s23  ;;  %1535 = vrot.lane.b32.xlu0 %v1532_v44, %s3442_s23 }
 0x1cf   : > { %v4343_v56 = vpop.permute.xlu1 %1449  ;;  %v4345_v51 = vpop.permute.xlu0 %1451 }
 0x1d1   : > { %1547 = vrot.lane.b32.xlu1 %v1543_v39, %s3443_s0  ;;  %1549 = vrot.lane.b32.xlu0 %v1544_v49, %s3443_s0 }
 0x1d3   : > { %v767_v2 = vpop.permute.xlu1 %766  ;;  %v765_v5 = vpop.permute.xlu0 %764 }
 0x1d4   : > { %v771_v12 = vadd.f32 %v767_v2, %v750_v34  ;;  %v770_v44 = vadd.f32 %v765_v5, %v749_v58 }
 0x1d5   : > { %1568 = vrot.lane.b32.xlu1 %v1565_v19, %s3443_s0  ;;  %1570 = vrot.lane.b32.xlu0 %v1567_v21, %s3443_s0  ;;  %v1792_v19 = vmul.f32 %v4382_v55, %v1791_v3  ;;  %v1793_v21 = vmul.f32 %v4384_v22, %v1791_v3 }
 0x1d7   : > { %v788_v62 = vpop.permute.xlu1 %787  ;;  %v786_v18 = vpop.permute.xlu0 %785  ;;  %v1799_v36 = vrot.slane %v1793_v21, 2 }
 0x1d8   : > { %v792_v39 = vadd.f32 %v788_v62, %v771_v12  ;;  %v791_v47 = vadd.f32 %v786_v18, %v770_v44  ;;  %v1812_v62 = vstv %s3002_s10  ;;  %v1780_v18 = vrot.slane %v1773_v4, 1  ;;  %s4540_s10 = sld [smem:[#allocation13]] }
 0x1d9   : > { %1589 = vrot.lane.b32.xlu1 %v1586_v14, %s3443_s0  ;;  %1591 = vrot.lane.b32.xlu0 %v1588_v35, %s3443_s0  ;;  %v1794_v14 = vmul.f32 %v4389_v9, %v1791_v3  ;;  %v1798_v35 = vrot.slane %v1792_v19, 2  ;;  %v1813_v37 = vmul.f32 %v4382_v55, %v1812_v62  ;;  %v1815_v58 = vmul.f32 %v4389_v9, %v1812_v62 }
 0x1da   : > { %v1781_v41 = vsel %vm673_vm5, %v1778_v10, %v1780_v18  ;;  %v1854_v4 = vstv %s4416_s4  ;;  %v4455_v18 = vld [vmem:[#allocation2 + $0x18] sm:$0xff]  ;;  %s4623_s4 = sld [smem:[#allocation11 + $0x186]] }
 0x1db   : > { %v809_v48 = vpop.permute.xlu1 %808  ;;  %v807_v7 = vpop.permute.xlu0 %806  ;;  %v1800_v28 = vsel %vm691_vm6, %v1798_v35, %v1799_v36  ;;  %v1819_v34 = vrot.slane %v1813_v37, 3 }
 0x1dc   : > { %v813_v54 = vadd.f32 %v809_v48, %v792_v39  ;;  %v812_v26 = vadd.f32 %v807_v7, %v791_v47  ;;  %v1814_v48 = vmul.f32 %v4384_v22, %v1812_v62 }
 0x1dd   : > { %1610 = vrot.lane.b32.xlu1 %v1607_v30, %s3443_s0  ;;  %1612 = vrot.lane.b32.xlu0 %v1609_v31, %s3443_s0  ;;  %v1801_v30 = vrot.slane %v1794_v14, 2 }
 0x1de   : > { %v1820_v44 = vrot.slane %v1814_v48, 3 }
 0x1df   : > { %v830_v59 = vpop.permute.xlu1 %829  ;;  %v828_v60 = vpop.permute.xlu0 %827  ;;  %v1802_v39 = vsel %vm691_vm6, %v1799_v36, %v1801_v30 }
 0x1e0   : > { %v834_v2 = vadd.f32 %v830_v59, %v813_v54  ;;  %v833_v5 = vadd.f32 %v828_v60, %v812_v26  ;;  %v1868_v54 = vstv %s4407_s1  ;;  %v1821_v63 = vsel %vm709_vm3, %v1819_v34, %v1820_v44  ;;  %s4571_s1 = sld [smem:[#allocation14]] }
 0x1e1   : > { %1631 = vrot.lane.b32.xlu1 %v1628_v46, %s3443_s0  ;;  %1633 = vrot.lane.b32.xlu0 %v1630_v53, %s3443_s0  ;;  %v1869_v21 = vmul.f32 %v4382_v55, %v1868_v54  ;;  %v4447_v52 = vmul.f32 %v4384_v22, %v1868_v54  ;;  %v1871_v35 = vmul.f32 %v4389_v9, %v1868_v54 }
 0x1e2   : > { %v1856_v34 = vmul.f32 %v4384_v22, %v1854_v4 }
 0x1e3   : > { %v865_v17 = vpop.permute.xlu1 %864  ;;  %v863_v49 = vpop.permute.xlu0 %862  ;;  %v1876_v48 = vrot.slane %v4447_v52, 1 }
 0x1e5   : > { %1660 = vrot.lane.b32.xlu1 %v3935_v8, %s5303_s15  ;;  %1662 = vrot.lane.b32.xlu0 %v3937_v61, %s5303_s15  ;;  %v848_v8 = vadd.f32 %v4289_v11, %v834_v2  ;;  %v847_v61 = vadd.f32 %v4291_v6, %v833_v5  ;;  %v1833_v11 = vstv %s3003_s19  ;;  %v4441_v5 = vstv %s4413_s3  ;;  %s4556_s19 = sld [smem:[#allocation11 + $0x112]]  ;;  %s4589_s3 = sld [smem:[#allocation11 + $0x117]] }
 0x1e6   : > { %v1834_v59 = vmul.f32 %v4382_v55, %v1833_v11  ;;  %v1835_v46 = vmul.f32 %v4384_v22, %v1833_v11  ;;  %v1836_v3 = vmul.f32 %v4389_v9, %v1833_v11  ;;  %v1181_v14 = vmul.f32 %v4455_v18, %v4441_v5 }
 0x1e7   : > { %v886_v13 = vpop.permute.xlu1 %885  ;;  %v884_v16 = vpop.permute.xlu0 %883  ;;  %v869_v6 = vadd.f32 %v865_v17, %v848_v8  ;;  %v868_v7 = vadd.f32 %v863_v49, %v847_v61  ;;  %v1822_v49 = vrot.slane %v1815_v58, 3  ;;  %v1889_v61 = vstv %s4422_s6  ;;  %s4633_s6 = sld [smem:[#allocation11 + $0x181]] }
 0x1e8   : > { %v1840_v57 = vrot.slane %v1834_v59, 4  ;;  %v1841_v2 = vrot.slane %v1835_v46, 4  ;;  %v1843_v19 = vrot.slane %v1836_v3, 4  ;;  %v1890_v11 = vmul.f32 %v4382_v55, %v1889_v61 }
 0x1e9   : > { %1664 = vrot.lane.b32.xlu1 %v4207_v33, %s5303_s15  ;;  %1761 = vrot.lane.b32.xlu0 %v1757_v50, %s5304_s2  ;;  %v890_v60 = vadd.f32 %v886_v13, %v869_v6  ;;  %v889_v12 = vadd.f32 %v884_v16, %v868_v7  ;;  %v1823_v50 = vsel %vm709_vm3, %v1820_v44, %v1822_v49  ;;  %v4481_v7 = vstv %s4433_s21  ;;  %s4690_s21 = sld [smem:[#allocation11 + $0x195]] }
 0x1ea   : > { %v1842_v8 = vsel %vm727_vm4, %v1840_v57, %v1841_v2  ;;  %v4478_v6 = vmul.f32 %v4384_v22, %v1889_v61  ;;  %v1910_v58 = vstv %s4438_s18  ;;  %v1892_v44 = vmul.f32 %v4389_v9, %v1889_v61  ;;  %s4717_s18 = sld [smem:[#allocation11 + $0x187]] }
 0x1eb   : > { %v907_v24 = vpop.permute.xlu1 %906  ;;  %v905_v29 = vpop.permute.xlu0 %904  ;;  %v1911_v3 = vmul.f32 %v4382_v55, %v1910_v58  ;;  %v1912_v54 = vmul.f32 %v4384_v22, %v1910_v58 }
 0x1ec   : > { %v911_v53 = vadd.f32 %v907_v24, %v890_v60  ;;  %v910_v23 = vadd.f32 %v905_v29, %v889_v12  ;;  %v4459_v24 = vld [vmem:[#allocation2 + $0x20] sm:$0xff]  ;;  %v1878_v12 = vrot.slane %v1871_v35, 1 }
 0x1ed   : > { %1763 = vrot.lane.b32.xlu1 %v1758_v32, %s5304_s2  ;;  %1782 = vrot.lane.b32.xlu0 %v1779_v38, %s5304_s2  ;;  %v4463_v29 = vmul.f32 %v4459_v24, %v4441_v5  ;;  %v1855_v32 = vmul.f32 %v4382_v55, %v1854_v4  ;;  %v1875_v38 = vrot.slane %v1869_v21, 1  ;;  %v4513_v4 = vmul.f32 %v4455_v18, %v4481_v7 }
 0x1ee   : > { %v1918_v35 = vrot.slane %v1912_v54, 3 }
 0x1ef   : > { %v928_v31 = vpop.permute.xlu1 %927  ;;  %v926_v20 = vpop.permute.xlu0 %925 }
 0x1f0   : > { %v932_v26 = vadd.f32 %v928_v31, %v911_v53  ;;  %v931_v1 = vadd.f32 %v926_v20, %v910_v23  ;;  %v1844_v31 = vsel %vm727_vm4, %v1841_v2, %v1843_v19  ;;  %v1187_v20 = vrot.slane %v1181_v14, 1 }
 0x1f1   : > { %1784 = vrot.lane.b32.xlu1 %v1781_v41, %s5304_s2  ;;  %1803 = vrot.lane.b32.xlu0 %v1800_v28, %s5304_s2  ;;  %v1188_v28 = vrot.slane %v4463_v29, 1  ;;  %v1877_v23 = vsel %vm673_vm5, %v1875_v38, %v1876_v48  ;;  %v4507_v2 = vstv %s4465_s22  ;;  %v1899_v14 = vrot.slane %v1892_v44, 2  ;;  %s4727_s22 = sld [smem:[#allocation11 + $0x18c]] }
 0x1f2   : > { %v946_v10 = vadd.f32 %v4299_v25, %v932_v26  ;;  %v945_v62 = vadd.f32 %v4301_v0, %v931_v1  ;;  %v1174_v25 = vstv %s4426_s12  ;;  %v4471_v0 = vstv %s4428_s20  ;;  %s4635_s12 = sld [smem:[#allocation11 + $0x18b]]  ;;  %s4659_s20 = sld [smem:[#allocation11 + $0x190]] }
 0x1f3   : > { %v963_v47 = vpop.permute.xlu1 %962  ;;  %v961_v17 = vpop.permute.xlu0 %960  ;;  %v1175_v26 = vmul.f32 %v4455_v18, %v1174_v25  ;;  %v1198_v1 = vmul.f32 %v4455_v18, %v4471_v0  ;;  %v1189_v19 = vsel %vm673_vm5, %v1187_v20, %v1188_v28  ;;  %v4532_v38 = vmul.f32 %v4459_v24, %v4481_v7 }
 0x1f4   : > { %v967_v41 = vadd.f32 %v963_v47, %v946_v10  ;;  %v966_v30 = vadd.f32 %v961_v17, %v945_v62  ;;  %v1897_v47 = vrot.slane %v4478_v6, 2  ;;  %v1931_v17 = vstv %s4449_s17  ;;  %s4722_s17 = sld [smem:[#allocation11 + $0x182]] }
 0x1f5   : > { %1805 = vrot.lane.b32.xlu1 %v1802_v39, %s5304_s2  ;;  %1824 = vrot.lane.b32.xlu0 %v1821_v63, %s5304_s2  ;;  %v1896_v39 = vrot.slane %v1890_v11, 2  ;;  %v4504_v63 = vmul.f32 %v4459_v24, %v4471_v0  ;;  %v1879_v10 = vsel %vm673_vm5, %v1876_v48, %v1878_v12  ;;  %v1932_v62 = vmul.f32 %v4382_v55, %v1931_v17 }
 0x1f6   : > { %v4536_v48 = vmul.f32 %v4455_v18, %v4507_v2  ;;  %v4544_v11 = vmul.f32 %v4459_v24, %v4507_v2  ;;  %v1900_v12 = vsel %vm691_vm6, %v1897_v47, %v1899_v14 }
 0x1f7   : > { %v984_v13 = vpop.permute.xlu1 %983  ;;  %v982_v16 = vpop.permute.xlu0 %981  ;;  %v1898_v61 = vsel %vm691_vm6, %v1896_v39, %v1897_v47 }
 0x1f8   : > { %v988_v59 = vadd.f32 %v984_v13, %v967_v41  ;;  %v987_v60 = vadd.f32 %v982_v16, %v966_v30  ;;  %v1238_v39 = vrot.slane %v4536_v48, 4 }
 0x1f9   : > { %1826 = vrot.lane.b32.xlu1 %v1823_v50, %s5304_s2  ;;  %1845 = vrot.lane.b32.xlu0 %v1842_v8, %s5304_s2  ;;  %v1913_v50 = vmul.f32 %v4389_v9, %v1910_v58  ;;  %v4522_v8 = vmul.f32 %v4384_v22, %v1931_v17 }
 0x1fb   : > { %v1005_v36 = vpop.permute.xlu1 %1004  ;;  %v1003_v37 = vpop.permute.xlu0 %1002  ;;  %v1920_v30 = vrot.slane %v1913_v50, 3  ;;  %v1939_v58 = vrot.slane %v4522_v8, 4 }
 0x1fc   : > { %v1009_v49 = vadd.f32 %v1005_v36, %v988_v59  ;;  %v1008_v57 = vadd.f32 %v1003_v37, %v987_v60  ;;  %v1204_v36 = vrot.slane %v1198_v1, 2  ;;  %v1205_v37 = vrot.slane %v4504_v63, 2 }
 0x1fd   : > { %1847 = vrot.lane.b32.xlu1 %v1844_v31, %s5304_s2  ;;  %1859 = vrot.lane.b32.xlu0 %v1855_v32, %s5303_s15  ;;  %v1917_v32 = vrot.slane %v1911_v3, 3  ;;  %v4548_v31 = vadd.f32 %v1189_v19, %v1175_v26  ;;  %v1934_v59 = vmul.f32 %v4389_v9, %v1931_v17  ;;  %v1221_v60 = vrot.slane %v4513_v4, 3 }
 0x1fe   : > { %v1200_v19 = vmul.f32 %v4207_v33, %v4471_v0 }
 0x1ff   : > { %v1026_v46 = vpop.permute.xlu1 %1025  ;;  %v1024_v53 = vpop.permute.xlu0 %1023  ;;  %v1919_v44 = vsel %vm709_vm3, %v1917_v32, %v1918_v35 }
 0x200   : > { %v1030_v13 = vadd.f32 %v1026_v46, %v1009_v49  ;;  %v1029_v16 = vadd.f32 %v1024_v53, %v1008_v57  ;;  %v1222_v46 = vrot.slane %v4532_v38, 3  ;;  %v1176_v53 = vmul.f32 %v4459_v24, %v1174_v25 }
 0x201   : > { %1861 = vrot.lane.b32.xlu1 %v1856_v34, %s5303_s15  ;;  %1880 = vrot.lane.b32.xlu0 %v1877_v23, %s5303_s15  ;;  %v1938_v34 = vrot.slane %v1932_v62, 4  ;;  %v1183_v23 = vmul.f32 %v4207_v33, %v4441_v5  ;;  %v1921_v49 = vsel %vm709_vm3, %v1918_v35, %v1920_v30  ;;  %v1941_v25 = vrot.slane %v1934_v59, 4 }
 0x202   : > { %v1044_v6 = vadd.f32 %v4310_v27, %v1030_v13  ;;  %v1043_v41 = vadd.f32 %v4312_v15, %v1029_v16  ;;  %v1966_v27 = vstv %s4495_s11  ;;  %v4561_v15 = vsel %vm691_vm6, %v1204_v36, %v1205_v37  ;;  %s3042_s11 = sld [smem:[#allocation11 + $0x191]] }
 0x203   : > { %v1061_v21 = vpop.permute.xlu1 %1060  ;;  %v1059_v52 = vpop.permute.xlu0 %1058  ;;  %v1940_v24 = vsel %vm727_vm4, %v1938_v34, %v1939_v58  ;;  %v1952_v5 = vstv %s4524_s9  ;;  %v1967_v54 = vmul.f32 %v4382_v55, %v1966_v27  ;;  %v1968_v13 = vmul.f32 %v4384_v22, %v1966_v27  ;;  %s4751_s9 = sld [smem:[#allocation11 + $0x196]] }
 0x204   : > { %v1065_v47 = vadd.f32 %v1061_v21, %v1044_v6  ;;  %v1064_v17 = vadd.f32 %v1059_v52, %v1043_v41  ;;  %v1987_v16 = vstv %s4527_s16  ;;  %v1190_v50 = vrot.slane %v1183_v23, 1  ;;  %s4765_s16 = sld [smem:[#allocation11 + $0x188]] }
 0x205   : > { %1882 = vrot.lane.b32.xlu1 %v1879_v10, %s5303_s15  ;;  %1901 = vrot.lane.b32.xlu0 %v1898_v61, %s5303_s15  ;;  %v4584_v21 = vmul.f32 %v4207_v33, %v4481_v7  ;;  %v1130_v52 = vstv %s4540_s10  ;;  %v1953_v8 = vmul.f32 %v4382_v55, %v1952_v5  ;;  %v1969_v61 = vmul.f32 %v4389_v9, %v1966_v27  ;;  %s4776_s10 = sld [smem:[#allocation11 + $0x183]] }
 0x206   : > { %v1942_v7 = vsel %vm727_vm4, %v1939_v58, %v1941_v25  ;;  %v1973_v32 = vrot.slane %v1967_v54, 1  ;;  %v1988_v35 = vmul.f32 %v4382_v55, %v1987_v16  ;;  %v1989_v36 = vmul.f32 %v4384_v22, %v1987_v16 }
 0x207   : > { %v1082_v18 = vpop.permute.xlu1 %1081  ;;  %v1080_v20 = vpop.permute.xlu0 %1079  ;;  %v1974_v30 = vrot.slane %v1968_v13, 1  ;;  %v1207_v34 = vrot.slane %v1200_v19, 2  ;;  %v1134_v59 = vstv %s4571_s1  ;;  %v1954_v58 = vmul.f32 %v4384_v22, %v1952_v5  ;;  %s4796_s1 = sld [smem:[#allocation11 + $0x105]] }
 0x208   : > { %v1086_v26 = vadd.f32 %v1082_v18, %v1065_v47  ;;  %v1085_v1 = vadd.f32 %v1080_v20, %v1064_v17  ;;  %v2008_v18 = vstv %s4556_s19  ;;  %v1191_v20 = vsel %vm673_vm5, %v1188_v28, %v1190_v50  ;;  %s4782_s19 = sld [smem:[#allocation11 + $0x18d]] }
 0x209   : > { %1903 = vrot.lane.b32.xlu1 %v1900_v12, %s5303_s15  ;;  %1922 = vrot.lane.b32.xlu0 %v1919_v44, %s5303_s15  ;;  %v1976_v27 = vrot.slane %v1969_v61, 1  ;;  %v1990_v23 = vmul.f32 %v4389_v9, %v1987_v16  ;;  %v1994_v29 = vrot.slane %v1988_v35, 2  ;;  %v1995_v28 = vrot.slane %v1989_v36, 2 }
 0x20a   : > { %v1975_v5 = vsel %vm673_vm5, %v1973_v32, %v1974_v30  ;;  %v1195_v54 = vadd.f32 %v1191_v20, %v1176_v53  ;;  %v2029_v13 = vstv %s4589_s3  ;;  %s4800_s3 = sld [smem:[#allocation11 + $0x192]] }
 0x20b   : > { %v1103_v57 = vpop.permute.xlu1 %1102  ;;  %v1101_v3 = vpop.permute.xlu0 %1100  ;;  %v1997_v50 = vrot.slane %v1990_v23, 2  ;;  %v1996_v63 = vsel %vm691_vm6, %v1994_v29, %v1995_v28  ;;  %v2031_v61 = vmul.f32 %v4384_v22, %v2029_v13  ;;  %v4668_v23 = vld [vmem:[#allocation2 + $0x48] sm:$0xff]  ;;  %v4670_v29 = vld [vmem:[#allocation2 + $0x50] sm:$0xff] }
 0x20c   : > { %v1107_v10 = vadd.f32 %v1103_v57, %v1086_v26  ;;  %v1106_v62 = vadd.f32 %v1101_v3, %v1085_v1  ;;  %v4611_v57 = vmul.f32 %v4384_v22, %v2008_v18  ;;  %v1234_v3 = vmul.f32 %v4207_v33, %v4507_v2 }
 0x20d   : > { %1924 = vrot.lane.b32.xlu1 %v1921_v49, %s5303_s15  ;;  %1943 = vrot.lane.b32.xlu0 %v1940_v24, %s5303_s15  ;;  %v2009_v49 = vmul.f32 %v4382_v55, %v2008_v18  ;;  %v1208_v26 = vsel %vm691_vm6, %v1205_v37, %v1207_v34  ;;  %v1224_v1 = vrot.slane %v4584_v21, 3  ;;  %v1977_v2 = vsel %vm673_vm5, %v1974_v30, %v1976_v27 }
 0x20e   : > { %v2016_v21 = vrot.slane %v4611_v57, 3  ;;  %v1241_v32 = vrot.slane %v1234_v3, 4  ;;  %v1212_v35 = vadd.f32 %v1208_v26, %v1195_v54  ;;  %v2032_v30 = vmul.f32 %v4389_v9, %v2029_v13  ;;  %v4686_v26 = vld [vmem:[#allocation2 + $0x58] sm:$0xf] }
 0x20f   : > { %v1124_v0 = vpop.permute.xlu1 %1123  ;;  %v1122_v14 = vpop.permute.xlu0 %1121  ;;  %v2015_v37 = vrot.slane %v2009_v49, 3  ;;  %v1225_v36 = vsel %vm709_vm3, %v1222_v46, %v1224_v1  ;;  %v2037_v38 = vrot.slane %v2031_v61, 4  ;;  %v2264_v57 = vstv %s4633_s6  ;;  %s4827_s6 = sld [smem:[#allocation11 + $0x10f]] }
 0x210   : > { %v1128_v6 = vadd.f32 %v1124_v0, %v1107_v10  ;;  %v1127_v41 = vadd.f32 %v1122_v14, %v1106_v62  ;;  %v1211_v0 = vadd.f32 %v4561_v15, %v4548_v31  ;;  %v1223_v14 = vsel %vm709_vm3, %v1221_v60, %v1222_v46 }
 0x211   : > { %1945 = vrot.lane.b32.xlu1 %v1942_v7, %s5303_s15  ;;  %1957 = vrot.lane.b32.xlu0 %v1953_v8, %s3442_s23  ;;  %v2030_v8 = vmul.f32 %v4382_v55, %v2029_v13  ;;  %v1239_v7 = vrot.slane %v4544_v11, 4  ;;  %v1998_v60 = vsel %vm691_vm6, %v1995_v28, %v1997_v50  ;;  %v2017_v11 = vsel %vm709_vm3, %v2015_v37, %v2016_v21 }
 0x212   : > { %v1132_v12 = vmul.f32 %v1130_v52, %v1128_v6  ;;  %v1131_v44 = vmul.f32 %v1130_v52, %v1127_v41  ;;  %v2011_v52 = vmul.f32 %v4389_v9, %v2008_v18  ;;  %v1229_v48 = vadd.f32 %v1225_v36, %v1212_v35 }
 0x213   : > { %v4605_v47 = vpop.permute.xlu1 %1274  ;;  %v4607_v17 = vpop.permute.xlu0 %1276  ;;  %v2036_v34 = vrot.slane %v2030_v8, 4  ;;  %v1240_v46 = vsel %vm727_vm4, %v1238_v39, %v1239_v7  ;;  %v2299_v3 = vstv %s4635_s12  ;;  %v2265_v50 = vmul.f32 %v4668_v23, %v2264_v57  ;;  %s4849_s12 = sld [smem:[#allocation11 + $0x114]] }
 0x214   : > { %v1136_v24 = vadd.f32 %v1134_v59, %v1132_v12  ;;  %v1135_v25 = vadd.f32 %v1134_v59, %v1131_v44  ;;  %v2018_v41 = vrot.slane %v2011_v52, 3  ;;  %v2278_v59 = vstv %s4623_s4  ;;  %s4824_s4 = sld [smem:[#allocation11 + $0x100]] }
 0x215   : > { %1959 = vrot.lane.b32.xlu1 %v1954_v58, %s3442_s23  ;;  %1978 = vrot.lane.b32.xlu0 %v1975_v5, %s3442_s23  ;;  %v1228_v58 = vadd.f32 %v1223_v14, %v1211_v0  ;;  %v1242_v12 = vsel %vm727_vm4, %v1239_v7, %v1241_v32  ;;  %v2279_v5 = vmul.f32 %v4668_v23, %v2278_v59 }
 0x216   : > { %v1138_v16 = vadd.f32 3.0, %v1136_v24  ;;  %v1137_v33 = vadd.f32 3.0, %v1135_v25  ;;  %v2019_v49 = vsel %vm709_vm3, %v2016_v21, %v2018_v41  ;;  %v2280_v54 = vmul.f32 %v4670_v29, %v2278_v59 }
 0x217   : > { %v4626_v19 = vpop.permute.xlu1 %1295  ;;  %v4628_v53 = vpop.permute.xlu0 %1297  ;;  %v1245_v1 = vadd.f32 %v1240_v46, %v1228_v58  ;;  %v2281_v13 = vmul.f32 %v4686_v26, %v2278_v59  ;;  %v2301_v37 = vmul.f32 %v4670_v29, %v2299_v3  ;;  %v2285_v52 = vrot.slane %v2279_v5, 1 }
 0x218   : > { %v1140_v10 = vmax.f32 %v1138_v16, 0.0  ;;  %v1139_v62 = vmax.f32 %v1137_v33, 0.0  ;;  %v1246_v16 = vadd.f32 %v1242_v12, %v1229_v48  ;;  %v2266_v8 = vmul.f32 %v4670_v29, %v2264_v57 }
 0x219   : > { %1980 = vrot.lane.b32.xlu1 %v1977_v2, %s3442_s23  ;;  %1999 = vrot.lane.b32.xlu0 %v1996_v63, %s3442_s23  ;;  %v2300_v63 = vmul.f32 %v4668_v23, %v2299_v3  ;;  %v1259_v61 = vadd.f32 %v4323_v40, %v1245_v1  ;;  %v2288_v14 = vrot.slane %v2281_v13, 1  ;;  %v2302_v7 = vmul.f32 %v4686_v26, %v2299_v3 }
 0x21a   : > { %v1142_v6 = vmin.f32 %v1140_v10, 6.0  ;;  %v1141_v31 = vmin.f32 %v1139_v62, 6.0  ;;  %v2286_v10 = vrot.slane %v2280_v54, 1  ;;  %v2320_v62 = vstv %s4659_s20  ;;  %s4884_s20 = sld [smem:[#allocation11 + $0x197]] }
 0x21b   : > { %v4652_v15 = vpop.permute.xlu1 %1316  ;;  %v4654_v4 = vpop.permute.xlu0 %1318  ;;  %v1260_v0 = vadd.f32 %v4325_v43, %v1246_v16  ;;  %v2306_v36 = vrot.slane %v2300_v63, 2  ;;  %v2341_v43 = vstv %s4690_s21  ;;  %v2323_v58 = vmul.f32 %v4686_v26, %v2320_v62  ;;  %s4899_s21 = sld [smem:[#allocation13 + $0x1]] }
 0x21c   : > { %v1144_v18 = vmul.f32 %v1142_v6, %v1136_v24  ;;  %v1143_v20 = vmul.f32 %v1141_v31, %v1135_v25  ;;  %v2038_v24 = vsel %vm727_vm4, %v2036_v34, %v2037_v38  ;;  %v2039_v25 = vrot.slane %v2032_v30, 4 }
 0x21d   : > { %2001 = vrot.lane.b32.xlu1 %v1998_v60, %s3442_s23  ;;  %2020 = vrot.lane.b32.xlu0 %v2017_v11, %s3442_s23  ;;  %v2307_v6 = vrot.slane %v2301_v37, 2  ;;  %v2321_v31 = vmul.f32 %v4668_v23, %v2320_v62  ;;  %v2322_v60 = vmul.f32 %v4670_v29, %v2320_v62  ;;  %v1280_v11 = vadd.f32 %v4605_v47, %v1259_v61 }
 0x21e   : > { %v1146_v44 = vmul.f32 0.16666667, %v1144_v18  ;;  %v1145_v27 = vmul.f32 0.16666667, %v1143_v20  ;;  %v2040_v21 = vsel %vm727_vm4, %v2037_v38, %v2039_v25  ;;  %v1281_v40 = vadd.f32 %v4607_v17, %v1260_v0 }
 0x21f   : > { %v4672_v28 = vpop.permute.xlu1 %1337  ;;  %v4674_v39 = vpop.permute.xlu0 %1339  ;;  %v2287_v41 = vsel %vm673_vm5, %v2285_v52, %v2286_v10  ;;  %v1301_v30 = vadd.f32 %v4626_v19, %v1280_v11  ;;  %v2289_v20 = vsel %vm673_vm5, %v2286_v10, %v2288_v14  ;;  %v2309_v47 = vrot.slane %v2302_v7, 2 }
 0x220   : > { %2955 = vst.msk [vmem:[%s4258_s5 + $0x48] sm:$0xff] %vm1161_vm8, %v1146_v44  ;;  %2954 = vst.msk [vmem:[%s4258_s5 + $0x40] sm:$0xff] %vm1161_vm8, %v1145_v27  ;;  %v1302_v18 = vadd.f32 %v4628_v53, %v1281_v40  ;;  %v2308_v38 = vsel %vm691_vm6, %v2306_v36, %v2307_v6  ;;  %v2327_v46 = vrot.slane %v2321_v31, 3  ;;  %v2328_v59 = vrot.slane %v2322_v60, 3 }
 0x221   : > { %2022 = vrot.lane.b32.xlu1 %v2019_v49, %s3442_s23  ;;  %2041 = vrot.lane.b32.xlu0 %v2038_v24, %s3442_s23  ;;  %v1322_v19 = vadd.f32 %v4652_v15, %v1301_v30  ;;  %v2342_v12 = vmul.f32 %v4668_v23, %v2341_v43  ;;  %v2343_v44 = vmul.f32 %v4670_v29, %v2341_v43  ;;  %v2330_v57 = vrot.slane %v2323_v58, 3 }
 0x222   : > { %v1323_v53 = vadd.f32 %v4654_v4, %v1302_v18  ;;  %v2310_v4 = vsel %vm691_vm6, %v2307_v6, %v2309_v47  ;;  %v2344_v3 = vmul.f32 %v4686_v26, %v2341_v43  ;;  %v2329_v24 = vsel %vm709_vm3, %v2327_v46, %v2328_v59 }
 0x223   : > { %v4693_v33 = vpop.permute.xlu1 %1372  ;;  %v4695_v2 = vpop.permute.xlu0 %1374  ;;  %v1343_v27 = vadd.f32 %v4672_v28, %v1322_v19  ;;  %v2348_v25 = vrot.slane %v2342_v12, 4  ;;  %v2349_v5 = vrot.slane %v2343_v44, 4  ;;  %v2376_v54 = vstv %s4717_s18  ;;  %s4915_s18 = sld [smem:[#allocation14 + $0x1]] }
 0x224   : > { %v1344_v48 = vadd.f32 %v4674_v39, %v1323_v53  ;;  %v2362_v28 = vstv %s4722_s17  ;;  %v2397_v13 = vstv %s4727_s22  ;;  %v2351_v63 = vrot.slane %v2344_v3, 4  ;;  %s4942_s17 = sld [smem:[#allocation11 + $0x104]]  ;;  %s4948_s22 = sld [smem:[#allocation11 + $0x109]] }
 0x225   : > { %2043 = vrot.lane.b32.xlu1 %v2040_v21, %s3442_s23  ;;  %2269 = vrot.lane.b32.xlu0 %v2265_v50, %s5304_s2  ;;  %v1357_v39 = vadd.f32 %v4331_v42, %v1343_v27  ;;  %v2377_v37 = vmul.f32 %v4668_v23, %v2376_v54  ;;  %v2378_v21 = vmul.f32 %v4670_v29, %v2376_v54  ;;  %v2418_v52 = vstv %s3042_s11  ;;  %s4962_s11 = sld [smem:[#allocation11 + $0x184]] }
 0x226   : > { %v1358_v1 = vadd.f32 %v4333_v45, %v1344_v48  ;;  %v2331_v10 = vsel %vm709_vm3, %v2328_v59, %v2330_v57  ;;  %v2350_v62 = vsel %vm727_vm4, %v2348_v25, %v2349_v5  ;;  %v2363_v42 = vmul.f32 %v4668_v23, %v2362_v28 }
 0x227   : > { %v4708_v32 = vpop.permute.xlu1 %1393  ;;  %v4710_v35 = vpop.permute.xlu0 %1395  ;;  %v2379_v45 = vmul.f32 %v4686_v26, %v2376_v54  ;;  %v2399_v61 = vmul.f32 %v4670_v29, %v2397_v13  ;;  %v2400_v0 = vmul.f32 %v4686_v26, %v2397_v13  ;;  %v1378_v14 = vadd.f32 %v4693_v33, %v1357_v39 }
 0x228   : > { %v1379_v7 = vadd.f32 %v4695_v2, %v1358_v1  ;;  %v2419_v36 = vmul.f32 %v4668_v23, %v2418_v52  ;;  %v2420_v6 = vmul.f32 %v4670_v29, %v2418_v52  ;;  %v2352_v11 = vsel %vm727_vm4, %v2349_v5, %v2351_v63 }
 0x229   : > { %2271 = vrot.lane.b32.xlu1 %v2266_v8, %s5304_s2  ;;  %2290 = vrot.lane.b32.xlu0 %v2287_v41, %s5304_s2  ;;  %v2398_v8 = vmul.f32 %v4668_v23, %v2397_v13  ;;  %v2364_v40 = vmul.f32 %v4670_v29, %v2362_v28  ;;  %v2383_v41 = vrot.slane %v2377_v37, 1  ;;  %v2384_v43 = vrot.slane %v2378_v21, 1 }
 0x22a   : > { %v1399_v33 = vadd.f32 %v4708_v32, %v1378_v14  ;;  %v1400_v2 = vadd.f32 %v4710_v35, %v1379_v7  ;;  %v2421_v30 = vmul.f32 %v4686_v26, %v2418_v52  ;;  %v2439_v18 = vstv %s4751_s9  ;;  %s4964_s9 = sld [smem:[#allocation11 + $0x189]] }
 0x22b   : > { %v4729_v17 = vpop.permute.xlu1 %1414  ;;  %v4731_v34 = vpop.permute.xlu0 %1416  ;;  %v2404_v47 = vrot.slane %v2398_v8, 2  ;;  %v2407_v46 = vrot.slane %v2400_v0, 2  ;;  %v2425_v58 = vrot.slane %v2419_v36, 3  ;;  %v2426_v35 = vrot.slane %v2420_v6, 3 }
 0x22c   : > { %v1420_v59 = vadd.f32 %v4729_v17, %v1399_v33  ;;  %v1421_v32 = vadd.f32 %v4731_v34, %v1400_v2  ;;  %v2440_v12 = vmul.f32 %v4668_v23, %v2439_v18  ;;  %v2441_v44 = vmul.f32 %v4670_v29, %v2439_v18 }
 0x22d   : > { %2292 = vrot.lane.b32.xlu1 %v2289_v20, %s5304_s2  ;;  %2311 = vrot.lane.b32.xlu0 %v2308_v38, %s5304_s2  ;;  %v2386_v20 = vrot.slane %v2379_v45, 1  ;;  %v2405_v38 = vrot.slane %v2399_v61, 2  ;;  %v2442_v27 = vmul.f32 %v4686_v26, %v2439_v18  ;;  %v2474_v48 = vstv %s4765_s16  ;;  %s4983_s16 = sld [smem:[#allocation11 + $0x10e]] }
 0x22e   : > { %v2428_v57 = vrot.slane %v2421_v30, 3  ;;  %v2460_v25 = vstv %s4776_s10  ;;  %v2475_v54 = vmul.f32 %v4668_v23, %v2474_v48  ;;  %v2495_v28 = vstv %s4782_s19  ;;  %s4994_s10 = sld [smem:[#allocation11 + $0x18e]]  ;;  %s5018_s19 = sld [smem:[#allocation11 + $0x193]] }
 0x22f   : > { %v4743_v49 = vpop.permute.xlu1 %1435  ;;  %v4745_v15 = vpop.permute.xlu0 %1437  ;;  %v2387_v3 = vsel %vm673_vm5, %v2384_v43, %v2386_v20  ;;  %v2408_v5 = vsel %vm691_vm6, %v2405_v38, %v2407_v46  ;;  %v2427_v1 = vsel %vm709_vm3, %v2425_v58, %v2426_v35  ;;  %v2446_v13 = vrot.slane %v2440_v12, 4 }
 0x230   : > { %v1441_v17 = vadd.f32 %v4743_v49, %v1420_v59  ;;  %v1442_v34 = vadd.f32 %v4745_v15, %v1421_v32  ;;  %v2476_v49 = vmul.f32 %v4670_v29, %v2474_v48  ;;  %v2447_v63 = vrot.slane %v2441_v44, 4 }
 0x231   : > { %2313 = vrot.lane.b32.xlu1 %v2310_v4, %s5304_s2  ;;  %2332 = vrot.lane.b32.xlu0 %v2329_v24, %s5304_s2  ;;  %v2385_v4 = vsel %vm673_vm5, %v2383_v41, %v2384_v43  ;;  %v2406_v24 = vsel %vm691_vm6, %v2404_v47, %v2405_v38  ;;  %v2449_v37 = vrot.slane %v2442_v27, 4  ;;  %v2496_v45 = vmul.f32 %v4668_v23, %v2495_v28 }
 0x232   : > { %v1455_v21 = vadd.f32 %v4343_v56, %v1441_v17  ;;  %v1456_v52 = vadd.f32 %v4345_v51, %v1442_v34  ;;  %v4840_v8 = vmul.f32 %v4670_v29, %v2495_v28  ;;  %v1688_v56 = vstv %s4796_s1  ;;  %s5028_s1 = sld [smem:[#allocation11 + $0x118]] }
 0x233   : > { %v4759_v16 = vpop.permute.xlu1 %1470  ;;  %v4761_v50 = vpop.permute.xlu0 %1472  ;;  %v4844_v51 = vmul.f32 %v4670_v29, %v2460_v25  ;;  %v2481_v61 = vrot.slane %v2475_v54, 1  ;;  %v2482_v0 = vrot.slane %v2476_v49, 1  ;;  %v4847_v14 = vstv %s4800_s3  ;;  %s3053_s3 = sld [smem:[#allocation11 + $0x198]] }
 0x234   : > { %v2448_v6 = vsel %vm727_vm4, %v2446_v13, %v2447_v63  ;;  %v1476_v43 = vadd.f32 %v4759_v16, %v1455_v21  ;;  %v1477_v33 = vadd.f32 %v4761_v50, %v1456_v52  ;;  %v1689_v2 = vmul.f32 %v4382_v55, %v1688_v56  ;;  %v4905_v13 = vld [vmem:[#allocation2 + $0x38] sm:$0xff] }
 0x235   : > { %2334 = vrot.lane.b32.xlu1 %v2331_v10, %s5304_s2  ;;  %2353 = vrot.lane.b32.xlu0 %v2350_v62, %s5304_s2  ;;  %v2429_v10 = vsel %vm709_vm3, %v2426_v35, %v2428_v57  ;;  %v4833_v62 = vmul.f32 %v4668_v23, %v2460_v25  ;;  %v4859_v30 = vmul.f32 %v4384_v22, %v1688_v56  ;;  %v2502_v20 = vrot.slane %v2496_v45, 2 }
 0x236   : > { %v2503_v47 = vrot.slane %v4840_v8, 2  ;;  %v4866_v16 = vmul.f32 %v4668_v23, %v4847_v14  ;;  %v2483_v46 = vsel %vm673_vm5, %v2481_v61, %v2482_v0  ;;  %v4873_v59 = vmul.f32 %v4670_v29, %v4847_v14 }
 0x237   : > { %v4784_v31 = vpop.permute.xlu1 %1491  ;;  %v4786_v60 = vpop.permute.xlu0 %1493  ;;  %v1682_v35 = vstv %s4824_s4  ;;  %v1722_v27 = vstv %s4827_s6  ;;  %v1696_v17 = vrot.slane %v4859_v30, 1  ;;  %s3032_s4 = sld [smem:[#allocation11 + $0x18f]]  ;;  %s3033_s6 = sld [smem:[#allocation11 + $0x194]] }
 0x238   : > { %v1497_v50 = vadd.f32 %v4784_v31, %v1476_v43  ;;  %v1498_v38 = vadd.f32 %v4786_v60, %v1477_v33  ;;  %v2524_v21 = vrot.slane %v4873_v59, 3  ;;  %v2537_v43 = vstv %s4884_s20  ;;  %s5172_s20 = sld [smem:[#allocation14 + $0x2]] }
 0x239   : > { %2355 = vrot.lane.b32.xlu1 %v2352_v11, %s5304_s2  ;;  %2367 = vrot.lane.b32.xlu0 %v2363_v42, %s5303_s15  ;;  %s4810_s2 = sld [smem:[#allocation11 + $0x10a]]  ;;  %v2477_v42 = vmul.f32 %v4686_v26, %v2474_v48  ;;  %v2450_v11 = vsel %vm727_vm4, %v2447_v63, %v2449_v37  ;;  %v1695_v48 = vrot.slane %v1689_v2, 1  ;;  %v1684_v33 = vmul.f32 %v4905_v13, %v1682_v35 }
 0x23a   : > { %v2519_v2 = vmul.f32 %v4686_v26, %v4847_v14  ;;  %v2539_v14 = vmul.f32 %v4670_v29, %v2537_v43 }
 0x23b   : > { %v4802_v19 = vpop.permute.xlu1 %1512  ;;  %v4804_v53 = vpop.permute.xlu0 %1514  ;;  %v2484_v18 = vrot.slane %v2477_v42, 1  ;;  %v1697_v63 = vsel %vm673_vm5, %v1695_v48, %v1696_v17 }
 0x23c   : > { %v1518_v31 = vadd.f32 %v4802_v19, %v1497_v50  ;;  %v1519_v60 = vadd.f32 %v4804_v53, %v1498_v38  ;;  %v1691_v19 = vmul.f32 %v4389_v9, %v1688_v56  ;;  %v4908_v9 = vmul.f32 %v4905_v13, %v1722_v27 }
 0x23d   : > { %2369 = vrot.lane.b32.xlu1 %v2364_v40, %s5303_s15  ;;  %2388 = vrot.lane.b32.xlu0 %v2385_v4, %s5303_s15  ;;  %v2498_v40 = vmul.f32 %v4686_v26, %v2495_v28  ;;  %v4889_v34 = vsel %vm673_vm5, %v2482_v0, %v2484_v18  ;;  %v4902_v28 = vld [vmem:[#allocation2 + $0x30] sm:$0xff] }
 0x23e   : > { %v1698_v52 = vrot.slane %v1691_v19, 1 }
 0x23f   : > { %v1534_v15 = vpop.permute.xlu1 %1533  ;;  %v1536_v39 = vpop.permute.xlu0 %1535  ;;  %v1705_v41 = vstv %s4810_s2  ;;  %v2505_v4 = vrot.slane %v2498_v40, 2  ;;  %s5115_s2 = sld [smem:[#allocation11 + $0x180]] }
 0x240   : > { %v1706_v12 = vmul.f32 %v4382_v55, %v1705_v41  ;;  %v4878_v44 = vmul.f32 %v4384_v22, %v1705_v41  ;;  %v4892_v22 = vsel %vm691_vm6, %v2502_v20, %v2503_v47  ;;  %v1539_v57 = vadd.f32 %v1534_v15, %v1518_v31 }
 0x241   : > { %2390 = vrot.lane.b32.xlu1 %v2387_v3, %s5303_s15  ;;  %2409 = vrot.lane.b32.xlu0 %v2406_v24, %s5303_s15  ;;  %v1540_v53 = vadd.f32 %v1536_v39, %v1519_v60  ;;  %v1683_v3 = vmul.f32 %v4382_v55, %v1682_v35  ;;  %v4897_v24 = vstv %s4849_s12  ;;  %v2523_v39 = vrot.slane %v4866_v16, 3  ;;  %s5169_s12 = sld [smem:[#allocation13 + $0x2]] }
 0x242   : > { %v1712_v54 = vrot.slane %v1706_v12, 2  ;;  %v1713_v49 = vrot.slane %v4878_v44, 2  ;;  %v4918_v37 = vsel %vm691_vm6, %v2503_v47, %v2505_v4  ;;  %v1740_v56 = vmul.f32 %v4902_v28, %v4897_v24 }
 0x243   : > { %v1548_v7 = vpop.permute.xlu1 %1547  ;;  %v1550_v36 = vpop.permute.xlu0 %1549  ;;  %v1699_v30 = vsel %vm673_vm5, %v1696_v17, %v1698_v52  ;;  %v2538_v35 = vmul.f32 %v4668_v23, %v2537_v43  ;;  %v1644_v60 = vstv %s4915_s18  ;;  %s5177_s18 = sld [smem:[#allocation14 + $0x3]] }
 0x244   : > { %v1553_v15 = vadd.f32 %v1548_v7, %v1539_v57  ;;  %v1554_v55 = vadd.f32 %v1550_v36, %v1540_v53  ;;  %v1702_v7 = vadd.f32 %v1697_v63, %v1683_v3  ;;  %v1714_v36 = vsel %vm691_vm6, %v1712_v54, %v1713_v49 }
 0x245   : > { %2411 = vrot.lane.b32.xlu1 %v2408_v5, %s5303_s15  ;;  %2430 = vrot.lane.b32.xlu0 %v2427_v1, %s5303_s15  ;;  %v1723_v1 = vmul.f32 %v4902_v28, %v1722_v27  ;;  %v1746_v50 = vrot.slane %v1740_v56, 4  ;;  %v1703_v31 = vadd.f32 %v1699_v30, %v1684_v33  ;;  %v2525_v53 = vsel %vm709_vm3, %v2523_v39, %v2524_v21 }
 0x246   : > { %v2540_v3 = vmul.f32 %v4686_v26, %v2537_v43  ;;  %v2544_v54 = vrot.slane %v2538_v35, 4  ;;  %v2558_v30 = vstv %s4962_s11 }
 0x247   : > { %v1569_v32 = vpop.permute.xlu1 %1568  ;;  %v1571_v58 = vpop.permute.xlu0 %1570 }
 0x248   : > { %v1574_v45 = vadd.f32 %v1569_v32, %v1553_v15  ;;  %v1575_v8 = vadd.f32 %v1571_v58, %v1554_v55  ;;  %v1640_v32 = vstv %s4899_s21  ;;  %s5174_s21 = sld [smem:[#allocation13 + $0x3]] }
 0x249   : > { %2432 = vrot.lane.b32.xlu1 %v2429_v10, %s5303_s15  ;;  %2451 = vrot.lane.b32.xlu0 %v2448_v6, %s5303_s15  ;;  %v4921_v10 = vld [vmem:[#allocation2 + $0x40] sm:$0xf]  ;;  %v1729_v6 = vrot.slane %v1723_v1, 3 }
 0x24a   : > { %v1708_v42 = vmul.f32 %v4921_v10, %v1705_v41  ;;  %v1725_v20 = vmul.f32 %v4921_v10, %v1722_v27  ;;  %v1742_v4 = vmul.f32 %v4921_v10, %v4897_v24 }
 0x24b   : > { %v1590_v25 = vpop.permute.xlu1 %1589  ;;  %v1592_v5 = vpop.permute.xlu0 %1591 }
 0x24c   : > { %v1595_v40 = vadd.f32 %v1590_v25, %v1574_v45  ;;  %v1596_v41 = vadd.f32 %v1592_v5, %v1575_v8  ;;  %v1715_v18 = vrot.slane %v1708_v42, 2  ;;  %v1732_v17 = vrot.slane %v1725_v20, 3 }
 0x24d   : > { %2453 = vrot.lane.b32.xlu1 %v2450_v11, %s5303_s15  ;;  %2465 = vrot.lane.b32.xlu0 %v4833_v62, %s3442_s23  ;;  %v4928_v62 = vmul.f32 %v4905_v13, %v4897_v24  ;;  %v1730_v11 = vrot.slane %v4908_v9, 3  ;;  %v2526_v5 = vrot.slane %v2519_v2, 3  ;;  %v1749_v39 = vrot.slane %v1742_v4, 4 }
 0x24e   : > { %v1716_v48 = vsel %vm691_vm6, %v1713_v49, %v1715_v18  ;;  %v2545_v49 = vrot.slane %v2539_v14, 4  ;;  %v2547_v42 = vrot.slane %v2540_v3, 4  ;;  %v2050_v45 = vstv %s4942_s17  ;;  %s3067_s17 = sshll.u32 %s3419_s27, 11  ;;  %s2693_s27 = scalar_lea.sflag [#allocation5], %s3680_s30 }
 0x24f   : > { %v1611_v61 = vpop.permute.xlu1 %1610  ;;  %v1613_v0 = vpop.permute.xlu0 %1612  ;;  %v1747_v38 = vrot.slane %v4928_v62, 4  ;;  %v1731_v27 = vsel %vm709_vm3, %v1729_v6, %v1730_v11  ;;  %v1720_v15 = vadd.f32 %v1716_v48, %v1703_v31  ;;  %v1733_v55 = vsel %vm709_vm3, %v1730_v11, %v1732_v17 }
 0x250   : > { %v1616_v47 = vadd.f32 %v1611_v61, %v1595_v40  ;;  %v1617_v16 = vadd.f32 %v1613_v0, %v1596_v41  ;;  %v2527_v61 = vsel %vm709_vm3, %v2524_v21, %v2526_v5  ;;  %v2546_v0 = vsel %vm727_vm4, %v2544_v54, %v2545_v49 }
 0x251   : > { %2467 = vrot.lane.b32.xlu1 %v4844_v51, %s3442_s23  ;;  %2486 = vrot.lane.b32.xlu0 %v2483_v46, %s3442_s23  ;;  %v1719_v46 = vadd.f32 %v1714_v36, %v1702_v7  ;;  %v1748_v9 = vsel %vm727_vm4, %v1746_v50, %v1747_v38  ;;  %v1737_v36 = vadd.f32 %v1733_v55, %v1720_v15  ;;  %v2064_v6 = vstv %s4948_s22  ;;  %s2708_s22 = sshll.u32 %s4258_s5, 4  ;;  %s5208_s22 = int_to_ptr.vmem [resolvable:$true] %s2708_s22 }
 0x252   : > { %v1750_v59 = vsel %vm727_vm4, %v1747_v38, %v1749_v39  ;;  %v2051_v21 = vmul.f32 %v4902_v28, %v2050_v45  ;;  %v2548_v43 = vsel %vm727_vm4, %v2545_v49, %v2547_v42  ;;  %v2065_v18 = vmul.f32 %v4902_v28, %v2064_v6 }
 0x253   : > { %v1632_v51 = vpop.permute.xlu1 %1631  ;;  %v1634_v58 = vpop.permute.xlu0 %1633  ;;  %v1736_v25 = vadd.f32 %v1731_v27, %v1719_v46  ;;  %v2066_v20 = vmul.f32 %v4905_v13, %v2064_v6  ;;  %v2067_v14 = vmul.f32 %v4921_v10, %v2064_v6  ;;  %v2559_v27 = vmul.f32 %v4668_v23, %v2558_v30 }
 0x254   : > { %v1637_v12 = vadd.f32 %v1632_v51, %v1616_v47  ;;  %v1638_v44 = vadd.f32 %v1634_v58, %v1617_v16  ;;  %v2572_v47 = vstv %s4964_s9  ;;  %v2052_v51 = vmul.f32 %v4905_v13, %v2050_v45 }
 0x255   : > { %2488 = vrot.lane.b32.xlu1 %v4889_v34, %s3442_s23  ;;  %2507 = vrot.lane.b32.xlu0 %v4892_v22, %s3442_s23  ;;  %v1753_v56 = vadd.f32 %v1748_v9, %v1736_v25  ;;  %v2071_v31 = vrot.slane %v2065_v18, 1  ;;  %v2574_v48 = vmul.f32 %v4670_v29, %v2572_v47  ;;  %v2074_v3 = vrot.slane %v2067_v14, 1 }
 0x256   : > { %v1641_v19 = vmul.f32 %v1640_v32, %v1637_v12  ;;  %v1642_v57 = vmul.f32 %v1640_v32, %v1638_v44  ;;  %v1754_v32 = vadd.f32 %v1750_v59, %v1737_v36  ;;  %v2593_v55 = vstv %s4994_s10  ;;  %s3329_s10 = scalar_lea.vmem %s5208_s22, 2048 }
 0x257   : > { %v1661_v34 = vpop.permute.xlu1 %1660  ;;  %v1663_v22 = vpop.permute.xlu0 %1662  ;;  %v2580_v54 = vrot.slane %v2574_v48, 1  ;;  %p3330_p7 = scmp.ne.s32.totalorder %s5208_s22, %s3329_s10 }
 0x258   : > { %v1645_v24 = vadd.f32 %v1644_v60, %v1641_v19  ;;  %v1646_v1 = vadd.f32 %v1644_v60, %v1642_v57  ;;  %2986 = vst.msk [vmem:[%s4258_s5 + $0xe] sm:$0xfc] %vm1159_vm7, %v1661_v34  ;;  %v2573_v60 = vmul.f32 %v4668_v23, %v2572_v47  ;;  %v2072_v19 = vrot.slane %v2066_v20, 1 }
 0x259   : > { %2987 = vst.msk [vmem:[%s4258_s5 + $0x16] sm:$0xff] %vm1161_vm8, %v1663_v22  ;;  %2509 = vrot.lane.b32.xlu1 %v4918_v37, %s3442_s23  ;;  %2528 = vrot.lane.b32.xlu0 %v2525_v53, %s3442_s23  ;;  %v2085_v57 = vstv %s4983_s16  ;;  %v2560_v53 = vmul.f32 %v4670_v29, %v2558_v30  ;;  %v2575_v34 = vmul.f32 %v4686_v26, %v2572_v47  ;;  %s5206_s16 = scalar_lea.hbm %s5266_s7, %s3067_s17  ;;  %p3331_p13 = pnand %p3330_p7, %p5305_p11 }
 0x25a   : > { %v1647_v63 = vadd.f32 3.0, %v1645_v24  ;;  %v1648_v52 = vadd.f32 3.0, %v1646_v1  ;;  %v2579_v5 = vrot.slane %v2573_v60, 1  ;;  %v2086_v49 = vmul.f32 %v4902_v28, %v2085_v57 }
 0x25b   : > { %v1665_v8 = vpop.permute.xlu1 %1664  ;;  %v1762_v62 = vpop.permute.xlu0 %1761  ;;  %v2073_v15 = vsel %vm673_vm5, %v2071_v31, %v2072_v19  ;;  %v2075_v39 = vsel %vm673_vm5, %v2072_v19, %v2074_v3  ;;  %v2614_v47 = vstv %s5018_s19  ;;  %v2127_v31 = vstv %s5028_s1  ;;  %p3332_p3 = pneg %p3331_p13 }
 0x25c   : > { %v1649_v37 = vmax.f32 %v1647_v63, 0.0  ;;  %v1650_v7 = vmax.f32 %v1648_v52, 0.0  ;;  %2988 = vst.msk [vmem:[%s4258_s5 + $0x1e] sm:$0x3] %vm1163_vm9, %v1665_v8  ;;  %v1767_v41 = vadd.f32 %v1762_v62, %v1753_v56  ;;  %v2582_v63 = vrot.slane %v2575_v34, 1 }
 0x25d   : > { %2530 = vrot.lane.b32.xlu1 %v2527_v61, %s3442_s23  ;;  %2549 = vrot.lane.b32.xlu0 %v2546_v0, %s3442_s23  ;;  %v2088_v52 = vmul.f32 %v4921_v10, %v2085_v57  ;;  %v2092_v8 = vrot.slane %v2086_v49, 2  ;;  %v2594_v62 = vmul.f32 %v4668_v23, %v2593_v55  ;;  %v2595_v61 = vmul.f32 %v4670_v29, %v2593_v55 }
 0x25e   : > { %v1651_v11 = vmin.f32 %v1649_v37, 6.0  ;;  %v1652_v40 = vmin.f32 %v1650_v7, 6.0  ;;  %v2581_v7 = vsel %vm673_vm5, %v2579_v5, %v2580_v54  ;;  %v2583_v6 = vsel %vm673_vm5, %v2580_v54, %v2582_v63 }
 0x25f   : > { %v1764_v33 = vpop.permute.xlu1 %1763  ;;  %v1783_v2 = vpop.permute.xlu0 %1782  ;;  %v2095_v59 = vrot.slane %v2088_v52, 2  ;;  %v2616_v14 = vmul.f32 %v4670_v29, %v2614_v47  ;;  %v2128_v3 = vmul.f32 %v4902_v28, %v2127_v31  ;;  %v2635_v34 = vstv %s3053_s3 }
 0x260   : > { %v1653_v16 = vmul.f32 %v1651_v11, %v1645_v24  ;;  %v1654_v50 = vmul.f32 %v1652_v40, %v1646_v1  ;;  %v1788_v38 = vadd.f32 %v1783_v2, %v1767_v41  ;;  %v1768_v35 = vadd.f32 %v1764_v33, %v1754_v32 }
 0x261   : > { %2551 = vrot.lane.b32.xlu1 %v2548_v43, %s3442_s23  ;;  %2055 = vrot.lane.b32.xlu0 %v2051_v21, %s3443_s0  ;;  %s5008_s23 = sld [smem:[#allocation11 + $0x113]]  ;;  %v2087_v24 = vmul.f32 %v4905_v13, %v2085_v57  ;;  %v2596_v21 = vmul.f32 %v4686_v26, %v2593_v55  ;;  %v2600_v43 = vrot.slane %v2594_v62, 2  ;;  %v2601_v33 = vrot.slane %v2595_v61, 2 }
 0x262   : > { %v1655_v58 = vmul.f32 0.16666667, %v1653_v16  ;;  %v1656_v46 = vmul.f32 0.16666667, %v1654_v50  ;;  %v2129_v54 = vmul.f32 %v4905_v13, %v2127_v31  ;;  %v2134_v55 = vrot.slane %v2128_v3, 4 }
 0x263   : > { %v1785_v12 = vpop.permute.xlu1 %1784  ;;  %v1804_v44 = vpop.permute.xlu0 %1803  ;;  %v2093_v56 = vrot.slane %v2087_v24, 2  ;;  %v2603_v50 = vrot.slane %v2596_v21, 2  ;;  %v2636_v63 = vmul.f32 %v4668_v23, %v2635_v34 }
 0x264   : > { %2989 = vst.msk [vmem:[%s4258_s5 + $0x50] sm:$0xff] %vm1161_vm8, %v1655_v58  ;;  %2990 = vst.msk [vmem:[%s4258_s5 + $0x58] sm:$0xff] %vm1161_vm8, %v1656_v46  ;;  %v1789_v17 = vadd.f32 %v1785_v12, %v1768_v35  ;;  %v1809_v4 = vadd.f32 %v1804_v44, %v1788_v38  ;;  %v2602_v58 = vsel %vm691_vm6, %v2600_v43, %v2601_v33 }
 0x265   : > { %2057 = vrot.lane.b32.xlu1 %v2052_v51, %s3443_s0  ;;  %2563 = vrot.lane.b32.xlu0 %v2559_v27, %s3443_s0  ;;  %v2094_v41 = vsel %vm691_vm6, %v2092_v8, %v2093_v56  ;;  %v2096_v16 = vsel %vm691_vm6, %v2093_v56, %v2095_v59  ;;  %v2615_v35 = vmul.f32 %v4668_v23, %v2614_v47 }
 0x266   : > { %v2604_v60 = vsel %vm691_vm6, %v2601_v33, %v2603_v50  ;;  %v2637_v8 = vmul.f32 %v4670_v29, %v2635_v34 }
 0x267   : > { %v1806_v22 = vpop.permute.xlu1 %1805  ;;  %v1825_v25 = vpop.permute.xlu0 %1824  ;;  %v2106_v36 = vstv %s5008_s23  ;;  %v2621_v57 = vrot.slane %v2615_v35, 3  ;;  %s3444_s23 = smov [#allocation16]  }
 0x268   : > { %v1810_v1 = vadd.f32 %v1806_v22, %v1789_v17  ;;  %v1830_v9 = vadd.f32 %v1825_v25, %v1809_v4  ;;  %v2107_v2 = vmul.f32 %v4902_v28, %v2106_v36  ;;  %v2108_v20 = vmul.f32 %v4905_v13, %v2106_v36  ;;  %s3333_s19 = sshll.u32 %s3444_s23, 4  ;;  %s3334_s19 = int_to_ptr.vmem [resolvable:$false] %s3333_s19 }
 0x269   : > { %2565 = vrot.lane.b32.xlu1 %v2560_v53, %s3443_s0  ;;  %2076 = vrot.lane.b32.xlu0 %v2073_v15, %s3443_s0  ;;  %v2109_v32 = vmul.f32 %v4921_v10, %v2106_v36  ;;  %v2617_v17 = vmul.f32 %v4686_v26, %v2614_v47  ;;  %v2622_v53 = vrot.slane %v2616_v14, 3  ;;  %v2643_v21 = vrot.slane %v2637_v8, 4  ;;  %s3335_s1 = scalar_lea.vmem %s3334_s19, 4096  ;;  %p3336_p5 = scmp.lt.s32.totalorder %s5208_s22, %s3334_s19 }
 0x26a   : > { %v2113_v46 = vrot.slane %v2107_v2, 3  ;;  %v2114_v27 = vrot.slane %v2108_v20, 3  ;;  %p3337_p10 = scmp.lt.s32.totalorder %s3335_s1, %s3329_s10 }
 0x26b   : > { %v1827_v42 = vpop.permute.xlu1 %1826  ;;  %v1846_v45 = vpop.permute.xlu0 %1845  ;;  %v2116_v48 = vrot.slane %v2109_v32, 3  ;;  %v2624_v24 = vrot.slane %v2617_v17, 3  ;;  %v2623_v15 = vsel %vm709_vm3, %v2621_v57, %v2622_v53 }
 0x26c   : > { %v1831_v0 = vadd.f32 %v1827_v42, %v1810_v1  ;;  %v1851_v37 = vadd.f32 %v1846_v45, %v1830_v9  ;;  %v2115_v5 = vsel %vm709_vm3, %v2113_v46, %v2114_v27  ;;  %v2135_v45 = vrot.slane %v2129_v54, 4  ;;  %p3338_p12 = por %p3337_p10, %p3336_p5 }
 0x26d   : > { %2078 = vrot.lane.b32.xlu1 %v2075_v39, %s3443_s0  ;;  %2584 = vrot.lane.b32.xlu0 %v2581_v7, %s3443_s0  ;;  %v2117_v49 = vsel %vm709_vm3, %v2114_v27, %v2116_v48  ;;  %v2130_v39 = vmul.f32 %v4921_v10, %v2127_v31  ;;  %v2625_v61 = vsel %vm709_vm3, %v2622_v53, %v2624_v24 }
 0x26e   : > { %v2638_v7 = vmul.f32 %v4686_v26, %v2635_v34  ;;  %v2136_v59 = vsel %vm727_vm4, %v2134_v55, %v2135_v45  ;;  %p3339_p8 = pnand %p3338_p12, %p3332_p3 }
 0x26f   : > { %v1848_v11 = vpop.permute.xlu1 %1847  ;;  %v1860_v40 = vpop.permute.xlu0 %1859 }
 0x270   : > { %v1852_v30 = vadd.f32 %v1848_v11, %v1831_v0  ;;  %v1865_v18 = vadd.f32 %v1860_v40, %v1851_v37  ;;  %v2137_v0 = vrot.slane %v2130_v39, 4  ;;  %v2642_v37 = vrot.slane %v2636_v63, 4 }
 0x271   : > { %2586 = vrot.lane.b32.xlu1 %v2583_v6, %s3443_s0  ;;  %2097 = vrot.lane.b32.xlu0 %v2094_v41, %s3443_s0  ;;  %v2190_v63 = vstv %s5115_s2 }
 0x272   : > { %v2138_v41 = vsel %vm727_vm4, %v2135_v45, %v2137_v0  ;;  %v2644_v2 = vsel %vm727_vm4, %v2642_v37, %v2643_v21  ;;  %v3208_v0 = vld [vmem:[#allocation2 + $0x58] sm:$0xf] }
 0x273   : > { %v1862_v38 = vpop.permute.xlu1 %1861  ;;  %v1881_v51 = vpop.permute.xlu0 %1880 }
 0x274   : > { %v1866_v12 = vadd.f32 %v1862_v38, %v1852_v30  ;;  %v1886_v44 = vadd.f32 %v1881_v51, %v1865_v18  ;;  %v2645_v30 = vrot.slane %v2638_v7, 4 }
 0x275   : > { %2099 = vrot.lane.b32.xlu1 %v2096_v16, %s3443_s0  ;;  %2605 = vrot.lane.b32.xlu0 %v2602_v58, %s3443_s0 }
 0x276   : > { %v2646_v50 = vsel %vm727_vm4, %v2643_v21, %v2645_v30 }
 0x277   : > { %v1883_v4 = vpop.permute.xlu1 %1882  ;;  %v1902_v19 = vpop.permute.xlu0 %1901 }
 0x278   : > { %v1887_v22 = vadd.f32 %v1883_v4, %v1866_v12  ;;  %v1907_v25 = vadd.f32 %v1902_v19, %v1886_v44 }
 0x279   : > { %2607 = vrot.lane.b32.xlu1 %v2604_v60, %s3443_s0  ;;  %2118 = vrot.lane.b32.xlu0 %v2115_v5, %s3443_s0 }
 0x27b   : > { %v1904_v1 = vpop.permute.xlu1 %1903  ;;  %v1923_v9 = vpop.permute.xlu0 %1922 }
 0x27c   : > { %v1908_v52 = vadd.f32 %v1904_v1, %v1887_v22  ;;  %v1928_v42 = vadd.f32 %v1923_v9, %v1907_v25  ;;  %v3206_v1 = vld [vmem:[#allocation2 + $0x48] sm:$0xff] }
 0x27d   : > { %2120 = vrot.lane.b32.xlu1 %v2117_v49, %s3443_s0  ;;  %2626 = vrot.lane.b32.xlu0 %v2623_v15, %s3443_s0  ;;  %v3207_v15 = vld [vmem:[#allocation2 + $0x50] sm:$0xff]  ;;  %v2191_v7 = vmul.f32 %v3206_v1, %v2190_v63 }
 0x27f   : > { %v1925_v56 = vpop.permute.xlu1 %1924  ;;  %v1944_v62 = vpop.permute.xlu0 %1943 }
 0x280   : > { %v1929_v36 = vadd.f32 %v1925_v56, %v1908_v52  ;;  %v1949_v6 = vadd.f32 %v1944_v62, %v1928_v42 }
 0x281   : > { %2628 = vrot.lane.b32.xlu1 %v2625_v61, %s3443_s0  ;;  %2139 = vrot.lane.b32.xlu0 %v2136_v59, %s3443_s0  ;;  %v2230_v61 = vstv %s3032_s4 }
 0x283   : > { %v1946_v11 = vpop.permute.xlu1 %1945  ;;  %v1958_v40 = vpop.permute.xlu0 %1957 }
 0x284   : > { %v1950_v43 = vadd.f32 %v1946_v11, %v1929_v36  ;;  %v1963_v33 = vadd.f32 %v1958_v40, %v1949_v6  ;;  %v2231_v36 = vmul.f32 %v3206_v1, %v2230_v61 }
 0x285   : > { %2141 = vrot.lane.b32.xlu1 %v2138_v41, %s3443_s0  ;;  %2647 = vrot.lane.b32.xlu0 %v2644_v2, %s3443_s0  ;;  %v2232_v41 = vmul.f32 %v3207_v15, %v2230_v61 }
 0x287   : > { %v1960_v18 = vpop.permute.xlu1 %1959  ;;  %v1979_v20 = vpop.permute.xlu0 %1978 }
 0x288   : > { %v1964_v47 = vadd.f32 %v1960_v18, %v1950_v43  ;;  %v1984_v16 = vadd.f32 %v1979_v20, %v1963_v33  ;;  %v2247_v43 = vstv %s3033_s6  ;;  %v2192_v18 = vmul.f32 %v3207_v15, %v2190_v63 }
 0x289   : > { %2649 = vrot.lane.b32.xlu1 %v2646_v50, %s3443_s0  ;;  %2168 = vrot.lane.b32.xlu0 %v4902_v28, %s5303_s15  ;;  %s3031_s0 = sld [smem:[#allocation11 + $0x18a]]  ;;  %v2237_v50 = vrot.slane %v2231_v36, 3 }
 0x28b   : > { %v1981_v32 = vpop.permute.xlu1 %1980  ;;  %v2000_v38 = vpop.permute.xlu0 %1999 }
 0x28c   : > { %v1985_v51 = vadd.f32 %v1981_v32, %v1964_v47  ;;  %v2005_v58 = vadd.f32 %v2000_v38, %v1984_v16  ;;  %v2238_v32 = vrot.slane %v2232_v41, 3  ;;  %v2248_v38 = vmul.f32 %v3206_v1, %v2247_v43 }
 0x28d   : > { %2170 = vrot.lane.b32.xlu1 %v4905_v13, %s5303_s15  ;;  %2172 = vrot.lane.b32.xlu0 %v4921_v10, %s5303_s15 }
 0x28f   : > { %v2002_v46 = vpop.permute.xlu1 %2001  ;;  %v2021_v35 = vpop.permute.xlu0 %2020  ;;  %v2213_v39 = vstv %s3031_s0 }
 0x290   : > { %v2006_v14 = vadd.f32 %v2002_v46, %v1985_v51  ;;  %v2026_v12 = vadd.f32 %v2021_v35, %v2005_v58  ;;  %v2214_v52 = vmul.f32 %v3206_v1, %v2213_v39  ;;  %v2215_v62 = vmul.f32 %v3207_v15, %v2213_v39 }
 0x291   : > { %2676 = vrot.lane.b32.xlu1 %v4668_v23, %s5303_s15  ;;  %2678 = vrot.lane.b32.xlu0 %v4670_v29, %s5303_s15  ;;  %v2216_v2 = vmul.f32 %v3208_v0, %v2213_v39  ;;  %v2249_v51 = vmul.f32 %v3207_v15, %v2247_v43  ;;  %v2233_v35 = vmul.f32 %v3208_v0, %v2230_v61 }
 0x292   : > { %v2220_v11 = vrot.slane %v2214_v52, 2  ;;  %v2221_v40 = vrot.slane %v2215_v62, 2  ;;  %v2250_v39 = vmul.f32 %v3208_v0, %v2247_v43 }
 0x293   : > { %v2023_v28 = vpop.permute.xlu1 %2022  ;;  %v2042_v44 = vpop.permute.xlu0 %2041  ;;  %v2223_v46 = vrot.slane %v2216_v2, 2 }
 0x294   : > { %v2027_v27 = vadd.f32 %v2023_v28, %v2006_v14  ;;  %v5083_v31 = vadd.f32 %v2042_v44, %v2026_v12  ;;  %v2222_v16 = vsel %vm691_vm6, %v2220_v11, %v2221_v40  ;;  %v2239_v44 = vsel %vm709_vm3, %v2237_v50, %v2238_v32 }
 0x295   : > { %2680 = vrot.lane.b32.xlu1 %v4686_v26, %s5303_s15  ;;  %s3030_s15 = sld [smem:[#allocation11 + $0x185]]  ;;  %v2257_v62 = vrot.slane %v2250_v39, 4 }
 0x297   : > { %v2044_v13 = vpop.permute.xlu1 %2043  ;;  %v5087_v10 = vpop.permute.xlu0 %2269 }
 0x298   : > { %v5089_v60 = vadd.f32 %v2044_v13, %v2027_v27  ;;  %v2254_v27 = vrot.slane %v2248_v38, 4 }
 0x29b   : > { %v5091_v48 = vpop.permute.xlu1 %2271  ;;  %v5093_v17 = vpop.permute.xlu0 %2290  ;;  %v2196_v54 = vstv %s3030_s15 }
 0x29c   : > { %v2197_v9 = vmul.f32 %v3206_v1, %v2196_v54  ;;  %v2198_v55 = vmul.f32 %v3207_v15, %v2196_v54  ;;  %v2199_v37 = vmul.f32 %v3208_v0, %v2196_v54  ;;  %v2255_v54 = vrot.slane %v2249_v51, 4 }
 0x29e   : > { %v2203_v8 = vrot.slane %v2197_v9, 1  ;;  %v2204_v56 = vrot.slane %v2198_v55, 1  ;;  %v2206_v33 = vrot.slane %v2199_v37, 1  ;;  %v2224_v9 = vsel %vm691_vm6, %v2221_v40, %v2223_v46 }
 0x29f   : > { %v5095_v23 = vpop.permute.xlu1 %2292  ;;  %v5097_v29 = vpop.permute.xlu0 %2311  ;;  %v2240_v55 = vrot.slane %v2233_v35, 3 }
 0x2a0   : > { %v2205_v21 = vsel %vm673_vm5, %v2203_v8, %v2204_v56  ;;  %v2207_v58 = vsel %vm673_vm5, %v2204_v56, %v2206_v33  ;;  %v2256_v8 = vsel %vm727_vm4, %v2254_v27, %v2255_v54 }
 0x2a1   : > { %v2210_v30 = vadd.f32 %v2205_v21, %v2191_v7  ;;  %v2211_v13 = vadd.f32 %v2207_v58, %v2192_v18  ;;  %v2241_v56 = vsel %vm709_vm3, %v2238_v32, %v2240_v55  ;;  %v2258_v21 = vsel %vm727_vm4, %v2255_v54, %v2257_v62 }
 0x2a3   : > { %v5099_v4 = vpop.permute.xlu1 %2313  ;;  %v5101_v19 = vpop.permute.xlu0 %2332  ;;  %v2227_v28 = vadd.f32 %v2222_v16, %v2210_v30  ;;  %v2228_v15 = vadd.f32 %v2224_v9, %v2211_v13 }
 0x2a5   : > { %v2244_v1 = vadd.f32 %v2239_v44, %v2227_v28  ;;  %v2245_v36 = vadd.f32 %v2241_v56, %v2228_v15  ;;  %v2148_v56 = vstv %s5169_s12 }
 0x2a7   : > { %v5103_v57 = vpop.permute.xlu1 %2334  ;;  %v5105_v26 = vpop.permute.xlu0 %2353  ;;  %v2261_v7 = vadd.f32 %v2256_v8, %v2244_v1  ;;  %v2262_v0 = vadd.f32 %v2258_v21, %v2245_v36  ;;  %v2152_v21 = vstv %s5172_s20 }
 0x2a9   : > { %v2275_v11 = vadd.f32 %v5087_v10, %v2261_v7  ;;  %v2276_v33 = vadd.f32 %v5091_v48, %v2262_v0 }
 0x2ab   : > { %v5107_v53 = vpop.permute.xlu1 %2355  ;;  %v5109_v3 = vpop.permute.xlu0 %2367  ;;  %v2296_v43 = vadd.f32 %v5093_v17, %v2275_v11  ;;  %v2297_v16 = vadd.f32 %v5095_v23, %v2276_v33  ;;  %v2656_v33 = vstv %s5174_s21 }
 0x2ad   : > { %v2317_v2 = vadd.f32 %v5097_v29, %v2296_v43  ;;  %v2318_v32 = vadd.f32 %v5099_v4, %v2297_v16 }
 0x2af   : > { %v5111_v34 = vpop.permute.xlu1 %2369  ;;  %v5113_v22 = vpop.permute.xlu0 %2388  ;;  %v2338_v50 = vadd.f32 %v5101_v19, %v2317_v2  ;;  %v2339_v58 = vadd.f32 %v5103_v57, %v2318_v32 }
 0x2b1   : > { %v2359_v38 = vadd.f32 %v5105_v26, %v2338_v50  ;;  %v2360_v48 = vadd.f32 %v5107_v53, %v2339_v58  ;;  %v2660_v50 = vstv %s5177_s18 }
 0x2b3   : > { %v5117_v25 = vpop.permute.xlu1 %2390  ;;  %v5119_v5 = vpop.permute.xlu0 %2409  ;;  %v2373_v17 = vadd.f32 %v5109_v3, %v2359_v38  ;;  %v2374_v23 = vadd.f32 %v5111_v34, %v2360_v48 }
 0x2b5   : > { %v2394_v29 = vadd.f32 %v5113_v22, %v2373_v17  ;;  %v2395_v4 = vadd.f32 %v5117_v25, %v2374_v23 }
 0x2b7   : > { %v5121_v49 = vpop.permute.xlu1 %2411  ;;  %v5123_v24 = vpop.permute.xlu0 %2430  ;;  %v2415_v19 = vadd.f32 %v5119_v5, %v2394_v29 }
 0x2b8   : > { %v2416_v57 = vadd.f32 %v5121_v49, %v2395_v4 }
 0x2b9   : > { %v2436_v26 = vadd.f32 %v5123_v24, %v2415_v19 }
 0x2bb   : > { %v5126_v42 = vpop.permute.xlu1 %2432  ;;  %v5128_v45 = vpop.permute.xlu0 %2451 }
 0x2bc   : > { %v2457_v3 = vadd.f32 %v5128_v45, %v2436_v26  ;;  %v2437_v53 = vadd.f32 %v5126_v42, %v2416_v57 }
 0x2bf   : > { %v5130_v6 = vpop.permute.xlu1 %2453  ;;  %v5132_v59 = vpop.permute.xlu0 %2465 }
 0x2c0   : > { %v2471_v22 = vadd.f32 %v5132_v59, %v2457_v3  ;;  %v2458_v34 = vadd.f32 %v5130_v6, %v2437_v53 }
 0x2c3   : > { %v5135_v20 = vpop.permute.xlu1 %2467  ;;  %v5137_v47 = vpop.permute.xlu0 %2486 }
 0x2c4   : > { %v2492_v5 = vadd.f32 %v5137_v47, %v2471_v22  ;;  %v2472_v25 = vadd.f32 %v5135_v20, %v2458_v34 }
 0x2c7   : > { %v2489_v14 = vpop.permute.xlu1 %2488  ;;  %v2508_v12 = vpop.permute.xlu0 %2507 }
 0x2c8   : > { %v2513_v54 = vadd.f32 %v2508_v12, %v2492_v5  ;;  %v2493_v49 = vadd.f32 %v2489_v14, %v2472_v25 }
 0x2cb   : > { %v2510_v63 = vpop.permute.xlu1 %2509  ;;  %v2529_v52 = vpop.permute.xlu0 %2528 }
 0x2cc   : > { %v2534_v55 = vadd.f32 %v2529_v52, %v2513_v54  ;;  %v2514_v42 = vadd.f32 %v2510_v63, %v2493_v49 }
 0x2cf   : > { %v2531_v61 = vpop.permute.xlu1 %2530  ;;  %v2550_v37 = vpop.permute.xlu0 %2549 }
 0x2d0   : > { %v2555_v59 = vadd.f32 %v2550_v37, %v2534_v55  ;;  %v2535_v20 = vadd.f32 %v2531_v61, %v2514_v42 }
 0x2d3   : > { %v2552_v40 = vpop.permute.xlu1 %2551  ;;  %v2056_v41 = vpop.permute.xlu0 %2055 }
 0x2d4   : > { %v2061_v45 = vadd.f32 %v2056_v41, %v5083_v31  ;;  %v2556_v14 = vadd.f32 %v2552_v40, %v2535_v20 }
 0x2d7   : > { %v2058_v30 = vpop.permute.xlu1 %2057  ;;  %v2564_v18 = vpop.permute.xlu0 %2563 }
 0x2d8   : > { %v2062_v47 = vadd.f32 %v2058_v30, %v5089_v60  ;;  %v2569_v12 = vadd.f32 %v2564_v18, %v2555_v59 }
 0x2db   : > { %v2566_v10 = vpop.permute.xlu1 %2565  ;;  %v2077_v51 = vpop.permute.xlu0 %2076 }
 0x2dc   : > { %v2082_v39 = vadd.f32 %v2077_v51, %v2061_v45  ;;  %v2570_v37 = vadd.f32 %v2566_v10, %v2556_v14 }
 0x2df   : > { %v2079_v46 = vpop.permute.xlu1 %2078  ;;  %v2585_v35 = vpop.permute.xlu0 %2584 }
 0x2e0   : > { %v2083_v31 = vadd.f32 %v2079_v46, %v2062_v47  ;;  %v2590_v52 = vadd.f32 %v2585_v35, %v2569_v12 }
 0x2e3   : > { %v2587_v28 = vpop.permute.xlu1 %2586  ;;  %v2098_v44 = vpop.permute.xlu0 %2097 }
 0x2e4   : > { %v2103_v15 = vadd.f32 %v2098_v44, %v2082_v39  ;;  %v2591_v11 = vadd.f32 %v2587_v28, %v2570_v37 }
 0x2e7   : > { %v2100_v27 = vpop.permute.xlu1 %2099  ;;  %v2606_v13 = vpop.permute.xlu0 %2605 }
 0x2e8   : > { %v2104_v7 = vadd.f32 %v2100_v27, %v2083_v31  ;;  %v2611_v36 = vadd.f32 %v2606_v13, %v2590_v52 }
 0x2eb   : > { %v2608_v24 = vpop.permute.xlu1 %2607  ;;  %v2119_v9 = vpop.permute.xlu0 %2118 }
 0x2ec   : > { %v2124_v63 = vadd.f32 %v2119_v9, %v2103_v15  ;;  %v2612_v2 = vadd.f32 %v2608_v24, %v2591_v11 }
 0x2ef   : > { %v2121_v6 = vpop.permute.xlu1 %2120  ;;  %v2627_v1 = vpop.permute.xlu0 %2626 }
 0x2f0   : > { %v2125_v60 = vadd.f32 %v2121_v6, %v2104_v7  ;;  %v2632_v41 = vadd.f32 %v2627_v1, %v2611_v36 }
 0x2f3   : > { %v2629_v8 = vpop.permute.xlu1 %2628  ;;  %v2140_v62 = vpop.permute.xlu0 %2139 }
 0x2f4   : > { %v2145_v61 = vadd.f32 %v2140_v62, %v2124_v63  ;;  %v2633_v32 = vadd.f32 %v2629_v8, %v2612_v2 }
 0x2f6   : > { %v2149_v0 = vmul.f32 %v2148_v56, %v2145_v61 }
 0x2f7   : > { %v2142_v43 = vpop.permute.xlu1 %2141  ;;  %v2648_v40 = vpop.permute.xlu0 %2647 }
 0x2f8   : > { %v2153_v30 = vadd.f32 %v2152_v21, %v2149_v0  ;;  %v2146_v18 = vadd.f32 %v2142_v43, %v2125_v60  ;;  %v2653_v16 = vadd.f32 %v2648_v40, %v2632_v41 }
 0x2fa   : > { %v2155_v38 = vadd.f32 3.0, %v2153_v30  ;;  %v2150_v10 = vmul.f32 %v2148_v56, %v2146_v18  ;;  %v2657_v51 = vmul.f32 %v2656_v33, %v2653_v16 }
 0x2fb   : > { %v2650_v58 = vpop.permute.xlu1 %2649  ;;  %v2169_v17 = vpop.permute.xlu0 %2168 }
 0x2fc   : > { %v2157_v48 = vmax.f32 %v2155_v38, 0.0  ;;  %v2154_v29 = vadd.f32 %v2152_v21, %v2150_v10  ;;  %v2661_v46 = vadd.f32 %v2660_v50, %v2657_v51  ;;  %v2654_v35 = vadd.f32 %v2650_v58, %v2633_v32  ;;  %3021 = vst.msk [vmem:[%s4258_s5 + $0x1e] sm:$0xfc] %vm1159_vm7, %v2169_v17 }
 0x2fe   : > { %v2159_v23 = vmin.f32 %v2157_v48, 6.0  ;;  %v2156_v19 = vadd.f32 3.0, %v2154_v29  ;;  %v2663_v4 = vadd.f32 3.0, %v2661_v46  ;;  %v2658_v26 = vmul.f32 %v2656_v33, %v2654_v35 }
 0x2ff   : > { %v2171_v28 = vpop.permute.xlu1 %2170  ;;  %v2173_v44 = vpop.permute.xlu0 %2172 }
 0x300   : > { %v2161_v57 = vmul.f32 %v2159_v23, %v2153_v30  ;;  %v2158_v3 = vmax.f32 %v2156_v19, 0.0  ;;  %v2665_v53 = vmax.f32 %v2663_v4, 0.0  ;;  %v2662_v22 = vadd.f32 %v2660_v50, %v2658_v26  ;;  %3022 = vst.msk [vmem:[%s4258_s5 + $0x26] sm:$0xff] %vm1161_vm8, %v2171_v28 }
 0x301   : > { %3023 = vst.msk [vmem:[%s4258_s5 + $0x2e] sm:$0x3] %vm1163_vm9, %v2173_v44 }
 0x302   : > { %v2163_v27 = vmul.f32 0.16666667, %v2161_v57  ;;  %v2160_v13 = vmin.f32 %v2158_v3, 6.0  ;;  %v2667_v34 = vmin.f32 %v2665_v53, 6.0  ;;  %v2664_v5 = vadd.f32 3.0, %v2662_v22 }
 0x303   : > { %v2677_v25 = vpop.permute.xlu1 %2676  ;;  %v2679_v54 = vpop.permute.xlu0 %2678 }
 0x304   : > { %3024 = vst.msk [vmem:[%s4258_s5 + $0x60] sm:$0xff] %vm1161_vm8, %v2163_v27  ;;  %v2162_v24 = vmul.f32 %v2160_v13, %v2154_v29  ;;  %v2669_v9 = vmul.f32 %v2667_v34, %v2661_v46  ;;  %v2666_v49 = vmax.f32 %v2664_v5, 0.0  ;;  %3057 = vst.msk [vmem:[%s4258_s5 + $0x36] sm:$0xff] %vm1161_vm8, %v2679_v54 }
 0x305   : > { %3056 = vst.msk [vmem:[%s4258_s5 + $0x2e] sm:$0xfc] %vm1159_vm7, %v2677_v25 }
 0x306   : > { %v2164_v55 = vmul.f32 0.16666667, %v2162_v24  ;;  %v2671_v45 = vmul.f32 0.16666667, %v2669_v9  ;;  %v2668_v42 = vmin.f32 %v2666_v49, 6.0 }
 0x307   : > { %v2681_v59 = vpop.permute.xlu1 %2680 }
 0x308   : > { %3025 = vst.msk [vmem:[%s4258_s5 + $0x68] sm:$0xff] %vm1161_vm8, %v2164_v55  ;;  %3059 = vst.msk [vmem:[%s4258_s5 + $0x70] sm:$0xff] %vm1161_vm8, %v2671_v45  ;;  %v2670_v39 = vmul.f32 %v2668_v42, %v2662_v22 }
 0x309   : > { %3058 = vst.msk [vmem:[%s4258_s5 + $0x3e] sm:$0x3] %vm1163_vm9, %v2681_v59 }
 0x30a   : > { %v2672_v6 = vmul.f32 0.16666667, %v2670_v39 }
 0x30c   : > { %3060 = vst.msk [vmem:[%s4258_s5 + $0x78] sm:$0xff] %vm1161_vm8, %v2672_v6 }
 0x30d   : > { %3342 = shalt.err (!%p3339_p8)
}
 0x30e   : > { %s3343_s5 = scalar_lea.hbm %s5206_s16, 2048  ;;  %s3347_s0 = scalar_lea.hbm %s5266_s7, 4096 }
 0x30f   : > { %p3344_p2 = scmp.ne.s32.totalorder %s5206_s16, %s3343_s5  ;;  %p3348_p4 = scmp.lt.u32.totalorder %s5206_s16, %s5266_s7 }
 0x310   : > { %p3349_p0 = scmp.lt.u32.totalorder %s3347_s0, %s3343_s5  ;;  %p3351_p7 = scmp.lt.u32.totalorder %s3343_s5, %s5206_s16 }
 0x311   : > { %p3345_p1 = pnand %p3344_p2, %p5305_p11 }
 0x312   : > { %p3350_p9 = por %p3349_p0, %p3348_p4 }
 0x313   : > { %p3346_p6 = pneg %p3345_p1 }
 0x314   : > { %p3352_p13 = por %p3351_p7, %p3350_p9 }
 0x316   : > { %p3353_p3 = pnand %p3352_p13, %p3346_p6 }
 0x318   : > { %3356 = shalt.err (!%p3353_p3)
}
 0x319   : > { %s3445_s6 = smov 128   ;;  %s3446_s12 = smov 8  }
 0x31a   : > { %3094 = dma.vmem_to_hbm [thread:$0]  (%p5305_p11), %s5208_s22, 2048, %s5206_s16, %s2693_s27, %s3445_s6, %s3445_s6, %s3446_s12  }
 0x31b PF: > { %s2723_s20 = sand.u32 1, %s3407_s24   ;;  %p5306_p5 = scmp.ne.s32.totalorder %s5298_s14, 0 }
 0x31c   : > { %p5307_p10 = scmp.ge.s32.totalorder %s3427_s29, 2  ;;  %s2724_s21 = scalar_lea.sflag [#allocation5], %s2723_s20 }
 0x31e   : > { %p3120_p12 = pnand %p5307_p10, %p5306_p5 }
 0x320   : > { %3402 = dma.done.wait (!%p3120_p12), %s2724_s21, 2048  }
 0x321   : > { %3404 = vsyncadd (!%p3120_p12), %s2724_s21, 4294965248  ;;  %s27_s29 = sadd.s32 1, %s3427_s29   ;;  %s5308_s8 = sld [smem:[#allocation23_spill]] }
 0x322   : > { %p24_p8 = scmp.ge.s32.totalorder %s27_s29, 4   ;;  %s5309_s24 = smov %s3411_s25 }
 0x323   : > { %s5310_s25 = smov %s3415_s26  ;;  %s5311_s26 = smov %s3627_s13 }
 0x324   : > { %s5312_s27 = smov %s3423_s28  ;;  %26 = sbr.rel (!%p24_p8) target bundleno = 18 (0x12), region = 139 }
 0x327   : > { %s5313_s28 = smov %s5308_s8 }
 0x32b   :  { %2729 = vsyncpa [#allocation4], 1 }
 0x32c   :  { %2731 = vsyncpa [#allocation4 + $0x1], 1 }
 0x32d   :  { %2732 = vsyncpa [#allocation5], 1 }
 0x32e   :  { %2734 = vsyncpa [#allocation5 + $0x1], 1 }
 0x32f   :  { %2735 = vsyncpa [#allocation6], 1 }
 0x330   :  { %2737 = vsyncpa [#allocation6 + $0x1], 1 }
 0x331   :  { %2738 = vsyncpa [#allocation9], 1 }
 0x332   :  { %2739 = vsyncpa [#allocation12], 1 }
 0x333   :  { %2740 = vsyncpa [#allocation15], 1 }

</bundles_post_ra>
